<compile_context>
chip_gen: v6e
topology: v6e:2x2x1
jax: 0.10.0
libtpu: 0.0.40
codegen_flags: <defaults>
</compile_context>

<pallas_src>
import functools

import jax
import jax.numpy as jnp
from jax.experimental import pallas as pl
from jax.experimental.pallas import tpu as pltpu


def _attention_kernel(xh_ref, wqkc_ref, bqkc_ref, wp_ref, bp_ref, wv_ref, bv_ref,
                      out_ref):
    # xh_ref : (BT, H+2, W+2, Cin)   zero-padded NHWC halo tiles (BT images)
    # wqkc_ref:(Cin, 2*Cs + Cout)    packed [wq | wk | wv_center]
    # bqkc_ref:(1, 2*Cs + Cout)      packed [bq | bk | 0]
    # wp_ref : (1, Cs)               psi 1x1 conv weight
    # bp_ref : (1, 1)   in SMEM      psi bias (scalar)
    # wv_ref : (8, Cin, Cout)        the 8 non-center 3x3 taps (kh-major, kw-minor)
    # bv_ref : (1, Cout)
    # out_ref: (BT, Cout, H*W)       NCHW with spatial flattened (lane-dense store)
    bt, hp2, wp2, cin = xh_ref.shape
    h, w = hp2 - 2, wp2 - 2
    cout = out_ref.shape[1]
    cs = (wqkc_ref.shape[1] - cout) // 2

    # Hoisted weight/bias loads (one VMEM/SMEM read per grid step).
    wqkc = wqkc_ref[...]
    bqkc = bqkc_ref[...]
    wpv = wp_ref[...]
    bp = bp_ref[0, 0]
    bv = bv_ref[...]

    for b in range(bt):                       # static unroll over images in this block
        def tap(kh, kw):
            # (H, W, Cin) window of the padded image -> (H*W, Cin) pixel matrix.
            return xh_ref[b, kh:kh + h, kw:kw + w, :].reshape(h * w, cin)

        # Fused 1x1 matmul for q, k and the center tap of the 3x3 conv.
        fused = jnp.dot(tap(1, 1), wqkc,
                        preferred_element_type=jnp.float32) + bqkc
        q = jnp.maximum(fused[:, :cs], 0.0)
        k = jnp.maximum(fused[:, cs:2 * cs], 0.0)
        acc = fused[:, 2 * cs:]               # center-tap contribution (bias packed as 0)

        # Remaining 8 taps of the 3x3 / pad=1 conv (built from the halo tile in VMEM).
        t = 0
        for kh in range(3):
            for kw in range(3):
                if kh == 1 and kw == 1:
                    continue
                acc = acc + jnp.dot(tap(kh, kw), wv_ref[t],
                                    preferred_element_type=jnp.float32)
                t += 1
        v = jnp.maximum(acc + bv, 0.0)        # (H*W, Cout)

        # psi gate: q*k >= 0 already, so the leading ReLU of the psi block is a no-op.
        z = jnp.sum(q * k * wpv, axis=-1, keepdims=True) + bp
        psi = jax.nn.sigmoid(jnp.maximum(z, 0.0))            # (H*W, 1)

        # Channels-first so the store is lane-dense (last dim = H*W >= 128) and the
        # result is already NCHW -> no wrapper-side output transpose needed.
        out_ref[b] = (psi * v).T.astype(out_ref.dtype)


def init_params(key, in_channels, out_channels, eps=1e-3):
    """Deterministic parameter init (PyTorch-like conv init + BN params), BN folded."""
    cs = out_channels // 4
    it = iter(jax.random.split(key, 24))

    def conv_init(cin, cout, ksize):
        fan_in = cin * ksize * ksize
        bound = 1.0 / fan_in ** 0.5
        w = jax.random.uniform(next(it), (ksize, ksize, cin, cout),
                               jnp.float32, -bound, bound)
        b = jax.random.uniform(next(it), (cout,), jnp.float32, -bound, bound)
        return w, b

    def bn_init(c):
        gamma = 1.0 + 0.1 * jax.random.normal(next(it), (c,), jnp.float32)
        beta = 0.1 * jax.random.normal(next(it), (c,), jnp.float32)
        mean = 0.1 * jax.random.normal(next(it), (c,), jnp.float32)
        var = 1.0 + 0.1 * jax.random.uniform(next(it), (c,), jnp.float32)
        return gamma, beta, mean, var

    def fold(w, b, gamma, beta, mean, var):
        scale = gamma / jnp.sqrt(var + eps)          # per output channel
        return w * scale, (b - mean) * scale + beta

    wq, bq = fold(*conv_init(in_channels, cs, 1), *bn_init(cs))
    wk, bk = fold(*conv_init(in_channels, cs, 1), *bn_init(cs))
    wp, bp = fold(*conv_init(cs, 1, 1), *bn_init(1))
    wv, bv = fold(*conv_init(in_channels, out_channels, 3), *bn_init(out_channels))

    return {
        "wq": wq.reshape(in_channels, cs), "bq": bq.reshape(1, cs),
        "wk": wk.reshape(in_channels, cs), "bk": bk.reshape(1, cs),
        "wp": wp.reshape(cs, 1).T,         "bp": bp.reshape(1, 1),
        "wv": wv.reshape(9, in_channels, out_channels),   # kh-major, kw-minor; 4=center
        "bv": bv.reshape(1, out_channels),
    }


def attention_forward(x_nchw, params, batch_tile=1, compute_dtype=jnp.float32):
    """NCHW in, NCHW out. compute_dtype=jnp.bfloat16 halves HBM reads on v6e/v7x."""
    N, Cin, H, W = x_nchw.shape
    wq, bq = params["wq"], params["bq"]
    wk, bk = params["wk"], params["bk"]
    wp, bp = params["wp"], params["bp"]
    wv, bv = params["wv"], params["bv"]
    Cout = wv.shape[-1]

    assert N % batch_tile == 0, (N, batch_tile)

    # Pack the three pointwise matmuls that share the same operand (center pixel):
    # [wq | wk | wv_center] with bias [bq | bk | 0].
    wqkc = jnp.concatenate([wq, wk, wv[4]], axis=1).astype(compute_dtype)
    bqkc = jnp.concatenate([bq, bk, jnp.zeros((1, Cout), jnp.float32)], axis=1)
    wv_rest = jnp.concatenate([wv[:4], wv[5:]], axis=0).astype(compute_dtype)

    # Single cheap layout pass: NCHW -> NHWC + zero halo pad (no 9x im2col blow-up).
    x = jnp.transpose(x_nchw, (0, 2, 3, 1)).astype(compute_dtype)
    xpad = jnp.pad(x, ((0, 0), (1, 1), (1, 1), (0, 0)))

    # TODO(synk): for very large images (per-image halo tile approaching the scoped
    # VMEM budget — especially v7x's 64 MiB VMEM), split H into row blocks with an
    # overlapping halo instead of whole-image tiles.

    def rep(arr):
        nd = arr.ndim
        return pl.BlockSpec(arr.shape, lambda i, nd=nd: (0,) * nd)

    out = pl.pallas_call(
        _attention_kernel,
        grid=(N // batch_tile,),
        out_shape=jax.ShapeDtypeStruct((N, Cout, H * W), jnp.float32),
        in_specs=[
            pl.BlockSpec((batch_tile, H + 2, W + 2, Cin), lambda i: (i, 0, 0, 0)),
            rep(wqkc), rep(bqkc), rep(wp),
            pl.BlockSpec(memory_space=pltpu.MemorySpace.SMEM),   # bp scalar
            rep(wv_rest), rep(bv),
        ],
        out_specs=pl.BlockSpec((batch_tile, Cout, H * W), lambda i: (i, 0, 0)),
        compiler_params=pltpu.CompilerParams(
            dimension_semantics=("parallel",)),
    )(xpad, wqkc, bqkc, wp, bp, wv_rest, bv)

    # Free reshape: (N, Cout, H*W) is already NCHW with spatial flattened.
    return out.reshape(N, Cout, H, W)


def reference(x_nchw, params):
    """Pure-JAX reference with the same folded parameters (for validation)."""
    x = jnp.transpose(x_nchw, (0, 2, 3, 1)).astype(jnp.float32)
    wq, bq = params["wq"], params["bq"]
    wk, bk = params["wk"], params["bk"]
    wp, bp = params["wp"], params["bp"]
    wv, bv = params["wv"], params["bv"]
    Cin = x.shape[-1]

    q = jax.nn.relu(jnp.einsum("nhwc,cd->nhwd", x, wq) + bq)
    k = jax.nn.relu(jnp.einsum("nhwc,cd->nhwd", x, wk) + bk)
    a = jax.nn.relu(q * k)
    z = jnp.einsum("nhwd,d->nhw", a, wp[0])[..., None] + bp[0, 0]
    psi = jax.nn.sigmoid(jax.nn.relu(z))

    wv_hwio = wv.reshape(3, 3, Cin, -1)
    conv = jax.lax.conv_general_dilated(
        x, wv_hwio, (1, 1), "SAME", dimension_numbers=("NHWC", "HWIO", "NHWC"))
    v = jax.nn.relu(conv + bv)
    out = psi * v
    return jnp.transpose(out, (0, 3, 1, 2))


if __name__ == "__main__":
    key = jax.random.PRNGKey(0)
    kx, kp = jax.random.split(key)

    N, Cin, H, W = 2, 4, 16, 16     # input (NCHW, PyTorch convention)
    Cout = 16                       # out_channels -> sub_channels = 4
    x = jax.random.normal(kx, (N, Cin, H, W), dtype=jnp.float32)
    params = init_params(kp, Cin, Cout)

    # Jit the whole forward so the NCHW->NHWC pad/transpose layout pass, the
    # pallas_call and the final reshape compile into a single XLA program.
    fwd = jax.jit(functools.partial(attention_forward, batch_tile=1))
    out = fwd(x, params)            # grid=(2,): even, >=2 "parallel" steps
    out = jax.block_until_ready(out)

    ref = reference(x, params)
    assert out.shape == (N, Cout, H, W), out.shape
    err = float(jnp.max(jnp.abs(out - ref)))
    assert err < 1e-4, f"max abs err {err}"
    print("KERNEL_OK")
</pallas_src>

<mosaic_0001>
module attributes {stable_mosaic.version = 11 : i64} {
  func.func @_attention_kernel(%arg0: i32, %arg1: memref<1x18x18x4xf32, #tpu.memory_space<vmem>>, %arg2: memref<4x24xf32, #tpu.memory_space<vmem>>, %arg3: memref<1x24xf32, #tpu.memory_space<vmem>>, %arg4: memref<1x4xf32, #tpu.memory_space<vmem>>, %arg5: memref<1x1xf32, #tpu.memory_space<smem>>, %arg6: memref<8x4x16xf32, #tpu.memory_space<vmem>>, %arg7: memref<1x16xf32, #tpu.memory_space<vmem>>, %arg8: memref<1x16x256xf32, #tpu.memory_space<vmem>>) attributes {dimension_semantics = [#tpu.dimension_semantics<parallel>], iteration_bounds = array<i64: 2>, scalar_prefetch = 0 : i64, scratch_operands = 0 : i64, tpu.core_type = #tpu.core_type<tc>, window_params = [{transform_indices = @transform_0, window_bounds = array<i64: 1, 18, 18, 4>}, {pipeline_mode = #tpu.pipeline_mode<synchronous>, transform_indices = @transform_1, window_bounds = array<i64: 4, 24>}, {pipeline_mode = #tpu.pipeline_mode<synchronous>, transform_indices = @transform_2, window_bounds = array<i64: 1, 24>}, {pipeline_mode = #tpu.pipeline_mode<synchronous>, transform_indices = @transform_3, window_bounds = array<i64: 1, 4>}, {transform_indices = @transform_4, window_bounds = array<i64: 1, 1>}, {pipeline_mode = #tpu.pipeline_mode<synchronous>, transform_indices = @transform_5, window_bounds = array<i64: 8, 4, 16>}, {pipeline_mode = #tpu.pipeline_mode<synchronous>, transform_indices = @transform_6, window_bounds = array<i64: 1, 16>}, {transform_indices = @transform_7, window_bounds = array<i64: 1, 16, 256>}]} {
    %c0 = arith.constant 0 : index
    %c0_0 = arith.constant 0 : index
    %0 = vector.load %arg2[%c0, %c0_0] : memref<4x24xf32, #tpu.memory_space<vmem>>, vector<4x24xf32>
    %c0_1 = arith.constant 0 : index
    %c0_2 = arith.constant 0 : index
    %1 = vector.load %arg3[%c0_1, %c0_2] : memref<1x24xf32, #tpu.memory_space<vmem>>, vector<1x24xf32>
    %c0_3 = arith.constant 0 : index
    %c0_4 = arith.constant 0 : index
    %2 = vector.load %arg4[%c0_3, %c0_4] : memref<1x4xf32, #tpu.memory_space<vmem>>, vector<1x4xf32>
    %c0_5 = arith.constant 0 : index
    %c0_6 = arith.constant 0 : index
    %3 = memref.load %arg5[%c0_5, %c0_6] : memref<1x1xf32, #tpu.memory_space<smem>>
    %c0_7 = arith.constant 0 : index
    %c0_8 = arith.constant 0 : index
    %4 = vector.load %arg7[%c0_7, %c0_8] : memref<1x16xf32, #tpu.memory_space<vmem>>, vector<1x16xf32>
    %c0_9 = arith.constant 0 : index
    %c1 = arith.constant 1 : index
    %c1_10 = arith.constant 1 : index
    %c0_11 = arith.constant 0 : index
    %5 = vector.load %arg1[%c0_9, %c1, %c1_10, %c0_11] : memref<1x18x18x4xf32, #tpu.memory_space<vmem>>, vector<1x16x16x4xf32>
    %6 = vector.shape_cast %5 : vector<1x16x16x4xf32> to vector<16x16x4xf32>
    %7 = vector.shape_cast %6 : vector<16x16x4xf32> to vector<256x4xf32>
    %cst = arith.constant dense<0.000000e+00> : vector<256x24xf32>
    %8 = tpu.matmul %7, %0, %cst {dimension_numbers = #tpu.dot_dimension_numbers<[1], [0], [0], [1], [0, 0, 1, 1], [], []>} : vector<256x4xf32>, vector<4x24xf32>, vector<256x24xf32> -> vector<256x24xf32>
    %9 = vector.broadcast %1 : vector<1x24xf32> to vector<256x24xf32>
    %10 = arith.addf %8, %9 : vector<256x24xf32>
    %11 = vector.extract_strided_slice %10 {offsets = [0, 0], sizes = [256, 4], strides = [1, 1]} : vector<256x24xf32> to vector<256x4xf32>
    %cst_12 = arith.constant 0.000000e+00 : f32
    %12 = vector.broadcast %cst_12 : f32 to vector<256x4xf32>
    %13 = arith.maximumf %11, %12 : vector<256x4xf32>
    %14 = vector.extract_strided_slice %10 {offsets = [0, 4], sizes = [256, 4], strides = [1, 1]} : vector<256x24xf32> to vector<256x4xf32>
    %cst_13 = arith.constant 0.000000e+00 : f32
    %15 = vector.broadcast %cst_13 : f32 to vector<256x4xf32>
    %16 = arith.maximumf %14, %15 : vector<256x4xf32>
    %17 = vector.extract_strided_slice %10 {offsets = [0, 8], sizes = [256, 16], strides = [1, 1]} : vector<256x24xf32> to vector<256x16xf32>
    %c0_14 = arith.constant 0 : index
    %c0_15 = arith.constant 0 : index
    %c0_16 = arith.constant 0 : index
    %c0_17 = arith.constant 0 : index
    %18 = vector.load %arg1[%c0_14, %c0_15, %c0_16, %c0_17] : memref<1x18x18x4xf32, #tpu.memory_space<vmem>>, vector<1x16x16x4xf32>
    %19 = vector.shape_cast %18 : vector<1x16x16x4xf32> to vector<16x16x4xf32>
    %20 = vector.shape_cast %19 : vector<16x16x4xf32> to vector<256x4xf32>
    %c0_18 = arith.constant 0 : index
    %c0_19 = arith.constant 0 : index
    %c0_20 = arith.constant 0 : index
    %21 = vector.load %arg6[%c0_18, %c0_19, %c0_20] : memref<8x4x16xf32, #tpu.memory_space<vmem>>, vector<1x4x16xf32>
    %22 = vector.shape_cast %21 : vector<1x4x16xf32> to vector<4x16xf32>
    %cst_21 = arith.constant dense<0.000000e+00> : vector<256x16xf32>
    %23 = tpu.matmul %20, %22, %cst_21 {dimension_numbers = #tpu.dot_dimension_numbers<[1], [0], [0], [1], [0, 0, 1, 1], [], []>} : vector<256x4xf32>, vector<4x16xf32>, vector<256x16xf32> -> vector<256x16xf32>
    %24 = arith.addf %17, %23 : vector<256x16xf32>
    %c0_22 = arith.constant 0 : index
    %c0_23 = arith.constant 0 : index
    %c1_24 = arith.constant 1 : index
    %c0_25 = arith.constant 0 : index
    %25 = vector.load %arg1[%c0_22, %c0_23, %c1_24, %c0_25] : memref<1x18x18x4xf32, #tpu.memory_space<vmem>>, vector<1x16x16x4xf32>
    %26 = vector.shape_cast %25 : vector<1x16x16x4xf32> to vector<16x16x4xf32>
    %27 = vector.shape_cast %26 : vector<16x16x4xf32> to vector<256x4xf32>
    %c1_26 = arith.constant 1 : index
    %c0_27 = arith.constant 0 : index
    %c0_28 = arith.constant 0 : index
    %28 = vector.load %arg6[%c1_26, %c0_27, %c0_28] : memref<8x4x16xf32, #tpu.memory_space<vmem>>, vector<1x4x16xf32>
    %29 = vector.shape_cast %28 : vector<1x4x16xf32> to vector<4x16xf32>
    %cst_29 = arith.constant dense<0.000000e+00> : vector<256x16xf32>
    %30 = tpu.matmul %27, %29, %cst_29 {dimension_numbers = #tpu.dot_dimension_numbers<[1], [0], [0], [1], [0, 0, 1, 1], [], []>} : vector<256x4xf32>, vector<4x16xf32>, vector<256x16xf32> -> vector<256x16xf32>
    %31 = arith.addf %24, %30 : vector<256x16xf32>
    %c0_30 = arith.constant 0 : index
    %c0_31 = arith.constant 0 : index
    %c2 = arith.constant 2 : index
    %c0_32 = arith.constant 0 : index
    %32 = vector.load %arg1[%c0_30, %c0_31, %c2, %c0_32] : memref<1x18x18x4xf32, #tpu.memory_space<vmem>>, vector<1x16x16x4xf32>
    %33 = vector.shape_cast %32 : vector<1x16x16x4xf32> to vector<16x16x4xf32>
    %34 = vector.shape_cast %33 : vector<16x16x4xf32> to vector<256x4xf32>
    %c2_33 = arith.constant 2 : index
    %c0_34 = arith.constant 0 : index
    %c0_35 = arith.constant 0 : index
    %35 = vector.load %arg6[%c2_33, %c0_34, %c0_35] : memref<8x4x16xf32, #tpu.memory_space<vmem>>, vector<1x4x16xf32>
    %36 = vector.shape_cast %35 : vector<1x4x16xf32> to vector<4x16xf32>
    %cst_36 = arith.constant dense<0.000000e+00> : vector<256x16xf32>
    %37 = tpu.matmul %34, %36, %cst_36 {dimension_numbers = #tpu.dot_dimension_numbers<[1], [0], [0], [1], [0, 0, 1, 1], [], []>} : vector<256x4xf32>, vector<4x16xf32>, vector<256x16xf32> -> vector<256x16xf32>
    %38 = arith.addf %31, %37 : vector<256x16xf32>
    %c0_37 = arith.constant 0 : index
    %c1_38 = arith.constant 1 : index
    %c0_39 = arith.constant 0 : index
    %c0_40 = arith.constant 0 : index
    %39 = vector.load %arg1[%c0_37, %c1_38, %c0_39, %c0_40] : memref<1x18x18x4xf32, #tpu.memory_space<vmem>>, vector<1x16x16x4xf32>
    %40 = vector.shape_cast %39 : vector<1x16x16x4xf32> to vector<16x16x4xf32>
    %41 = vector.shape_cast %40 : vector<16x16x4xf32> to vector<256x4xf32>
    %c3 = arith.constant 3 : index
    %c0_41 = arith.constant 0 : index
    %c0_42 = arith.constant 0 : index
    %42 = vector.load %arg6[%c3, %c0_41, %c0_42] : memref<8x4x16xf32, #tpu.memory_space<vmem>>, vector<1x4x16xf32>
    %43 = vector.shape_cast %42 : vector<1x4x16xf32> to vector<4x16xf32>
    %cst_43 = arith.constant dense<0.000000e+00> : vector<256x16xf32>
    %44 = tpu.matmul %41, %43, %cst_43 {dimension_numbers = #tpu.dot_dimension_numbers<[1], [0], [0], [1], [0, 0, 1, 1], [], []>} : vector<256x4xf32>, vector<4x16xf32>, vector<256x16xf32> -> vector<256x16xf32>
    %45 = arith.addf %38, %44 : vector<256x16xf32>
    %c0_44 = arith.constant 0 : index
    %c1_45 = arith.constant 1 : index
    %c2_46 = arith.constant 2 : index
    %c0_47 = arith.constant 0 : index
    %46 = vector.load %arg1[%c0_44, %c1_45, %c2_46, %c0_47] : memref<1x18x18x4xf32, #tpu.memory_space<vmem>>, vector<1x16x16x4xf32>
    %47 = vector.shape_cast %46 : vector<1x16x16x4xf32> to vector<16x16x4xf32>
    %48 = vector.shape_cast %47 : vector<16x16x4xf32> to vector<256x4xf32>
    %c4 = arith.constant 4 : index
    %c0_48 = arith.constant 0 : index
    %c0_49 = arith.constant 0 : index
    %49 = vector.load %arg6[%c4, %c0_48, %c0_49] : memref<8x4x16xf32, #tpu.memory_space<vmem>>, vector<1x4x16xf32>
    %50 = vector.shape_cast %49 : vector<1x4x16xf32> to vector<4x16xf32>
    %cst_50 = arith.constant dense<0.000000e+00> : vector<256x16xf32>
    %51 = tpu.matmul %48, %50, %cst_50 {dimension_numbers = #tpu.dot_dimension_numbers<[1], [0], [0], [1], [0, 0, 1, 1], [], []>} : vector<256x4xf32>, vector<4x16xf32>, vector<256x16xf32> -> vector<256x16xf32>
    %52 = arith.addf %45, %51 : vector<256x16xf32>
    %c0_51 = arith.constant 0 : index
    %c2_52 = arith.constant 2 : index
    %c0_53 = arith.constant 0 : index
    %c0_54 = arith.constant 0 : index
    %53 = vector.load %arg1[%c0_51, %c2_52, %c0_53, %c0_54] : memref<1x18x18x4xf32, #tpu.memory_space<vmem>>, vector<1x16x16x4xf32>
    %54 = vector.shape_cast %53 : vector<1x16x16x4xf32> to vector<16x16x4xf32>
    %55 = vector.shape_cast %54 : vector<16x16x4xf32> to vector<256x4xf32>
    %c5 = arith.constant 5 : index
    %c0_55 = arith.constant 0 : index
    %c0_56 = arith.constant 0 : index
    %56 = vector.load %arg6[%c5, %c0_55, %c0_56] : memref<8x4x16xf32, #tpu.memory_space<vmem>>, vector<1x4x16xf32>
    %57 = vector.shape_cast %56 : vector<1x4x16xf32> to vector<4x16xf32>
    %cst_57 = arith.constant dense<0.000000e+00> : vector<256x16xf32>
    %58 = tpu.matmul %55, %57, %cst_57 {dimension_numbers = #tpu.dot_dimension_numbers<[1], [0], [0], [1], [0, 0, 1, 1], [], []>} : vector<256x4xf32>, vector<4x16xf32>, vector<256x16xf32> -> vector<256x16xf32>
    %59 = arith.addf %52, %58 : vector<256x16xf32>
    %c0_58 = arith.constant 0 : index
    %c2_59 = arith.constant 2 : index
    %c1_60 = arith.constant 1 : index
    %c0_61 = arith.constant 0 : index
    %60 = vector.load %arg1[%c0_58, %c2_59, %c1_60, %c0_61] : memref<1x18x18x4xf32, #tpu.memory_space<vmem>>, vector<1x16x16x4xf32>
    %61 = vector.shape_cast %60 : vector<1x16x16x4xf32> to vector<16x16x4xf32>
    %62 = vector.shape_cast %61 : vector<16x16x4xf32> to vector<256x4xf32>
    %c6 = arith.constant 6 : index
    %c0_62 = arith.constant 0 : index
    %c0_63 = arith.constant 0 : index
    %63 = vector.load %arg6[%c6, %c0_62, %c0_63] : memref<8x4x16xf32, #tpu.memory_space<vmem>>, vector<1x4x16xf32>
    %64 = vector.shape_cast %63 : vector<1x4x16xf32> to vector<4x16xf32>
    %cst_64 = arith.constant dense<0.000000e+00> : vector<256x16xf32>
    %65 = tpu.matmul %62, %64, %cst_64 {dimension_numbers = #tpu.dot_dimension_numbers<[1], [0], [0], [1], [0, 0, 1, 1], [], []>} : vector<256x4xf32>, vector<4x16xf32>, vector<256x16xf32> -> vector<256x16xf32>
    %66 = arith.addf %59, %65 : vector<256x16xf32>
    %c0_65 = arith.constant 0 : index
    %c2_66 = arith.constant 2 : index
    %c2_67 = arith.constant 2 : index
    %c0_68 = arith.constant 0 : index
    %67 = vector.load %arg1[%c0_65, %c2_66, %c2_67, %c0_68] : memref<1x18x18x4xf32, #tpu.memory_space<vmem>>, vector<1x16x16x4xf32>
    %68 = vector.shape_cast %67 : vector<1x16x16x4xf32> to vector<16x16x4xf32>
    %69 = vector.shape_cast %68 : vector<16x16x4xf32> to vector<256x4xf32>
    %c7 = arith.constant 7 : index
    %c0_69 = arith.constant 0 : index
    %c0_70 = arith.constant 0 : index
    %70 = vector.load %arg6[%c7, %c0_69, %c0_70] : memref<8x4x16xf32, #tpu.memory_space<vmem>>, vector<1x4x16xf32>
    %71 = vector.shape_cast %70 : vector<1x4x16xf32> to vector<4x16xf32>
    %cst_71 = arith.constant dense<0.000000e+00> : vector<256x16xf32>
    %72 = tpu.matmul %69, %71, %cst_71 {dimension_numbers = #tpu.dot_dimension_numbers<[1], [0], [0], [1], [0, 0, 1, 1], [], []>} : vector<256x4xf32>, vector<4x16xf32>, vector<256x16xf32> -> vector<256x16xf32>
    %73 = arith.addf %66, %72 : vector<256x16xf32>
    %74 = vector.broadcast %4 : vector<1x16xf32> to vector<256x16xf32>
    %75 = arith.addf %73, %74 : vector<256x16xf32>
    %cst_72 = arith.constant 0.000000e+00 : f32
    %76 = vector.broadcast %cst_72 : f32 to vector<256x16xf32>
    %77 = arith.maximumf %75, %76 : vector<256x16xf32>
    %78 = arith.mulf %13, %16 : vector<256x4xf32>
    %79 = vector.broadcast %2 : vector<1x4xf32> to vector<256x4xf32>
    %80 = arith.mulf %78, %79 : vector<256x4xf32>
    %cst_73 = arith.constant dense<0.000000e+00> : vector<256xf32>
    %81 = vector.multi_reduction <add>, %80, %cst_73 [1] : vector<256x4xf32> to vector<256xf32>
    %82 = vector.shape_cast %81 : vector<256xf32> to vector<256x1xf32>
    %83 = vector.broadcast %3 : f32 to vector<256x1xf32>
    %84 = arith.addf %82, %83 : vector<256x1xf32>
    %cst_74 = arith.constant 0.000000e+00 : f32
    %85 = vector.broadcast %cst_74 : f32 to vector<256x1xf32>
    %86 = arith.maximumf %84, %85 : vector<256x1xf32>
    %87 = arith.negf %86 : vector<256x1xf32>
    %88 = math.exp %87 : vector<256x1xf32>
    %cst_75 = arith.constant 1.000000e+00 : f32
    %89 = vector.broadcast %cst_75 : f32 to vector<256x1xf32>
    %90 = arith.addf %89, %88 : vector<256x1xf32>
    %91 = arith.divf %89, %90 : vector<256x1xf32>
    %92 = vector.broadcast %91 : vector<256x1xf32> to vector<256x16xf32>
    %93 = arith.mulf %92, %77 : vector<256x16xf32>
    %94 = tpu.transpose %93, [1, 0] : vector<256x16xf32> -> vector<16x256xf32>
    %c0_76 = arith.constant 0 : index
    %c0_77 = arith.constant 0 : index
    %c0_78 = arith.constant 0 : index
    %95 = vector.load %arg8[%c0_76, %c0_77, %c0_78] : memref<1x16x256xf32, #tpu.memory_space<vmem>>, vector<1x16x256xf32>
    %96 = vector.shape_cast %95 : vector<1x16x256xf32> to vector<16x256xf32>
    %97 = vector.shape_cast %94 : vector<16x256xf32> to vector<1x16x256xf32>
    tpu.vector_store %arg8[%c0_76, %c0_77, %c0_78], %97 {strides = array<i32>} : memref<1x16x256xf32, #tpu.memory_space<vmem>>, vector<1x16x256xf32>,
    return
  }
  func.func @transform_0(%arg0: i32) -> (i32, i32, i32, i32) {
    %c0_i32 = arith.constant 0 : i32
    %c0_i32_0 = arith.constant 0 : i32
    %c0_i32_1 = arith.constant 0 : i32
    %c0_i32_2 = arith.constant 0 : i32
    return %arg0, %c0_i32, %c0_i32_0, %c0_i32_1 : i32, i32, i32, i32
  }
  func.func @transform_1(%arg0: i32) -> (i32, i32) {
    %c0_i32 = arith.constant 0 : i32
    %c0_i32_0 = arith.constant 0 : i32
    %c0_i32_1 = arith.constant 0 : i32
    return %c0_i32, %c0_i32_0 : i32, i32
  }
  func.func @transform_2(%arg0: i32) -> (i32, i32) {
    %c0_i32 = arith.constant 0 : i32
    %c0_i32_0 = arith.constant 0 : i32
    %c0_i32_1 = arith.constant 0 : i32
    return %c0_i32, %c0_i32_0 : i32, i32
  }
  func.func @transform_3(%arg0: i32) -> (i32, i32) {
    %c0_i32 = arith.constant 0 : i32
    %c0_i32_0 = arith.constant 0 : i32
    %c0_i32_1 = arith.constant 0 : i32
    return %c0_i32, %c0_i32_0 : i32, i32
  }
  func.func @transform_4(%arg0: i32) -> (i32, i32) {
    %c0_i32 = arith.constant 0 : i32
    %c0_i32_0 = arith.constant 0 : i32
    %c0_i32_1 = arith.constant 0 : i32
    return %c0_i32, %c0_i32_0 : i32, i32
  }
  func.func @transform_5(%arg0: i32) -> (i32, i32, i32) {
    %c0_i32 = arith.constant 0 : i32
    %c0_i32_0 = arith.constant 0 : i32
    %c0_i32_1 = arith.constant 0 : i32
    %c0_i32_2 = arith.constant 0 : i32
    return %c0_i32, %c0_i32_0, %c0_i32_1 : i32, i32, i32
  }
  func.func @transform_6(%arg0: i32) -> (i32, i32) {
    %c0_i32 = arith.constant 0 : i32
    %c0_i32_0 = arith.constant 0 : i32
    %c0_i32_1 = arith.constant 0 : i32
    return %c0_i32, %c0_i32_0 : i32, i32
  }
  func.func @transform_7(%arg0: i32) -> (i32, i32, i32) {
    %c0_i32 = arith.constant 0 : i32
    %c0_i32_0 = arith.constant 0 : i32
    %c0_i32_1 = arith.constant 0 : i32
    return %arg0, %c0_i32, %c0_i32_0 : i32, i32, i32
  }
}

</mosaic_0001>

<bundles_post_ra>
// kernel: attention_forward.1
= control target key start
LH: loop header
LB: loop body
LE: loop exit
PB: predicated region body
PF: predicated region fallthrough
CT: control target
= control target key end

     0   :  { %s7217_s26 = smov 0   ;;  %s10064_s0 = inlined_call_operand.vmem [shape: f32[2,18,18,4], index: 0, kind: input, shape index: {}]   ;;  %s10065_s1 = inlined_call_operand.vmem [shape: f32[4,24], index: 1, kind: input, shape index: {}]   ;;  %s10066_s2 = inlined_call_operand.vmem [shape: f32[1,24], index: 2, kind: input, shape index: {}]   ;;  %s10067_s3 = inlined_call_operand.vmem [shape: f32[1,4], index: 3, kind: input, shape index: {}]   ;;  %s10068_s4 = inlined_call_operand.<no memory space> [shape: f32[1,1], index: 4, kind: input, shape index: {}]   ;;  %s10069_s5 = inlined_call_operand.vmem [shape: f32[8,4,16], index: 5, kind: input, shape index: {}]   ;;  %s10070_s6 = inlined_call_operand.vmem [shape: f32[1,16], index: 6, kind: input, shape index: {}]   ;;  %s10071_s7 = inlined_call_operand.vmem [shape: f32[2,16,256], index: 7, kind: output, shape index: {}]  }
   0x1   :  { %12 = sst [smem:[#allocation2]] %s10068_s4 }
   0x2 LB: > { %s5732_s27 = sadd.s32 4294967295, %s7169_s26   ;;  %p5736_p0 = scmp.ge.s32.totalorder %s7169_s26, 1  ;;  %s7169_s26 = sphi %s7217_s26, %s18_s26  }
   0x3   : > { %p238_p1 = scmp.lt.s32.totalorder %s7169_s26, 3 }
   0x5   : > { %p239_p2 = pnand %p5736_p0, %p238_p1 }
   0x7   : > { %242 = sbr.rel (%p239_p2) target bundleno = 1347 (0x543), region = 48 }
   0xc   : > { %v280_v0 = vld [vmem:[%s10065_s1] sm:$0xf]  ;;  %vm421_vm0 = vcmask 1043456   ;;  %p270_p3 = scmp.lt.s32.totalorder %s5732_s27, 1  ;;  %v5839_v2 = vld [vmem:[%s10069_s5 + $0x4] sm:$0xf] }
   0xd   : > { %7021 = vmatprep.subr.msk.mxu1 %vm421_vm0, %v280_v0  ;;  %6571 = vmatprep.subr.msk.mxu0 %vm421_vm0, %v280_v0  ;;  %v714_v1 = vld [vmem:[%s10069_s5] sm:$0xf]  ;;  %vm324_vm1 = vcmask 31744   ;;  %v7277_v9 = vld [vmem:[%s10069_s5 + $0x8] sm:$0xf]  ;;  %s7171_s24 = smov 8  }
   0xe   : > { %7022 = vmatpush3.msk.msra.mxu1 %vm421_vm0, %v280_v0  ;;  %6572 = vmatpush3.msk.msra.mxu0 %vm421_vm0, %v280_v0  ;;  %s10634_s27 = smov (!%p270_p3, %s5732_s27), 1  ;;  %v7282_v10 = vld [vmem:[%s10069_s5 + $0xc] sm:$0xf]  ;;  %s7172_s30 = smov 124  }
   0xf   : > { %6621 = vmatprep.subr.msk.mxu1 %vm421_vm0, %v714_v1  ;;  %6671 = vmatprep.subr.msk.mxu0 %vm421_vm0, %v5839_v2  ;;  %s7023_s10 = smul.u32 432, %s10634_s27  ;;  %s9471_s12 = sld [smem:[#allocation2]] }
  0x10   : > { %s6273_s14 = sshll.u32 %s10634_s27, 5 }
  0x11   : > { %s7246_s13 = scalar_lea.vmem %s10064_s0, %s7023_s10  ;;  %s279_s17 = scalar_lea.vmem %s10071_s7, %s6273_s14 }
  0x12   : > { %v7249_v3 = vld [vmem:[%s7246_s13 + $0x19] sm:$0xff]  ;;  %v7255_v5 = vld [vmem:[%s7246_s13 + $0x21] sm:$0xff]  ;;  %v7265_v7 = vld [vmem:[%s7246_s13 + $0x31] sm:$0xff] }
  0x13   : > { %v7252_v4 = vld [vmem:[%s7246_s13 + $0xd9] sm:$0xff]  ;;  %6573 = vmatprep.mubr.msk.f32.mxu0 %vm324_vm1, %v7249_v3  ;;  %v7262_v6 = vld [vmem:[%s7246_s13 + $0xe1] sm:$0xff]  ;;  %v7268_v8 = vld [vmem:[%s7246_s13 + $0xf1] sm:$0xff] }
  0x14   : > { %6597 = vmatprep.mubr.msk.f32.mxu1 %vm324_vm1, %v7252_v4  ;;  %6574 = vmatmul.mubr.msk.f32.vlgmr.msra.gmra.mxu0 %vm324_vm1, %v7255_v5  ;;  %v7288_v11 = vld [vmem:[%s7246_s13 + $0x39] sm:$0xff]  ;;  %v7297_v13 = vld [vmem:[%s7246_s13 + $0x49] sm:$0xff]  ;;  %v7315_v15 = vld [vmem:[%s7246_s13 + $0x51] sm:$0xff] }
  0x15   : > { %6598 = vmatmul.mubr.msk.f32.vlgmr.msra.gmra.mxu1 %vm324_vm1, %v7262_v6  ;;  %6576 = vmatprep.mubr.msk.f32.mxu0 %vm324_vm1, %v7265_v7  ;;  %v7291_v12 = vld [vmem:[%s7246_s13 + $0xf9] sm:$0xff]  ;;  %v7300_v14 = vld [vmem:[%s7246_s13 + $0x109] sm:$0xff]  ;;  %v7318_v16 = vld [vmem:[%s7246_s13 + $0x111] sm:$0xff] }
  0x16   : > { %6622 = vmatpush3.msk.msra.mxu1 %vm421_vm0, %v714_v1  ;;  %6600 = vmatprep.mubr.msk.f32.mxu1 %vm324_vm1, %v7268_v8  ;;  %v7321_v17 = vld [vmem:[%s7246_s13 + $0x61] sm:$0xff]  ;;  %v7335_v19 = vld [vmem:[%s7246_s13 + $0x69] sm:$0xff]  ;;  %v7341_v21 = vld [vmem:[%s7246_s13 + $0x79] sm:$0xff] }
  0x17   : > { %6672 = vmatpush3.msk.msra.mxu0 %vm421_vm0, %v5839_v2  ;;  %6721 = vmatprep.subr.msk.mxu1 %vm421_vm0, %v7277_v9  ;;  %v7324_v18 = vld [vmem:[%s7246_s13 + $0x121] sm:$0xff]  ;;  %v7338_v20 = vld [vmem:[%s7246_s13 + $0x129] sm:$0xff]  ;;  %v7344_v22 = vld [vmem:[%s7246_s13 + $0x139] sm:$0xff] }
  0x18   : > { %6771 = vmatprep.subr.msk.mxu0 %vm421_vm0, %v7282_v10  ;;  %6577 = vmatmul.mubr.msk.f32.gmra.mxu0 %vm324_vm1, %v7288_v11  ;;  %v7355_v23 = vld [vmem:[%s7246_s13 + $0x81] sm:$0xff]  ;;  %v7361_v25 = vld [vmem:[%s7246_s13 + $0x91] sm:$0xff]  ;;  %v7375_v27 = vld [vmem:[%s7246_s13 + $0x99] sm:$0xff] }
  0x19   : > { %6601 = vmatmul.mubr.msk.f32.gmra.mxu1 %vm324_vm1, %v7291_v12  ;;  %6579 = vmatprep.mubr.msk.f32.mxu0 %vm324_vm1, %v7297_v13  ;;  %v7358_v24 = vld [vmem:[%s7246_s13 + $0x141] sm:$0xff]  ;;  %v7364_v26 = vld [vmem:[%s7246_s13 + $0x151] sm:$0xff]  ;;  %v7378_v28 = vld [vmem:[%s7246_s13 + $0x159] sm:$0xff] }
  0x1a   : > { %6603 = vmatprep.mubr.msk.f32.mxu1 %vm324_vm1, %v7300_v14  ;;  %v7381_v29 = vld [vmem:[%s7246_s13 + $0xa9] sm:$0xff]  ;;  %v7395_v31 = vld [vmem:[%s7246_s13 + $0xb1] sm:$0xff]  ;;  %v7401_v33 = vld [vmem:[%s7246_s13 + $0xc1] sm:$0xff] }
  0x1b   : > { %v7384_v30 = vld [vmem:[%s7246_s13 + $0x169] sm:$0xff]  ;;  %v7398_v32 = vld [vmem:[%s7246_s13 + $0x171] sm:$0xff]  ;;  %v5770_v34 = vld [vmem:[%s7246_s13 + $0x181] sm:$0xff] }
  0x1c   : > { %6580 = vmatmul.mubr.msk.f32.gmra.mxu0 %vm324_vm1, %v7315_v15  ;;  %v5755_v35 = vld [vmem:[%s7246_s13 + $0xc9] sm:$0xff]  ;;  %v682_v37 = vld [vmem:[%s7246_s13] sm:$0xff]  ;;  %v7422_v41 = vld [vmem:[%s7246_s13 + $0x18] sm:$0xff] }
  0x1d   : > { %6604 = vmatmul.mubr.msk.f32.gmra.mxu1 %vm324_vm1, %v7318_v16  ;;  %6582 = vmatprep.mubr.msk.f32.mxu0 %vm324_vm1, %v7321_v17  ;;  %v5771_v36 = vld [vmem:[%s7246_s13 + $0x189] sm:$0xff]  ;;  %v1199_v38 = vld [vmem:[%s7246_s13 + $0x1] sm:$0xff]  ;;  %v7447_v44 = vld [vmem:[%s7246_s13 + $0x38] sm:$0xff] }
  0x1e   : > { %6606 = vmatprep.mubr.msk.f32.mxu1 %vm324_vm1, %v7324_v18  ;;  %v683_v39 = vld [vmem:[%s7246_s13 + $0x8] sm:$0xff]  ;;  %v7429_v42 = vld [vmem:[%s7246_s13 + $0x20] sm:$0xff]  ;;  %v7434_v43 = vld [vmem:[%s7246_s13 + $0x30] sm:$0xff] }
  0x1f   : > { %v1200_v40 = vld [vmem:[%s7246_s13 + $0x9] sm:$0xff]  ;;  %v7466_v47 = vld [vmem:[%s7246_s13 + $0x60] sm:$0xff]  ;;  %v7480_v49 = vld [vmem:[%s7246_s13 + $0x78] sm:$0xff] }
  0x20   : > { %6583 = vmatmul.mubr.msk.f32.gmra.mxu0 %vm324_vm1, %v7335_v19  ;;  %v7452_v45 = vld [vmem:[%s7246_s13 + $0x48] sm:$0xff]  ;;  %v7461_v46 = vld [vmem:[%s7246_s13 + $0x50] sm:$0xff]  ;;  %v7489_v50 = vld [vmem:[%s7246_s13 + $0x80] sm:$0xff] }
  0x21   : > { %6607 = vmatmul.mubr.msk.f32.gmra.mxu1 %vm324_vm1, %v7338_v20  ;;  %6585 = vmatprep.mubr.msk.f32.mxu0 %vm324_vm1, %v7341_v21  ;;  %v7475_v48 = vld [vmem:[%s7246_s13 + $0x68] sm:$0xff]  ;;  %v7494_v51 = vld [vmem:[%s7246_s13 + $0x90] sm:$0xff]  ;;  %v7503_v52 = vld [vmem:[%s7246_s13 + $0x98] sm:$0xff] }
  0x22   : > { %6609 = vmatprep.mubr.msk.f32.mxu1 %vm324_vm1, %v7344_v22  ;;  %v7508_v53 = vld [vmem:[%s7246_s13 + $0xa8] sm:$0xff]  ;;  %v7517_v54 = vld [vmem:[%s7246_s13 + $0xb0] sm:$0xff]  ;;  %v7522_v55 = vld [vmem:[%s7246_s13 + $0xc0] sm:$0xff] }
  0x23   : > { %v7531_v56 = vld [vmem:[%s7246_s13 + $0xc8] sm:$0xff]  ;;  %v7536_v57 = vld [vmem:[%s7246_s13 + $0xd8] sm:$0xff]  ;;  %v7544_v58 = vld [vmem:[%s7246_s13 + $0xe0] sm:$0xff] }
  0x24   : > { %6586 = vmatmul.mubr.msk.f32.gmra.mxu0 %vm324_vm1, %v7355_v23  ;;  %v7549_v59 = vld [vmem:[%s7246_s13 + $0xf0] sm:$0xff]  ;;  %v7558_v60 = vld [vmem:[%s7246_s13 + $0xf8] sm:$0xff]  ;;  %v7563_v61 = vld [vmem:[%s7246_s13 + $0x108] sm:$0xff] }
  0x25   : > { %6610 = vmatmul.mubr.msk.f32.gmra.mxu1 %vm324_vm1, %v7358_v24  ;;  %6588 = vmatprep.mubr.msk.f32.mxu0 %vm324_vm1, %v7361_v25  ;;  %v7572_v62 = vld [vmem:[%s7246_s13 + $0x110] sm:$0xff]  ;;  %v7577_v63 = vld [vmem:[%s7246_s13 + $0x120] sm:$0xff]  ;;  %v7586_v0 = vld [vmem:[%s7246_s13 + $0x128] sm:$0xff] }
  0x26   : > { %6612 = vmatprep.mubr.msk.f32.mxu1 %vm324_vm1, %v7364_v26  ;;  %v7591_v1 = vld [vmem:[%s7246_s13 + $0x138] sm:$0xff]  ;;  %v7600_v2 = vld [vmem:[%s7246_s13 + $0x140] sm:$0xff] }
  0x28   : > { %6589 = vmatmul.mubr.msk.f32.gmra.mxu0 %vm324_vm1, %v7375_v27 }
  0x29   : > { %6613 = vmatmul.mubr.msk.f32.gmra.mxu1 %vm324_vm1, %v7378_v28  ;;  %6591 = vmatprep.mubr.msk.f32.mxu0 %vm324_vm1, %v7381_v29 }
  0x2a   : > { %6615 = vmatprep.mubr.msk.f32.mxu1 %vm324_vm1, %v7384_v30 }
  0x2c   : > { %6592 = vmatmul.mubr.msk.f32.gmra.mxu0 %vm324_vm1, %v7395_v31 }
  0x2d   : > { %6616 = vmatmul.mubr.msk.f32.gmra.mxu1 %vm324_vm1, %v7398_v32  ;;  %6594 = vmatprep.mubr.msk.f32.mxu0 %vm324_vm1, %v7401_v33 }
  0x2e   : > { %6618 = vmatprep.mubr.msk.f32.mxu1 %vm324_vm1, %v5770_v34  ;;  %v7814_v34 = vld [vmem:[%s7246_s13 + $0x12a] sm:$0xff] }
  0x30   : > { %6595 = vmatmul.mubr.msk.f32.gmra.mxu0 %vm324_vm1, %v5755_v35 }
  0x31   : > { %6619 = vmatmul.mubr.msk.f32.gmra.mxu1 %vm324_vm1, %v5771_v36  ;;  %6673 = vmatprep.mubr.msk.f32.mxu0 %vm324_vm1, %v1199_v38  ;;  %v7828_v36 = vld [vmem:[%s7246_s13 + $0x142] sm:$0xff]  ;;  %v7842_v38 = vld [vmem:[%s7246_s13 + $0x15a] sm:$0xff] }
  0x32   : > { %6623 = vmatprep.mubr.msk.f32.mxu1 %vm324_vm1, %v682_v37  ;;  %v7833_v37 = vld [vmem:[%s7246_s13 + $0x152] sm:$0xff] }
  0x34   : > { %6674 = vmatmul.mubr.msk.f32.vlgmr.msra.gmra.mxu0 %vm324_vm1, %v1200_v40  ;;  %v7850_v40 = vld [vmem:[%s7246_s13 + $0x180] sm:$0xff] }
  0x35   : > { %6624 = vmatmul.mubr.msk.f32.vlgmr.msra.gmra.mxu1 %vm324_vm1, %v683_v39  ;;  %6676 = vmatprep.mubr.msk.f32.mxu0 %vm324_vm1, %v7249_v3  ;;  %v7605_v3 = vld [vmem:[%s7246_s13 + $0x150] sm:$0xff] }
  0x36   : > { %6626 = vmatprep.mubr.msk.f32.mxu1 %vm324_vm1, %v7422_v41  ;;  %6722 = vmatpush3.msk.msra.mxu1 %vm421_vm0, %v7277_v9  ;;  %v7642_v9 = vld [vmem:[%s7246_s13 + $0x1a] sm:$0xff]  ;;  %v7847_v39 = vld [vmem:[%s7246_s13 + $0x16a] sm:$0xff] }
  0x37   : > { %6772 = vmatpush3.msk.msra.mxu0 %vm421_vm0, %v7282_v10  ;;  %v6005_v10 = vld [vmem:[%s10069_s5 + $0x10] sm:$0xf] }
  0x38   : > { %6677 = vmatmul.mubr.msk.f32.gmra.mxu0 %vm324_vm1, %v7255_v5  ;;  %v7619_v5 = vld [vmem:[%s7246_s13 + $0x168] sm:$0xff]  ;;  %6821 = vmatprep.subr.msk.mxu1 %vm421_vm0, %v6005_v10 }
  0x39   : > { %6627 = vmatmul.mubr.msk.f32.gmra.mxu1 %vm324_vm1, %v7429_v42  ;;  %6679 = vmatprep.mubr.msk.f32.mxu0 %vm324_vm1, %v7265_v7  ;;  %v1717_v7 = vld [vmem:[%s7246_s13 + $0x2] sm:$0xff] }
  0x3a   : > { %6629 = vmatprep.mubr.msk.f32.mxu1 %vm324_vm1, %v7434_v43 }
  0x3c   : > { %6680 = vmatmul.mubr.msk.f32.gmra.mxu0 %vm324_vm1, %v7288_v11  ;;  %v7653_v11 = vld [vmem:[%s7246_s13 + $0x22] sm:$0xff] }
  0x3d   : > { %6630 = vmatmul.mubr.msk.f32.gmra.mxu1 %vm324_vm1, %v7447_v44  ;;  %6682 = vmatprep.mubr.msk.f32.mxu0 %vm324_vm1, %v7297_v13  ;;  %v7661_v13 = vld [vmem:[%s7246_s13 + $0x32] sm:$0xff] }
  0x3e   : > { %6632 = vmatprep.mubr.msk.f32.mxu1 %vm324_vm1, %v7452_v45 }
  0x40   : > { %6683 = vmatmul.mubr.msk.f32.gmra.mxu0 %vm324_vm1, %v7315_v15  ;;  %v7679_v15 = vld [vmem:[%s7246_s13 + $0x4a] sm:$0xff] }
  0x41   : > { %6633 = vmatmul.mubr.msk.f32.gmra.mxu1 %vm324_vm1, %v7461_v46  ;;  %6685 = vmatprep.mubr.msk.f32.mxu0 %vm324_vm1, %v7321_v17  ;;  %v7693_v17 = vld [vmem:[%s7246_s13 + $0x62] sm:$0xff] }
  0x42   : > { %6635 = vmatprep.mubr.msk.f32.mxu1 %vm324_vm1, %v7466_v47 }
  0x44   : > { %6686 = vmatmul.mubr.msk.f32.gmra.mxu0 %vm324_vm1, %v7335_v19  ;;  %v7707_v19 = vld [vmem:[%s7246_s13 + $0x7a] sm:$0xff] }
  0x45   : > { %6636 = vmatmul.mubr.msk.f32.gmra.mxu1 %vm324_vm1, %v7475_v48  ;;  %6688 = vmatprep.mubr.msk.f32.mxu0 %vm324_vm1, %v7341_v21  ;;  %v7721_v21 = vld [vmem:[%s7246_s13 + $0x92] sm:$0xff] }
  0x46   : > { %6638 = vmatprep.mubr.msk.f32.mxu1 %vm324_vm1, %v7480_v49 }
  0x48   : > { %6689 = vmatmul.mubr.msk.f32.gmra.mxu0 %vm324_vm1, %v7355_v23  ;;  %v7735_v23 = vld [vmem:[%s7246_s13 + $0xaa] sm:$0xff] }
  0x49   : > { %6639 = vmatmul.mubr.msk.f32.gmra.mxu1 %vm324_vm1, %v7489_v50  ;;  %6691 = vmatprep.mubr.msk.f32.mxu0 %vm324_vm1, %v7361_v25  ;;  %v7749_v25 = vld [vmem:[%s7246_s13 + $0xc2] sm:$0xff] }
  0x4a   : > { %6641 = vmatprep.mubr.msk.f32.mxu1 %vm324_vm1, %v7494_v51 }
  0x4c   : > { %6692 = vmatmul.mubr.msk.f32.gmra.mxu0 %vm324_vm1, %v7375_v27  ;;  %v7763_v27 = vld [vmem:[%s7246_s13 + $0xda] sm:$0xff] }
  0x4d   : > { %6642 = vmatmul.mubr.msk.f32.gmra.mxu1 %vm324_vm1, %v7503_v52  ;;  %6694 = vmatprep.mubr.msk.f32.mxu0 %vm324_vm1, %v7381_v29  ;;  %v7777_v29 = vld [vmem:[%s7246_s13 + $0xf2] sm:$0xff] }
  0x4e   : > { %6644 = vmatprep.mubr.msk.f32.mxu1 %vm324_vm1, %v7508_v53 }
  0x50   : > { %6695 = vmatmul.mubr.msk.f32.gmra.mxu0 %vm324_vm1, %v7395_v31  ;;  %v7791_v31 = vld [vmem:[%s7246_s13 + $0x10a] sm:$0xff] }
  0x51   : > { %6645 = vmatmul.mubr.msk.f32.gmra.mxu1 %vm324_vm1, %v7517_v54  ;;  %6697 = vmatprep.mubr.msk.f32.mxu0 %vm324_vm1, %v7401_v33  ;;  %v7805_v33 = vld [vmem:[%s7246_s13 + $0x122] sm:$0xff] }
  0x52   : > { %6647 = vmatprep.mubr.msk.f32.mxu1 %vm324_vm1, %v7522_v55 }
  0x54   : > { %6698 = vmatmul.mubr.msk.f32.gmra.mxu0 %vm324_vm1, %v5755_v35  ;;  %v7819_v35 = vld [vmem:[%s7246_s13 + $0x13a] sm:$0xff] }
  0x55   : > { %6648 = vmatmul.mubr.msk.f32.gmra.mxu1 %vm324_vm1, %v7531_v56  ;;  %6700 = vmatprep.mubr.msk.f32.mxu0 %vm324_vm1, %v7252_v4  ;;  %v7614_v4 = vld [vmem:[%s7246_s13 + $0x158] sm:$0xff] }
  0x56   : > { %6650 = vmatprep.mubr.msk.f32.mxu1 %vm324_vm1, %v7536_v57 }
  0x58   : > { %6701 = vmatmul.mubr.msk.f32.gmra.mxu0 %vm324_vm1, %v7262_v6  ;;  %v7628_v6 = vld [vmem:[%s7246_s13 + $0x170] sm:$0xff] }
  0x59   : > { %6651 = vmatmul.mubr.msk.f32.gmra.mxu1 %vm324_vm1, %v7544_v58  ;;  %6703 = vmatprep.mubr.msk.f32.mxu0 %vm324_vm1, %v7268_v8  ;;  %v1718_v8 = vld [vmem:[%s7246_s13 + $0xa] sm:$0xff] }
  0x5a   : > { %6653 = vmatprep.mubr.msk.f32.mxu1 %vm324_vm1, %v7549_v59 }
  0x5c   : > { %6704 = vmatmul.mubr.msk.f32.gmra.mxu0 %vm324_vm1, %v7291_v12  ;;  %v6071_v12 = vld [vmem:[%s10069_s5 + $0x14] sm:$0xf] }
  0x5d   : > { %6654 = vmatmul.mubr.msk.f32.gmra.mxu1 %vm324_vm1, %v7558_v60  ;;  %6706 = vmatprep.mubr.msk.f32.mxu0 %vm324_vm1, %v7300_v14  ;;  %v7674_v14 = vld [vmem:[%s7246_s13 + $0x3a] sm:$0xff] }
  0x5e   : > { %6656 = vmatprep.mubr.msk.f32.mxu1 %vm324_vm1, %v7563_v61  ;;  %6871 = vmatprep.subr.msk.mxu0 %vm421_vm0, %v6071_v12 }
  0x60   : > { %6707 = vmatmul.mubr.msk.f32.gmra.mxu0 %vm324_vm1, %v7318_v16  ;;  %v7688_v16 = vld [vmem:[%s7246_s13 + $0x52] sm:$0xff] }
  0x61   : > { %6657 = vmatmul.mubr.msk.f32.gmra.mxu1 %vm324_vm1, %v7572_v62  ;;  %6709 = vmatprep.mubr.msk.f32.mxu0 %vm324_vm1, %v7324_v18  ;;  %v7702_v18 = vld [vmem:[%s7246_s13 + $0x6a] sm:$0xff] }
  0x62   : > { %6659 = vmatprep.mubr.msk.f32.mxu1 %vm324_vm1, %v7577_v63 }
  0x64   : > { %6710 = vmatmul.mubr.msk.f32.gmra.mxu0 %vm324_vm1, %v7338_v20  ;;  %v7716_v20 = vld [vmem:[%s7246_s13 + $0x82] sm:$0xff] }
  0x65   : > { %6660 = vmatmul.mubr.msk.f32.gmra.mxu1 %vm324_vm1, %v7586_v0  ;;  %6712 = vmatprep.mubr.msk.f32.mxu0 %vm324_vm1, %v7344_v22  ;;  %v7730_v22 = vld [vmem:[%s7246_s13 + $0x9a] sm:$0xff] }
  0x66   : > { %6662 = vmatprep.mubr.msk.f32.mxu1 %vm324_vm1, %v7591_v1 }
  0x68   : > { %6713 = vmatmul.mubr.msk.f32.gmra.mxu0 %vm324_vm1, %v7358_v24  ;;  %v7744_v24 = vld [vmem:[%s7246_s13 + $0xb2] sm:$0xff] }
  0x69   : > { %6663 = vmatmul.mubr.msk.f32.gmra.mxu1 %vm324_vm1, %v7600_v2  ;;  %6715 = vmatprep.mubr.msk.f32.mxu0 %vm324_vm1, %v7364_v26  ;;  %v7758_v26 = vld [vmem:[%s7246_s13 + $0xca] sm:$0xff] }
  0x6a   : > { %6665 = vmatprep.mubr.msk.f32.mxu1 %vm324_vm1, %v7605_v3 }
  0x6c   : > { %6716 = vmatmul.mubr.msk.f32.gmra.mxu0 %vm324_vm1, %v7378_v28  ;;  %v7772_v28 = vld [vmem:[%s7246_s13 + $0xe2] sm:$0xff] }
  0x6d   : > { %6666 = vmatmul.mubr.msk.f32.gmra.mxu1 %vm324_vm1, %v7614_v4  ;;  %6718 = vmatprep.mubr.msk.f32.mxu0 %vm324_vm1, %v7384_v30  ;;  %v7786_v30 = vld [vmem:[%s7246_s13 + $0xfa] sm:$0xff] }
  0x6e   : > { %6668 = vmatprep.mubr.msk.f32.mxu1 %vm324_vm1, %v7619_v5 }
  0x70   : > { %6719 = vmatmul.mubr.msk.f32.gmra.mxu0 %vm324_vm1, %v7398_v32  ;;  %v7800_v32 = vld [vmem:[%s7246_s13 + $0x112] sm:$0xff] }
  0x71   : > { %6669 = vmatmul.mubr.msk.f32.gmra.mxu1 %vm324_vm1, %v7628_v6  ;;  %6773 = vmatprep.mubr.msk.f32.mxu0 %vm324_vm1, %v7422_v41  ;;  %v7859_v41 = vld [vmem:[%s7246_s13 + $0x172] sm:$0xff] }
  0x72   : > { %6723 = vmatprep.mubr.msk.f32.mxu1 %vm324_vm1, %v1717_v7 }
  0x74   : > { %6774 = vmatmul.mubr.msk.f32.vlgmr.msra.gmra.mxu0 %vm324_vm1, %v7429_v42  ;;  %v7864_v42 = vld [vmem:[%s7246_s13 + $0x188] sm:$0xff] }
  0x75   : > { %6724 = vmatmul.mubr.msk.f32.vlgmr.msra.gmra.mxu1 %vm324_vm1, %v1718_v8  ;;  %6776 = vmatprep.mubr.msk.f32.mxu0 %vm324_vm1, %v7434_v43 }
  0x76   : > { %6726 = vmatprep.mubr.msk.f32.mxu1 %vm324_vm1, %v7642_v9  ;;  %6822 = vmatpush3.msk.msra.mxu1 %vm421_vm0, %v6005_v10 }
  0x77   : > { %6872 = vmatpush3.msk.msra.mxu0 %vm421_vm0, %v6071_v12 }
  0x78   : > { %6777 = vmatmul.mubr.msk.f32.gmra.mxu0 %vm324_vm1, %v7447_v44 }
  0x79   : > { %6727 = vmatmul.mubr.msk.f32.gmra.mxu1 %vm324_vm1, %v7653_v11  ;;  %6779 = vmatprep.mubr.msk.f32.mxu0 %vm324_vm1, %v7452_v45 }
  0x7a   : > { %6729 = vmatprep.mubr.msk.f32.mxu1 %vm324_vm1, %v7661_v13 }
  0x7c   : > { %6780 = vmatmul.mubr.msk.f32.gmra.mxu0 %vm324_vm1, %v7461_v46 }
  0x7d   : > { %6730 = vmatmul.mubr.msk.f32.gmra.mxu1 %vm324_vm1, %v7674_v14  ;;  %6782 = vmatprep.mubr.msk.f32.mxu0 %vm324_vm1, %v7466_v47 }
  0x7e   : > { %6732 = vmatprep.mubr.msk.f32.mxu1 %vm324_vm1, %v7679_v15 }
  0x80   : > { %6783 = vmatmul.mubr.msk.f32.gmra.mxu0 %vm324_vm1, %v7475_v48 }
  0x81   : > { %6733 = vmatmul.mubr.msk.f32.gmra.mxu1 %vm324_vm1, %v7688_v16  ;;  %6785 = vmatprep.mubr.msk.f32.mxu0 %vm324_vm1, %v7480_v49 }
  0x82   : > { %6735 = vmatprep.mubr.msk.f32.mxu1 %vm324_vm1, %v7693_v17 }
  0x84   : > { %6786 = vmatmul.mubr.msk.f32.gmra.mxu0 %vm324_vm1, %v7489_v50 }
  0x85   : > { %6736 = vmatmul.mubr.msk.f32.gmra.mxu1 %vm324_vm1, %v7702_v18  ;;  %6788 = vmatprep.mubr.msk.f32.mxu0 %vm324_vm1, %v7494_v51 }
  0x86   : > { %6738 = vmatprep.mubr.msk.f32.mxu1 %vm324_vm1, %v7707_v19 }
  0x88   : > { %6789 = vmatmul.mubr.msk.f32.gmra.mxu0 %vm324_vm1, %v7503_v52 }
  0x89   : > { %6739 = vmatmul.mubr.msk.f32.gmra.mxu1 %vm324_vm1, %v7716_v20  ;;  %6791 = vmatprep.mubr.msk.f32.mxu0 %vm324_vm1, %v7508_v53 }
  0x8a   : > { %6741 = vmatprep.mubr.msk.f32.mxu1 %vm324_vm1, %v7721_v21 }
  0x8c   : > { %6792 = vmatmul.mubr.msk.f32.gmra.mxu0 %vm324_vm1, %v7517_v54 }
  0x8d   : > { %6742 = vmatmul.mubr.msk.f32.gmra.mxu1 %vm324_vm1, %v7730_v22  ;;  %6794 = vmatprep.mubr.msk.f32.mxu0 %vm324_vm1, %v7522_v55 }
  0x8e   : > { %6744 = vmatprep.mubr.msk.f32.mxu1 %vm324_vm1, %v7735_v23 }
  0x90   : > { %6795 = vmatmul.mubr.msk.f32.gmra.mxu0 %vm324_vm1, %v7531_v56 }
  0x91   : > { %6745 = vmatmul.mubr.msk.f32.gmra.mxu1 %vm324_vm1, %v7744_v24  ;;  %6797 = vmatprep.mubr.msk.f32.mxu0 %vm324_vm1, %v7536_v57 }
  0x92   : > { %6747 = vmatprep.mubr.msk.f32.mxu1 %vm324_vm1, %v7749_v25 }
  0x94   : > { %6798 = vmatmul.mubr.msk.f32.gmra.mxu0 %vm324_vm1, %v7544_v58 }
  0x95   : > { %6748 = vmatmul.mubr.msk.f32.gmra.mxu1 %vm324_vm1, %v7758_v26  ;;  %6800 = vmatprep.mubr.msk.f32.mxu0 %vm324_vm1, %v7549_v59 }
  0x96   : > { %6750 = vmatprep.mubr.msk.f32.mxu1 %vm324_vm1, %v7763_v27 }
  0x98   : > { %6801 = vmatmul.mubr.msk.f32.gmra.mxu0 %vm324_vm1, %v7558_v60 }
  0x99   : > { %6751 = vmatmul.mubr.msk.f32.gmra.mxu1 %vm324_vm1, %v7772_v28  ;;  %6803 = vmatprep.mubr.msk.f32.mxu0 %vm324_vm1, %v7563_v61 }
  0x9a   : > { %6753 = vmatprep.mubr.msk.f32.mxu1 %vm324_vm1, %v7777_v29 }
  0x9c   : > { %6804 = vmatmul.mubr.msk.f32.gmra.mxu0 %vm324_vm1, %v7572_v62 }
  0x9d   : > { %6754 = vmatmul.mubr.msk.f32.gmra.mxu1 %vm324_vm1, %v7786_v30  ;;  %6806 = vmatprep.mubr.msk.f32.mxu0 %vm324_vm1, %v7577_v63 }
  0x9e   : > { %6756 = vmatprep.mubr.msk.f32.mxu1 %vm324_vm1, %v7791_v31 }
  0xa0   : > { %6807 = vmatmul.mubr.msk.f32.gmra.mxu0 %vm324_vm1, %v7586_v0 }
  0xa1   : > { %6757 = vmatmul.mubr.msk.f32.gmra.mxu1 %vm324_vm1, %v7800_v32  ;;  %6809 = vmatprep.mubr.msk.f32.mxu0 %vm324_vm1, %v7591_v1 }
  0xa2   : > { %6759 = vmatprep.mubr.msk.f32.mxu1 %vm324_vm1, %v7805_v33 }
  0xa4   : > { %6810 = vmatmul.mubr.msk.f32.gmra.mxu0 %vm324_vm1, %v7600_v2 }
  0xa5   : > { %6760 = vmatmul.mubr.msk.f32.gmra.mxu1 %vm324_vm1, %v7814_v34  ;;  %6812 = vmatprep.mubr.msk.f32.mxu0 %vm324_vm1, %v7605_v3 }
  0xa6   : > { %6762 = vmatprep.mubr.msk.f32.mxu1 %vm324_vm1, %v7819_v35 }
  0xa8   : > { %6813 = vmatmul.mubr.msk.f32.gmra.mxu0 %vm324_vm1, %v7614_v4 }
  0xa9   : > { %6763 = vmatmul.mubr.msk.f32.gmra.mxu1 %vm324_vm1, %v7828_v36  ;;  %6815 = vmatprep.mubr.msk.f32.mxu0 %vm324_vm1, %v7619_v5 }
  0xaa   : > { %6765 = vmatprep.mubr.msk.f32.mxu1 %vm324_vm1, %v7833_v37 }
  0xac   : > { %6816 = vmatmul.mubr.msk.f32.gmra.mxu0 %vm324_vm1, %v7628_v6 }
  0xad   : > { %6766 = vmatmul.mubr.msk.f32.gmra.mxu1 %vm324_vm1, %v7842_v38  ;;  %6818 = vmatprep.mubr.msk.f32.mxu0 %vm324_vm1, %v7850_v40 }
  0xae   : > { %6768 = vmatprep.mubr.msk.f32.mxu1 %vm324_vm1, %v7847_v39 }
  0xb0   : > { %6819 = vmatmul.mubr.msk.f32.gmra.mxu0 %vm324_vm1, %v7864_v42 }
  0xb1   : > { %6769 = vmatmul.mubr.msk.f32.gmra.mxu1 %vm324_vm1, %v7859_v41  ;;  %6873 = vmatprep.mubr.msk.f32.mxu0 %vm324_vm1, %v7434_v43 }
  0xb2   : > { %6823 = vmatprep.mubr.msk.f32.mxu1 %vm324_vm1, %v7642_v9  ;;  %v6137_v9 = vld [vmem:[%s10069_s5 + $0x18] sm:$0xf] }
  0xb3   : > { %6921 = vmatprep.subr.msk.mxu1 %vm421_vm0, %v6137_v9 }
  0xb4   : > { %6874 = vmatmul.mubr.msk.f32.vlgmr.msra.gmra.mxu0 %vm324_vm1, %v7447_v44 }
  0xb5   : > { %6824 = vmatmul.mubr.msk.f32.vlgmr.msra.gmra.mxu1 %vm324_vm1, %v7653_v11  ;;  %6876 = vmatprep.mubr.msk.f32.mxu0 %vm324_vm1, %v7452_v45 }
  0xb6   : > { %6826 = vmatprep.mubr.msk.f32.mxu1 %vm324_vm1, %v7661_v13  ;;  %6922 = vmatpush3.msk.msra.mxu1 %vm421_vm0, %v6137_v9  ;;  %v6065_v9 = vld [vmem:[%s7246_s13 + $0x168] sm:$0xff] }
  0xb8   : > { %6877 = vmatmul.mubr.msk.f32.gmra.mxu0 %vm324_vm1, %v7461_v46 }
  0xb9   : > { %6827 = vmatmul.mubr.msk.f32.gmra.mxu1 %vm324_vm1, %v7674_v14  ;;  %6879 = vmatprep.mubr.msk.f32.mxu0 %vm324_vm1, %v7466_v47 }
  0xba   : > { %6829 = vmatprep.mubr.msk.f32.mxu1 %vm324_vm1, %v7679_v15  ;;  %v6203_v15 = vld [vmem:[%s10069_s5 + $0x1c] sm:$0xf] }
  0xbb   : > { %6971 = vmatprep.subr.msk.mxu0 %vm421_vm0, %v6203_v15 }
  0xbc   : > { %6880 = vmatmul.mubr.msk.f32.gmra.mxu0 %vm324_vm1, %v7475_v48 }
  0xbd   : > { %6830 = vmatmul.mubr.msk.f32.gmra.mxu1 %vm324_vm1, %v7688_v16  ;;  %6882 = vmatprep.mubr.msk.f32.mxu0 %vm324_vm1, %v7480_v49 }
  0xbe   : > { %6832 = vmatprep.mubr.msk.f32.mxu1 %vm324_vm1, %v7693_v17  ;;  %6972 = vmatpush3.msk.msra.mxu0 %vm421_vm0, %v6203_v15 }
  0xc0   : > { %6883 = vmatmul.mubr.msk.f32.gmra.mxu0 %vm324_vm1, %v7489_v50 }
  0xc1   : > { %6833 = vmatmul.mubr.msk.f32.gmra.mxu1 %vm324_vm1, %v7702_v18  ;;  %6885 = vmatprep.mubr.msk.f32.mxu0 %vm324_vm1, %v7494_v51 }
  0xc2   : > { %6835 = vmatprep.mubr.msk.f32.mxu1 %vm324_vm1, %v7707_v19  ;;  %v6058_v19 = vld [vmem:[%s7246_s13 + $0x110] sm:$0xff] }
  0xc4   : > { %6886 = vmatmul.mubr.msk.f32.gmra.mxu0 %vm324_vm1, %v7503_v52 }
  0xc5   : > { %6836 = vmatmul.mubr.msk.f32.gmra.mxu1 %vm324_vm1, %v7716_v20  ;;  %6888 = vmatprep.mubr.msk.f32.mxu0 %vm324_vm1, %v7508_v53 }
  0xc6   : > { %6838 = vmatprep.mubr.msk.f32.mxu1 %vm324_vm1, %v7721_v21 }
  0xc8   : > { %6889 = vmatmul.mubr.msk.f32.gmra.mxu0 %vm324_vm1, %v7517_v54 }
  0xc9   : > { %6839 = vmatmul.mubr.msk.f32.gmra.mxu1 %vm324_vm1, %v7730_v22  ;;  %6891 = vmatprep.mubr.msk.f32.mxu0 %vm324_vm1, %v7522_v55 }
  0xca   : > { %6841 = vmatprep.mubr.msk.f32.mxu1 %vm324_vm1, %v7735_v23  ;;  %v6059_v23 = vld [vmem:[%s7246_s13 + $0x120] sm:$0xff] }
  0xcc   : > { %6892 = vmatmul.mubr.msk.f32.gmra.mxu0 %vm324_vm1, %v7531_v56 }
  0xcd   : > { %6842 = vmatmul.mubr.msk.f32.gmra.mxu1 %vm324_vm1, %v7744_v24  ;;  %6894 = vmatprep.mubr.msk.f32.mxu0 %vm324_vm1, %v7536_v57  ;;  %v6060_v24 = vld [vmem:[%s7246_s13 + $0x128] sm:$0xff] }
  0xce   : > { %6844 = vmatprep.mubr.msk.f32.mxu1 %vm324_vm1, %v7749_v25 }
  0xd0   : > { %6895 = vmatmul.mubr.msk.f32.gmra.mxu0 %vm324_vm1, %v7544_v58 }
  0xd1   : > { %6845 = vmatmul.mubr.msk.f32.gmra.mxu1 %vm324_vm1, %v7758_v26  ;;  %6897 = vmatprep.mubr.msk.f32.mxu0 %vm324_vm1, %v7549_v59 }
  0xd2   : > { %6847 = vmatprep.mubr.msk.f32.mxu1 %vm324_vm1, %v7763_v27 }
  0xd4   : > { %v7938_v43 = vpop.f32.mrf.mxu0  ;;  %6898 = vmatmul.mubr.msk.f32.gmra.mxu0 %vm324_vm1, %v7558_v60 }
  0xd5   : > { %v7940_v44 = vpop.f32.mrf.mxu1  ;;  %6848 = vmatmul.mubr.msk.f32.gmra.mxu1 %vm324_vm1, %v7772_v28  ;;  %6900 = vmatprep.mubr.msk.f32.mxu0 %vm324_vm1, %v7563_v61 }
  0xd6   : > { %6850 = vmatprep.mubr.msk.f32.mxu1 %vm324_vm1, %v7777_v29  ;;  %v7950_v45 = vpop.f32.mrf.mxu0  ;;  %v6061_v29 = vld [vmem:[%s7246_s13 + $0x138] sm:$0xff] }
  0xd7   : > { %v7952_v46 = vpop.f32.mrf.mxu1 }
  0xd8   : > { %v7954_v47 = vpop.f32.mrf.mxu0  ;;  %6901 = vmatmul.mubr.msk.f32.gmra.mxu0 %vm324_vm1, %v6058_v19  ;;  %v8091_v19 = vld [vmem:[%s7246_s13 + $0x182] sm:$0xff] }
  0xd9   : > { %v7956_v48 = vpop.f32.mrf.mxu1  ;;  %6851 = vmatmul.mubr.msk.f32.gmra.mxu1 %vm324_vm1, %v7786_v30  ;;  %6903 = vmatprep.mubr.msk.f32.mxu0 %vm324_vm1, %v6059_v23  ;;  %v6062_v30 = vld [vmem:[%s7246_s13 + $0x140] sm:$0xff] }
  0xda   : > { %6853 = vmatprep.mubr.msk.f32.mxu1 %vm324_vm1, %v7791_v31  ;;  %v7962_v49 = vpop.f32.mrf.mxu0 }
  0xdb   : > { %v7964_v50 = vpop.f32.mrf.mxu1 }
  0xdc   : > { %v7966_v51 = vpop.f32.mrf.mxu0  ;;  %6904 = vmatmul.mubr.msk.f32.gmra.mxu0 %vm324_vm1, %v6060_v24 }
  0xdd   : > { %v7968_v52 = vpop.f32.mrf.mxu1  ;;  %6854 = vmatmul.mubr.msk.f32.gmra.mxu1 %vm324_vm1, %v7800_v32  ;;  %6906 = vmatprep.mubr.msk.f32.mxu0 %vm324_vm1, %v6061_v29  ;;  %v6171_v29 = vld [vmem:[%s7246_s13 + $0x32] sm:$0xff] }
  0xde   : > { %6856 = vmatprep.mubr.msk.f32.mxu1 %vm324_vm1, %v7805_v33  ;;  %v7974_v53 = vpop.f32.mrf.mxu0 }
  0xdf   : > { %v7976_v54 = vpop.f32.mrf.mxu1 }
  0xe0   : > { %v7978_v55 = vpop.f32.mrf.mxu0  ;;  %6907 = vmatmul.mubr.msk.f32.gmra.mxu0 %vm324_vm1, %v6062_v30  ;;  %v6172_v30 = vld [vmem:[%s7246_s13 + $0x3a] sm:$0xff] }
  0xe1   : > { %v7980_v56 = vpop.f32.mrf.mxu1  ;;  %6857 = vmatmul.mubr.msk.f32.gmra.mxu1 %vm324_vm1, %v7814_v34 }
  0xe2   : > { %6859 = vmatprep.mubr.msk.f32.mxu1 %vm324_vm1, %v7819_v35  ;;  %v7986_v57 = vpop.f32.mrf.mxu0  ;;  %v6063_v35 = vld [vmem:[%s7246_s13 + $0x150] sm:$0xff] }
  0xe3   : > { %v7988_v58 = vpop.f32.mrf.mxu1  ;;  %6909 = vmatprep.mubr.msk.f32.mxu0 %vm324_vm1, %v6063_v35 }
  0xe4   : > { %v7990_v59 = vpop.f32.mrf.mxu0 }
  0xe5   : > { %v7992_v60 = vpop.f32.mrf.mxu1  ;;  %6860 = vmatmul.mubr.msk.f32.gmra.mxu1 %vm324_vm1, %v7828_v36  ;;  %v6064_v36 = vld [vmem:[%s7246_s13 + $0x158] sm:$0xff] }
  0xe6   : > { %6862 = vmatprep.mubr.msk.f32.mxu1 %vm324_vm1, %v7833_v37  ;;  %v7998_v61 = vpop.f32.mrf.mxu0  ;;  %6910 = vmatmul.mubr.msk.f32.gmra.mxu0 %vm324_vm1, %v6064_v36 }
  0xe7   : > { %v8000_v62 = vpop.f32.mrf.mxu1  ;;  %6912 = vmatprep.mubr.msk.f32.mxu0 %vm324_vm1, %v6065_v9  ;;  %v6109_v9 = vld [vmem:[%s7246_s13 + $0x61] sm:$0xff] }
  0xe8   : > { %v8002_v63 = vpop.f32.mrf.mxu0 }
  0xe9   : > { %v8004_v0 = vpop.f32.mrf.mxu1  ;;  %6863 = vmatmul.mubr.msk.f32.gmra.mxu1 %vm324_vm1, %v7842_v38 }
  0xea   : > { %6865 = vmatprep.mubr.msk.f32.mxu1 %vm324_vm1, %v7847_v39  ;;  %v8010_v1 = vpop.f32.mrf.mxu0 }
  0xeb   : > { %v8012_v2 = vpop.f32.mrf.mxu1 }
  0xec   : > { %v8014_v3 = vpop.f32.mrf.mxu0 }
  0xed   : > { %v8016_v4 = vpop.f32.mrf.mxu1  ;;  %6866 = vmatmul.mubr.msk.f32.gmra.mxu1 %vm324_vm1, %v7859_v41 }
  0xee   : > { %v8020_v5 = vpop.f32.mrf.mxu0  ;;  %6868 = vmatprep.mubr.msk.f32.mxu1 %vm324_vm1, %v8091_v19 }
  0xef   : > { %v8022_v6 = vpop.f32.mrf.mxu1 }
  0xf0   : > { %v8024_v7 = vpop.f32.mrf.mxu0 }
  0xf1   : > { %v8026_v8 = vpop.f32.mrf.mxu1 }
  0xf2   : > { %v8032_v10 = vpop.f32.mrf.mxu0 }
  0xf3   : > { %v8034_v11 = vpop.f32.mrf.mxu1 }
  0xf4   : > { %v6675_v13 = vpop.f32.mrf.mxu0 }
  0xf5   : > { %v6625_v12 = vpop.f32.mrf.mxu1  ;;  %1591 = vrot.lane.b32.xlu1 %v6675_v13, %s7171_s24 }
  0xf6   : > { %1073 = vrot.lane.b32.xlu0 %v6625_v12, %s7171_s24  ;;  %v1398_v17 = vpop.f32.mrf.mxu0  ;;  %v6066_v12 = vld [vmem:[%s7246_s13 + $0x170] sm:$0xff] }
  0xf7   : > { %v880_v14 = vpop.f32.mrf.mxu1  ;;  %6913 = vmatmul.mubr.msk.f32.gmra.mxu0 %vm324_vm1, %v6066_v12  ;;  %v6110_v12 = vld [vmem:[%s7246_s13 + $0x69] sm:$0xff] }
  0xf8   : > { %v6678_v18 = vpop.f32.mrf.mxu0  ;;  %6915 = vmatprep.mubr.msk.f32.mxu0 %vm324_vm1, %v7850_v40  ;;  %v8096_v40 = vld [vmem:[%s7246_s13 + $0x18a] sm:$0xff] }
  0xf9   : > { %v6628_v16 = vpop.f32.mrf.mxu1  ;;  %6869 = vmatmul.mubr.msk.f32.gmra.mxu1 %vm324_vm1, %v8096_v40 }
  0xfa   : > { %1071 = vrot.lane.b32.xlu0 %v880_v14, %s7171_s24  ;;  %1077 = vrot.lane.b32.xlu1 %v6628_v16, %s7171_s24  ;;  %v1408_v21 = vpop.f32.mrf.mxu0 }
  0xfb   : > { %v890_v20 = vpop.f32.mrf.mxu1  ;;  %6916 = vmatmul.mubr.msk.f32.gmra.mxu0 %vm324_vm1, %v7864_v42 }
  0xfc   : > { %v6681_v26 = vpop.f32.mrf.mxu0 }
  0xfd   : > { %v6631_v22 = vpop.f32.mrf.mxu1 }
  0xfe   : > { %1589 = vrot.lane.b32.xlu0 %v1398_v17, %s7171_s24  ;;  %1595 = vrot.lane.b32.xlu1 %v6678_v18, %s7171_s24  ;;  %v1418_v27 = vpop.f32.mrf.mxu0 }
  0xff   : > { %v900_v25 = vpop.f32.mrf.mxu1 }
 0x100   : > { %v6684_v32 = vpop.f32.mrf.mxu0 }
 0x101   : > { %v6634_v28 = vpop.f32.mrf.mxu1 }
 0x102   : > { %1075 = vrot.lane.b32.xlu1 %v890_v20, %s7171_s24  ;;  %1593 = vrot.lane.b32.xlu0 %v1408_v21, %s7171_s24  ;;  %v1428_v33 = vpop.f32.mrf.mxu0  ;;  %v6069_v21 = vld [vmem:[%s7246_s13 + $0x198] sm:$0xff] }
 0x103   : > { %v910_v31 = vpop.f32.mrf.mxu1  ;;  %6918 = vmatprep.mubr.msk.f32.mxu0 %vm324_vm1, %v6069_v21 }
 0x104   : > { %v6687_v38 = vpop.f32.mrf.mxu0 }
 0x105   : > { %v6637_v34 = vpop.f32.mrf.mxu1 }
 0x106   : > { %1081 = vrot.lane.b32.xlu1 %v6631_v22, %s7171_s24  ;;  %1079 = vrot.lane.b32.xlu0 %v900_v25, %s7171_s24  ;;  %v1438_v39 = vpop.f32.mrf.mxu0  ;;  %v6070_v22 = vld [vmem:[%s7246_s13 + $0x1a0] sm:$0xff]  ;;  %v6105_v25 = vld [vmem:[%s7246_s13 + $0x31] sm:$0xff] }
 0x107   : > { %v920_v37 = vpop.f32.mrf.mxu1  ;;  %6919 = vmatmul.mubr.msk.f32.gmra.mxu0 %vm324_vm1, %v6070_v22  ;;  %6923 = vmatprep.mubr.msk.f32.mxu1 %vm324_vm1, %v6105_v25 }
 0x108   : > { %v6690_v14 = vpop.f32.mrf.mxu0  ;;  %6973 = vmatprep.mubr.msk.f32.mxu0 %vm324_vm1, %v6171_v29 }
 0x109   : > { %v6640_v41 = vpop.f32.mrf.mxu1 }
 0x10a   : > { %1599 = vrot.lane.b32.xlu1 %v6681_v26, %s7171_s24  ;;  %1597 = vrot.lane.b32.xlu0 %v1418_v27, %s7171_s24  ;;  %v1448_v15 = vpop.f32.mrf.mxu0  ;;  %v6106_v26 = vld [vmem:[%s7246_s13 + $0x39] sm:$0xff] }
 0x10b   : > { %v930_v13 = vpop.f32.mrf.mxu1  ;;  %6924 = vmatmul.mubr.msk.f32.vlgmr.msra.gmra.mxu1 %vm324_vm1, %v6106_v26  ;;  %6974 = vmatmul.mubr.msk.f32.vlgmr.msra.gmra.mxu0 %vm324_vm1, %v6172_v30 }
 0x10c   : > { %v6693_v18 = vpop.f32.mrf.mxu0 }
 0x10d   : > { %v6643_v16 = vpop.f32.mrf.mxu1 }
 0x10e   : > { %1085 = vrot.lane.b32.xlu1 %v6634_v28, %s7171_s24  ;;  %1083 = vrot.lane.b32.xlu0 %v910_v31, %s7171_s24  ;;  %v1458_v42 = vpop.f32.mrf.mxu0 }
 0x10f   : > { %v940_v17 = vpop.f32.mrf.mxu1 }
 0x110   : > { %v6696_v24 = vpop.f32.mrf.mxu0 }
 0x111   : > { %v6646_v20 = vpop.f32.mrf.mxu1 }
 0x112   : > { %1603 = vrot.lane.b32.xlu1 %v6684_v32, %s7171_s24  ;;  %1601 = vrot.lane.b32.xlu0 %v1428_v33, %s7171_s24  ;;  %v1468_v27 = vpop.f32.mrf.mxu0  ;;  %v6107_v33 = vld [vmem:[%s7246_s13 + $0x49] sm:$0xff] }
 0x113   : > { %v950_v23 = vpop.f32.mrf.mxu1  ;;  %6926 = vmatprep.mubr.msk.f32.mxu1 %vm324_vm1, %v6107_v33 }
 0x114   : > { %v6699_v32 = vpop.f32.mrf.mxu0 }
 0x115   : > { %v6649_v28 = vpop.f32.mrf.mxu1 }
 0x116   : > { %1089 = vrot.lane.b32.xlu1 %v6637_v34, %s7171_s24  ;;  %1087 = vrot.lane.b32.xlu0 %v920_v37, %s7171_s24  ;;  %v6108_v34 = vld [vmem:[%s7246_s13 + $0x51] sm:$0xff]  ;;  %v1478_v35 = vpop.f32.mrf.mxu0 }
 0x117   : > { %v960_v31 = vpop.f32.mrf.mxu1  ;;  %6927 = vmatmul.mubr.msk.f32.gmra.mxu1 %vm324_vm1, %v6108_v34  ;;  %v6173_v37 = vld [vmem:[%s7246_s13 + $0x4a] sm:$0xff] }
 0x118   : > { %6976 = vmatprep.mubr.msk.f32.mxu0 %vm324_vm1, %v6173_v37  ;;  %6929 = vmatprep.mubr.msk.f32.mxu1 %vm324_vm1, %v6109_v9 }
 0x119   : > { %v6652_v36 = vpop.f32.mrf.mxu1 }
 0x11a   : > { %1607 = vrot.lane.b32.xlu1 %v6687_v38, %s7171_s24  ;;  %1605 = vrot.lane.b32.xlu0 %v1438_v39, %s7171_s24  ;;  %v6174_v38 = vld [vmem:[%s7246_s13 + $0x52] sm:$0xff] }
 0x11b   : > { %v970_v39 = vpop.f32.mrf.mxu1  ;;  %6977 = vmatmul.mubr.msk.f32.gmra.mxu0 %vm324_vm1, %v6174_v38  ;;  %6930 = vmatmul.mubr.msk.f32.gmra.mxu1 %vm324_vm1, %v6110_v12 }
 0x11e   : > { %1093 = vrot.lane.b32.xlu1 %v6640_v41, %s7171_s24  ;;  %1091 = vrot.lane.b32.xlu0 %v930_v13, %s7171_s24  ;;  %v6702_v41 = vpop.f32.mrf.mxu0 }
 0x120   : > { %v1488_v13 = vpop.f32.mrf.mxu0 }
 0x122   : > { %1611 = vrot.lane.b32.xlu1 %v6690_v14, %s7171_s24  ;;  %1609 = vrot.lane.b32.xlu0 %v1448_v15, %s7171_s24  ;;  %v6655_v14 = vpop.f32.mrf.mxu1  ;;  %v6175_v15 = vld [vmem:[%s7246_s13 + $0x62] sm:$0xff] }
 0x123   : > { %6979 = vmatprep.mubr.msk.f32.mxu0 %vm324_vm1, %v6175_v15 }
 0x126   : > { %1097 = vrot.lane.b32.xlu1 %v6643_v16, %s7171_s24  ;;  %1095 = vrot.lane.b32.xlu0 %v940_v17, %s7171_s24  ;;  %v6176_v16 = vld [vmem:[%s7246_s13 + $0x6a] sm:$0xff]  ;;  %v980_v17 = vpop.f32.mrf.mxu1 }
 0x127   : > { %6980 = vmatmul.mubr.msk.f32.gmra.mxu0 %vm324_vm1, %v6176_v16 }
 0x128   : > { %v6658_v22 = vpop.f32.mrf.mxu1 }
 0x12a   : > { %1615 = vrot.lane.b32.xlu1 %v6693_v18, %s7171_s24  ;;  %1613 = vrot.lane.b32.xlu0 %v1458_v42, %s7171_s24  ;;  %v6705_v18 = vpop.f32.mrf.mxu0  ;;  %v6111_v42 = vld [vmem:[%s7246_s13 + $0x79] sm:$0xff]  ;;  %v990_v25 = vpop.f32.mrf.mxu1 }
 0x12b   : > { %6932 = vmatprep.mubr.msk.f32.mxu1 %vm324_vm1, %v6111_v42 }
 0x12c   : > { %v1498_v21 = vpop.f32.mrf.mxu0  ;;  %v6661_v30 = vpop.f32.mrf.mxu1 }
 0x12e   : > { %1101 = vrot.lane.b32.xlu1 %v6646_v20, %s7171_s24  ;;  %1099 = vrot.lane.b32.xlu0 %v950_v23, %s7171_s24  ;;  %v6112_v20 = vld [vmem:[%s7246_s13 + $0x81] sm:$0xff]  ;;  %v6708_v26 = vpop.f32.mrf.mxu0  ;;  %v1000_v33 = vpop.f32.mrf.mxu1 }
 0x12f   : > { %6933 = vmatmul.mubr.msk.f32.gmra.mxu1 %vm324_vm1, %v6112_v20  ;;  %v6177_v23 = vld [vmem:[%s7246_s13 + $0x7a] sm:$0xff] }
 0x130   : > { %6982 = vmatprep.mubr.msk.f32.mxu0 %vm324_vm1, %v6177_v23  ;;  %v1508_v29 = vpop.f32.mrf.mxu0  ;;  %v6664_v38 = vpop.f32.mrf.mxu1 }
 0x132   : > { %1619 = vrot.lane.b32.xlu1 %v6696_v24, %s7171_s24  ;;  %1617 = vrot.lane.b32.xlu0 %v1468_v27, %s7171_s24  ;;  %v6178_v24 = vld [vmem:[%s7246_s13 + $0x82] sm:$0xff]  ;;  %v6113_v27 = vld [vmem:[%s7246_s13 + $0x91] sm:$0xff]  ;;  %v6711_v34 = vpop.f32.mrf.mxu0  ;;  %v1010_v9 = vpop.f32.mrf.mxu1 }
 0x133   : > { %6983 = vmatmul.mubr.msk.f32.gmra.mxu0 %vm324_vm1, %v6178_v24  ;;  %6935 = vmatprep.mubr.msk.f32.mxu1 %vm324_vm1, %v6113_v27  ;;  %v6120_v24 = vld [vmem:[%s7246_s13 + $0xe1] sm:$0xff] }
 0x134   : > { %v1518_v37 = vpop.f32.mrf.mxu0  ;;  %v6667_v16 = vpop.f32.mrf.mxu1  ;;  %v6185_v27 = vld [vmem:[%s7246_s13 + $0xda] sm:$0xff] }
 0x136   : > { %1105 = vrot.lane.b32.xlu1 %v6649_v28, %s7171_s24  ;;  %1103 = vrot.lane.b32.xlu0 %v960_v31, %s7171_s24  ;;  %v6114_v28 = vld [vmem:[%s7246_s13 + $0x99] sm:$0xff]  ;;  %v6714_v12 = vpop.f32.mrf.mxu0  ;;  %v1020_v42 = vpop.f32.mrf.mxu1 }
 0x137   : > { %6936 = vmatmul.mubr.msk.f32.gmra.mxu1 %vm324_vm1, %v6114_v28  ;;  %v6179_v31 = vld [vmem:[%s7246_s13 + $0x92] sm:$0xff] }
 0x138   : > { %6985 = vmatprep.mubr.msk.f32.mxu0 %vm324_vm1, %v6179_v31  ;;  %v1528_v15 = vpop.f32.mrf.mxu0 }
 0x13a   : > { %1623 = vrot.lane.b32.xlu1 %v6699_v32, %s7171_s24  ;;  %1621 = vrot.lane.b32.xlu0 %v1478_v35, %s7171_s24  ;;  %v6180_v32 = vld [vmem:[%s7246_s13 + $0x9a] sm:$0xff]  ;;  %v6115_v35 = vld [vmem:[%s7246_s13 + $0xa9] sm:$0xff]  ;;  %v6717_v20 = vpop.f32.mrf.mxu0 }
 0x13b   : > { %6986 = vmatmul.mubr.msk.f32.gmra.mxu0 %vm324_vm1, %v6180_v32  ;;  %6938 = vmatprep.mubr.msk.f32.mxu1 %vm324_vm1, %v6115_v35 }
 0x13e   : > { %1109 = vrot.lane.b32.xlu1 %v6652_v36, %s7171_s24  ;;  %1107 = vrot.lane.b32.xlu0 %v970_v39, %s7171_s24  ;;  %v6116_v36 = vld [vmem:[%s7246_s13 + $0xb1] sm:$0xff] }
 0x13f   : > { %6939 = vmatmul.mubr.msk.f32.gmra.mxu1 %vm324_vm1, %v6116_v36  ;;  %v6181_v39 = vld [vmem:[%s7246_s13 + $0xaa] sm:$0xff]  ;;  %v6122_v36 = vld [vmem:[%s7246_s13 + $0xf9] sm:$0xff] }
 0x140   : > { %6988 = vmatprep.mubr.msk.f32.mxu0 %vm324_vm1, %v6181_v39  ;;  %v6187_v39 = vld [vmem:[%s7246_s13 + $0xf2] sm:$0xff] }
 0x142   : > { %1627 = vrot.lane.b32.xlu1 %v6702_v41, %s7171_s24  ;;  %1625 = vrot.lane.b32.xlu0 %v1488_v13, %s7171_s24  ;;  %v6182_v41 = vld [vmem:[%s7246_s13 + $0xb2] sm:$0xff]  ;;  %v6117_v13 = vld [vmem:[%s7246_s13 + $0xc1] sm:$0xff] }
 0x143   : > { %6989 = vmatmul.mubr.msk.f32.gmra.mxu0 %vm324_vm1, %v6182_v41  ;;  %6941 = vmatprep.mubr.msk.f32.mxu1 %vm324_vm1, %v6117_v13 }
 0x146   : > { %1113 = vrot.lane.b32.xlu1 %v6655_v14, %s7171_s24  ;;  %1111 = vrot.lane.b32.xlu0 %v980_v17, %s7171_s24  ;;  %v6118_v14 = vld [vmem:[%s7246_s13 + $0xc9] sm:$0xff] }
 0x147   : > { %6942 = vmatmul.mubr.msk.f32.gmra.mxu1 %vm324_vm1, %v6118_v14  ;;  %v6183_v17 = vld [vmem:[%s7246_s13 + $0xc2] sm:$0xff] }
 0x148   : > { %6991 = vmatprep.mubr.msk.f32.mxu0 %vm324_vm1, %v6183_v17 }
 0x14a   : > { %1631 = vrot.lane.b32.xlu1 %v6705_v18, %s7171_s24  ;;  %1629 = vrot.lane.b32.xlu0 %v1498_v21, %s7171_s24  ;;  %v6184_v18 = vld [vmem:[%s7246_s13 + $0xca] sm:$0xff]  ;;  %v6119_v21 = vld [vmem:[%s7246_s13 + $0xd9] sm:$0xff] }
 0x14b   : > { %6992 = vmatmul.mubr.msk.f32.gmra.mxu0 %vm324_vm1, %v6184_v18  ;;  %6944 = vmatprep.mubr.msk.f32.mxu1 %vm324_vm1, %v6119_v21  ;;  %v6124_v18 = vld [vmem:[%s7246_s13 + $0x111] sm:$0xff] }
 0x14c   : > { %6945 = vmatmul.mubr.msk.f32.gmra.mxu1 %vm324_vm1, %v6120_v24  ;;  %6994 = vmatprep.mubr.msk.f32.mxu0 %vm324_vm1, %v6185_v27  ;;  %v6189_v21 = vld [vmem:[%s7246_s13 + $0x10a] sm:$0xff] }
 0x14e   : > { %1117 = vrot.lane.b32.xlu1 %v6658_v22, %s7171_s24  ;;  %1115 = vrot.lane.b32.xlu0 %v990_v25, %s7171_s24  ;;  %v1538_v25 = vpop.f32.mrf.mxu0 }
 0x150   : > { %v6720_v32 = vpop.f32.mrf.mxu0 }
 0x152   : > { %1635 = vrot.lane.b32.xlu1 %v6708_v26, %s7171_s24  ;;  %1633 = vrot.lane.b32.xlu0 %v1508_v29, %s7171_s24  ;;  %v6670_v26 = vpop.f32.mrf.mxu1 }
 0x154   : > { %v1030_v31 = vpop.f32.mrf.mxu1 }
 0x156   : > { %1121 = vrot.lane.b32.xlu1 %v6661_v30, %s7171_s24  ;;  %1119 = vrot.lane.b32.xlu0 %v1000_v33, %s7171_s24  ;;  %v6186_v30 = vld [vmem:[%s7246_s13 + $0xe2] sm:$0xff]  ;;  %v6121_v33 = vld [vmem:[%s7246_s13 + $0xf1] sm:$0xff] }
 0x157   : > { %6995 = vmatmul.mubr.msk.f32.gmra.mxu0 %vm324_vm1, %v6186_v30  ;;  %6947 = vmatprep.mubr.msk.f32.mxu1 %vm324_vm1, %v6121_v33 }
 0x158   : > { %6948 = vmatmul.mubr.msk.f32.gmra.mxu1 %vm324_vm1, %v6122_v36  ;;  %6997 = vmatprep.mubr.msk.f32.mxu0 %vm324_vm1, %v6187_v39  ;;  %v6126_v36 = vld [vmem:[%s7246_s13 + $0x129] sm:$0xff] }
 0x159   : > { %v6191_v39 = vld [vmem:[%s7246_s13 + $0x122] sm:$0xff] }
 0x15a   : > { %1639 = vrot.lane.b32.xlu1 %v6711_v34, %s7171_s24  ;;  %1637 = vrot.lane.b32.xlu0 %v1518_v37, %s7171_s24  ;;  %v1548_v37 = vpop.f32.mrf.mxu0 }
 0x15c   : > { %v6775_v14 = vpop.f32.mrf.mxu0 }
 0x15e   : > { %1125 = vrot.lane.b32.xlu1 %v6664_v38, %s7171_s24  ;;  %1123 = vrot.lane.b32.xlu0 %v1010_v9, %s7171_s24  ;;  %v6725_v38 = vpop.f32.mrf.mxu1 }
 0x160   : > { %v1916_v13 = vpop.f32.mrf.mxu1 }
 0x162   : > { %1643 = vrot.lane.b32.xlu1 %v6714_v12, %s7171_s24  ;;  %1641 = vrot.lane.b32.xlu0 %v1528_v15, %s7171_s24  ;;  %v6188_v12 = vld [vmem:[%s7246_s13 + $0xfa] sm:$0xff]  ;;  %v6123_v15 = vld [vmem:[%s7246_s13 + $0x109] sm:$0xff] }
 0x163   : > { %6998 = vmatmul.mubr.msk.f32.gmra.mxu0 %vm324_vm1, %v6188_v12  ;;  %6950 = vmatprep.mubr.msk.f32.mxu1 %vm324_vm1, %v6123_v15 }
 0x164   : > { %6951 = vmatmul.mubr.msk.f32.gmra.mxu1 %vm324_vm1, %v6124_v18  ;;  %7000 = vmatprep.mubr.msk.f32.mxu0 %vm324_vm1, %v6189_v21 }
 0x166   : > { %1129 = vrot.lane.b32.xlu1 %v6667_v16, %s7171_s24  ;;  %1127 = vrot.lane.b32.xlu0 %v1020_v42, %s7171_s24  ;;  %v2434_v42 = vpop.f32.mrf.mxu0 }
 0x167   : > { %v8196_v23 = vpop.permute.xlu1 %1591 }
 0x168   : > { %v8194_v22 = vpop.permute.xlu0 %1073  ;;  %v6778_v30 = vpop.f32.mrf.mxu0 }
 0x16a   : > { %1647 = vrot.lane.b32.xlu1 %v6717_v20, %s7171_s24  ;;  %1645 = vrot.lane.b32.xlu0 %v1538_v25, %s7171_s24  ;;  %v6728_v20 = vpop.f32.mrf.mxu1 }
 0x16c   : > { %v8204_v28 = vpop.permute.xlu0 %1071  ;;  %v8206_v29 = vpop.permute.xlu1 %1077 }
 0x16d   : > { %v1926_v27 = vpop.f32.mrf.mxu1 }
 0x16e   : > { %1133 = vrot.lane.b32.xlu1 %v6670_v26, %s7171_s24  ;;  %1131 = vrot.lane.b32.xlu0 %v1030_v31, %s7171_s24  ;;  %v6190_v26 = vld [vmem:[%s7246_s13 + $0x112] sm:$0xff]  ;;  %v6125_v31 = vld [vmem:[%s7246_s13 + $0x121] sm:$0xff] }
 0x16f   : > { %7001 = vmatmul.mubr.msk.f32.gmra.mxu0 %vm324_vm1, %v6190_v26  ;;  %6953 = vmatprep.mubr.msk.f32.mxu1 %vm324_vm1, %v6125_v31  ;;  %v6128_v26 = vld [vmem:[%s7246_s13 + $0x141] sm:$0xff]  ;;  %v6129_v31 = vld [vmem:[%s7246_s13 + $0x151] sm:$0xff] }
 0x170   : > { %v8214_v34 = vpop.permute.xlu0 %1589  ;;  %v8216_v35 = vpop.permute.xlu1 %1595  ;;  %6954 = vmatmul.mubr.msk.f32.gmra.mxu1 %vm324_vm1, %v6126_v36  ;;  %7003 = vmatprep.mubr.msk.f32.mxu0 %vm324_vm1, %v6191_v39 }
 0x172   : > { %1651 = vrot.lane.b32.xlu1 %v6720_v32, %s7171_s24  ;;  %1649 = vrot.lane.b32.xlu0 %v1548_v37, %s7171_s24  ;;  %v2444_v37 = vpop.f32.mrf.mxu0 }
 0x174   : > { %v8224_v41 = vpop.permute.xlu1 %1075  ;;  %v8226_v9 = vpop.permute.xlu0 %1593 }
 0x175   : > { %v6781_v18 = vpop.f32.mrf.mxu0 }
 0x176   : > { %2109 = vrot.lane.b32.xlu1 %v6725_v38, %s7171_s24  ;;  %2107 = vrot.lane.b32.xlu0 %v1916_v13, %s7171_s24  ;;  %v6731_v38 = vpop.f32.mrf.mxu1 }
 0x178   : > { %v8234_v16 = vpop.permute.xlu1 %1081  ;;  %v8236_v17 = vpop.permute.xlu0 %1079 }
 0x179   : > { %v1936_v15 = vpop.f32.mrf.mxu1 }
 0x17a   : > { %2627 = vrot.lane.b32.xlu1 %v6775_v14, %s7171_s24  ;;  %2625 = vrot.lane.b32.xlu0 %v2434_v42, %s7171_s24  ;;  %v6192_v14 = vld [vmem:[%s7246_s13 + $0x12a] sm:$0xff]  ;;  %v6127_v42 = vld [vmem:[%s7246_s13 + $0x139] sm:$0xff] }
 0x17b   : > { %7004 = vmatmul.mubr.msk.f32.gmra.mxu0 %vm324_vm1, %v6192_v14  ;;  %6956 = vmatprep.mubr.msk.f32.mxu1 %vm324_vm1, %v6127_v42 }
 0x17c   : > { %v8244_v24 = vpop.permute.xlu1 %1599  ;;  %v8246_v25 = vpop.permute.xlu0 %1597  ;;  %6957 = vmatmul.mubr.msk.f32.gmra.mxu1 %vm324_vm1, %v6128_v26  ;;  %v6132_v26 = vld [vmem:[%s7246_s13 + $0x171] sm:$0xff] }
 0x17d   : > { %6959 = vmatprep.mubr.msk.f32.mxu1 %vm324_vm1, %v6129_v31 }
 0x17e   : > { %2113 = vrot.lane.b32.xlu1 %v6728_v20, %s7171_s24  ;;  %2111 = vrot.lane.b32.xlu0 %v1926_v27, %s7171_s24  ;;  %v2454_v27 = vpop.f32.mrf.mxu0 }
 0x180   : > { %v8254_v32 = vpop.permute.xlu1 %1085  ;;  %v8256_v33 = vpop.permute.xlu0 %1083 }
 0x181   : > { %v6784_v14 = vpop.f32.mrf.mxu0 }
 0x182   : > { %2631 = vrot.lane.b32.xlu1 %v6778_v30, %s7171_s24  ;;  %2629 = vrot.lane.b32.xlu0 %v2444_v37, %s7171_s24  ;;  %v6734_v30 = vpop.f32.mrf.mxu1 }
 0x184   : > { %v8264_v12 = vpop.permute.xlu1 %1603  ;;  %v8266_v13 = vpop.permute.xlu0 %1601 }
 0x185   : > { %10107 = vst [vmem:[#allocation3_spill] sm:$0xff] %v8264_v12  ;;  %10108 = vst [vmem:[#allocation4_spill] sm:$0xff] %v8266_v13  ;;  %v1946_v39 = vpop.f32.mrf.mxu1 }
 0x186   : > { %2117 = vrot.lane.b32.xlu1 %v6731_v38, %s7171_s24  ;;  %2115 = vrot.lane.b32.xlu0 %v1936_v15, %s7171_s24  ;;  %v6130_v38 = vld [vmem:[%s7246_s13 + $0x159] sm:$0xff]  ;;  %v6131_v15 = vld [vmem:[%s7246_s13 + $0x169] sm:$0xff] }
 0x187   : > { %6960 = vmatmul.mubr.msk.f32.gmra.mxu1 %vm324_vm1, %v6130_v38  ;;  %v6737_v31 = vpop.f32.mrf.mxu1 }
 0x188   : > { %v8274_v20 = vpop.permute.xlu1 %1089  ;;  %v8276_v21 = vpop.permute.xlu0 %1087  ;;  %6962 = vmatprep.mubr.msk.f32.mxu1 %vm324_vm1, %v6131_v15  ;;  %v6134_v15 = vld [vmem:[%s7246_s13 + $0x189] sm:$0xff] }
 0x18a   : > { %2635 = vrot.lane.b32.xlu1 %v6781_v18, %s7171_s24  ;;  %2633 = vrot.lane.b32.xlu0 %v2454_v27, %s7171_s24  ;;  %v2464_v27 = vpop.f32.mrf.mxu0 }
 0x18b   : > { %6963 = vmatmul.mubr.msk.f32.gmra.mxu1 %vm324_vm1, %v6132_v26 }
 0x18c   : > { %v8284_v36 = vpop.permute.xlu1 %1607  ;;  %v8286_v37 = vpop.permute.xlu0 %1605 }
 0x18d   : > { %10109 = vst [vmem:[#allocation5_spill] sm:$0xff] %v8284_v36  ;;  %10110 = vst [vmem:[#allocation6_spill] sm:$0xff] %v8286_v37  ;;  %v1956_v37 = vpop.f32.mrf.mxu1  ;;  %v6787_v36 = vpop.f32.mrf.mxu0 }
 0x18e   : > { %2121 = vrot.lane.b32.xlu1 %v6734_v30, %s7171_s24  ;;  %2119 = vrot.lane.b32.xlu0 %v1946_v39, %s7171_s24  ;;  %v6133_v30 = vld [vmem:[%s7246_s13 + $0x181] sm:$0xff] }
 0x18f   : > { %6965 = vmatprep.mubr.msk.f32.mxu1 %vm324_vm1, %v6133_v30  ;;  %v6136_v30 = vld [vmem:[%s7246_s13 + $0x1a1] sm:$0xff] }
 0x190   : > { %v8294_v18 = vpop.permute.xlu1 %1093  ;;  %v8296_v42 = vpop.permute.xlu0 %1091  ;;  %6966 = vmatmul.mubr.msk.f32.gmra.mxu1 %vm324_vm1, %v6134_v15 }
 0x191   : > { %10111 = vst [vmem:[#allocation7_spill] sm:$0xff] %v8294_v18  ;;  %10112 = vst [vmem:[#allocation8_spill] sm:$0xff] %v8296_v42 }
 0x192   : > { %2639 = vrot.lane.b32.xlu1 %v6784_v14, %s7171_s24  ;;  %2637 = vrot.lane.b32.xlu0 %v2464_v27, %s7171_s24  ;;  %v6135_v14 = vld [vmem:[%s7246_s13 + $0x199] sm:$0xff] }
 0x193   : > { %6968 = vmatprep.mubr.msk.f32.mxu1 %vm324_vm1, %v6135_v14  ;;  %v6194_v14 = vld [vmem:[%s7246_s13 + $0x142] sm:$0xff] }
 0x194   : > { %v8304_v38 = vpop.permute.xlu1 %1611  ;;  %v8306_v39 = vpop.permute.xlu0 %1609  ;;  %6969 = vmatmul.mubr.msk.f32.gmra.mxu1 %vm324_vm1, %v6136_v30 }
 0x195   : > { %10113 = vst [vmem:[#allocation9_spill] sm:$0xff] %v8304_v38  ;;  %10114 = vst [vmem:[#allocation10_spill] sm:$0xff] %v8306_v39  ;;  %v2474_v39 = vpop.f32.mrf.mxu0  ;;  %v6740_v38 = vpop.f32.mrf.mxu1 }
 0x196   : > { %2125 = vrot.lane.b32.xlu1 %v6737_v31, %s7171_s24  ;;  %2123 = vrot.lane.b32.xlu0 %v1956_v37, %s7171_s24  ;;  %v6193_v31 = vld [vmem:[%s7246_s13 + $0x13a] sm:$0xff] }
 0x197   : > { %7006 = vmatprep.mubr.msk.f32.mxu0 %vm324_vm1, %v6193_v31  ;;  %v6196_v31 = vld [vmem:[%s7246_s13 + $0x15a] sm:$0xff] }
 0x198   : > { %v8314_v26 = vpop.permute.xlu1 %1097  ;;  %v8316_v27 = vpop.permute.xlu0 %1095  ;;  %7007 = vmatmul.mubr.msk.f32.gmra.mxu0 %vm324_vm1, %v6194_v14 }
 0x199   : > { %10115 = vst [vmem:[#allocation11_spill] sm:$0xff] %v8314_v26  ;;  %10116 = vst [vmem:[#allocation12_spill] sm:$0xff] %v8316_v27  ;;  %v1966_v27 = vpop.f32.mrf.mxu1  ;;  %v6790_v26 = vpop.f32.mrf.mxu0 }
 0x19a   : > { %2643 = vrot.lane.b32.xlu1 %v6787_v36, %s7171_s24  ;;  %2641 = vrot.lane.b32.xlu0 %v2474_v39, %s7171_s24  ;;  %v6195_v36 = vld [vmem:[%s7246_s13 + $0x152] sm:$0xff] }
 0x19b   : > { %7009 = vmatprep.mubr.msk.f32.mxu0 %vm324_vm1, %v6195_v36  ;;  %v6198_v36 = vld [vmem:[%s7246_s13 + $0x172] sm:$0xff] }
 0x19c   : > { %v8324_v37 = vpop.permute.xlu1 %1615  ;;  %v8326_v15 = vpop.permute.xlu0 %1613  ;;  %7010 = vmatmul.mubr.msk.f32.gmra.mxu0 %vm324_vm1, %v6196_v31 }
 0x19d   : > { %10117 = vst [vmem:[#allocation13_spill] sm:$0xff] %v8324_v37  ;;  %10118 = vst [vmem:[#allocation14_spill] sm:$0xff] %v8326_v15  ;;  %v2484_v15 = vpop.f32.mrf.mxu0  ;;  %v6743_v37 = vpop.f32.mrf.mxu1 }
 0x19e   : > { %2129 = vrot.lane.b32.xlu1 %v6740_v38, %s7171_s24  ;;  %2127 = vrot.lane.b32.xlu0 %v1966_v27, %s7171_s24  ;;  %v6197_v38 = vld [vmem:[%s7246_s13 + $0x16a] sm:$0xff] }
 0x19f   : > { %7012 = vmatprep.mubr.msk.f32.mxu0 %vm324_vm1, %v6197_v38 }
 0x1a0   : > { %v8334_v39 = vpop.permute.xlu1 %1101  ;;  %v8336_v30 = vpop.permute.xlu0 %1099  ;;  %7013 = vmatmul.mubr.msk.f32.gmra.mxu0 %vm324_vm1, %v6198_v36  ;;  %v6201_v36 = vld [vmem:[%s7246_s13 + $0x19a] sm:$0xff] }
 0x1a1   : > { %10119 = vst [vmem:[#allocation15_spill] sm:$0xff] %v8334_v39  ;;  %10120 = vst [vmem:[#allocation16_spill] sm:$0xff] %v8336_v30  ;;  %v1976_v39 = vpop.f32.mrf.mxu1  ;;  %v6793_v30 = vpop.f32.mrf.mxu0  ;;  %7015 = vmatprep.mubr.msk.f32.mxu0 %vm324_vm1, %v8091_v19  ;;  %v6202_v19 = vld [vmem:[%s7246_s13 + $0x1a2] sm:$0xff]  ;;  %s7173_s13 = smov 120  }
 0x1a2   : > { %2647 = vrot.lane.b32.xlu1 %v6790_v26, %s7171_s24  ;;  %2645 = vrot.lane.b32.xlu0 %v2484_v15, %s7171_s24 }
 0x1a3   : > { %v2494_v31 = vpop.f32.mrf.mxu0  ;;  %v6746_v38 = vpop.f32.mrf.mxu1 }
 0x1a4   : > { %v8344_v27 = vpop.permute.xlu1 %1619  ;;  %v8346_v14 = vpop.permute.xlu0 %1617  ;;  %7016 = vmatmul.mubr.msk.f32.gmra.mxu0 %vm324_vm1, %v8096_v40 }
 0x1a5   : > { %10121 = vst [vmem:[#allocation17_spill] sm:$0xff] %v8344_v27  ;;  %10122 = vst [vmem:[#allocation18_spill] sm:$0xff] %v8346_v14  ;;  %7018 = vmatprep.mubr.msk.f32.mxu0 %vm324_vm1, %v6201_v36  ;;  %v1986_v14 = vpop.f32.mrf.mxu1  ;;  %v6796_v27 = vpop.f32.mrf.mxu0 }
 0x1a6   : > { %2133 = vrot.lane.b32.xlu1 %v6743_v37, %s7171_s24  ;;  %2131 = vrot.lane.b32.xlu0 %v1976_v39, %s7171_s24 }
 0x1a8   : > { %v8354_v26 = vpop.permute.xlu1 %1105  ;;  %v8356_v15 = vpop.permute.xlu0 %1103  ;;  %7019 = vmatmul.mubr.msk.f32.gmra.mxu0 %vm324_vm1, %v6202_v19 }
 0x1a9   : > { %10123 = vst [vmem:[#allocation19_spill] sm:$0xff] %v8354_v26  ;;  %10124 = vst [vmem:[#allocation20_spill] sm:$0xff] %v8356_v15  ;;  %v6749_v15 = vpop.f32.mrf.mxu1 }
 0x1aa   : > { %2651 = vrot.lane.b32.xlu1 %v6793_v30, %s7171_s24  ;;  %2649 = vrot.lane.b32.xlu0 %v2494_v31, %s7171_s24  ;;  %v2504_v31 = vpop.f32.mrf.mxu0 }
 0x1ac   : > { %v8364_v37 = vpop.permute.xlu1 %1623  ;;  %v8366_v39 = vpop.permute.xlu0 %1621 }
 0x1ad   : > { %10125 = vst [vmem:[#allocation21_spill] sm:$0xff] %v8364_v37  ;;  %10126 = vst [vmem:[#allocation22_spill] sm:$0xff] %v8366_v39  ;;  %v1996_v37 = vpop.f32.mrf.mxu1  ;;  %v6799_v19 = vpop.f32.mrf.mxu0 }
 0x1ae   : > { %2137 = vrot.lane.b32.xlu1 %v6746_v38, %s7171_s24  ;;  %2135 = vrot.lane.b32.xlu0 %v1986_v14, %s7171_s24 }
 0x1b0   : > { %v8372_v40 = vpop.permute.xlu1 %1109  ;;  %v8374_v30 = vpop.permute.xlu0 %1107 }
 0x1b1   : > { %10127 = vst [vmem:[#allocation23_spill] sm:$0xff] %v8372_v40  ;;  %10128 = vst [vmem:[#allocation24_spill] sm:$0xff] %v8374_v30  ;;  %v2514_v30 = vpop.f32.mrf.mxu0  ;;  %v6752_v40 = vpop.f32.mrf.mxu1 }
 0x1b2   : > { %2655 = vrot.lane.b32.xlu1 %v6796_v27, %s7171_s24  ;;  %2653 = vrot.lane.b32.xlu0 %v2504_v31, %s7171_s24 }
 0x1b4   : > { %v8378_v36 = vpop.permute.xlu1 %1627  ;;  %v8380_v39 = vpop.permute.xlu0 %1625 }
 0x1b5   : > { %10129 = vst [vmem:[#allocation25_spill] sm:$0xff] %v8378_v36  ;;  %10130 = vst [vmem:[#allocation26_spill] sm:$0xff] %v8380_v39  ;;  %v2006_v39 = vpop.f32.mrf.mxu1  ;;  %v6802_v36 = vpop.f32.mrf.mxu0 }
 0x1b6   : > { %2141 = vrot.lane.b32.xlu1 %v6749_v15, %s7171_s24  ;;  %2139 = vrot.lane.b32.xlu0 %v1996_v37, %s7171_s24 }
 0x1b8   : > { %v8384_v14 = vpop.permute.xlu1 %1113  ;;  %v8386_v38 = vpop.permute.xlu0 %1111 }
 0x1b9   : > { %10131 = vst [vmem:[#allocation27_spill] sm:$0xff] %v8384_v14  ;;  %10132 = vst [vmem:[#allocation28_spill] sm:$0xff] %v8386_v38  ;;  %v2524_v38 = vpop.f32.mrf.mxu0  ;;  %v6755_v14 = vpop.f32.mrf.mxu1 }
 0x1ba   : > { %2659 = vrot.lane.b32.xlu1 %v6799_v19, %s7171_s24  ;;  %2657 = vrot.lane.b32.xlu0 %v2514_v30, %s7171_s24 }
 0x1bc   : > { %v8390_v27 = vpop.permute.xlu1 %1631  ;;  %v8392_v31 = vpop.permute.xlu0 %1629 }
 0x1bd   : > { %10133 = vst [vmem:[#allocation29_spill] sm:$0xff] %v8390_v27  ;;  %10134 = vst [vmem:[#allocation30_spill] sm:$0xff] %v8392_v31  ;;  %v2016_v31 = vpop.f32.mrf.mxu1  ;;  %v6805_v27 = vpop.f32.mrf.mxu0 }
 0x1be   : > { %2145 = vrot.lane.b32.xlu1 %v6752_v40, %s7171_s24  ;;  %2143 = vrot.lane.b32.xlu0 %v2006_v39, %s7171_s24 }
 0x1c0   : > { %v8396_v15 = vpop.permute.xlu1 %1117  ;;  %v8398_v37 = vpop.permute.xlu0 %1115 }
 0x1c1   : > { %10135 = vst [vmem:[#allocation31_spill] sm:$0xff] %v8396_v15  ;;  %10136 = vst [vmem:[#allocation32_spill] sm:$0xff] %v8398_v37  ;;  %v2534_v37 = vpop.f32.mrf.mxu0  ;;  %v6758_v15 = vpop.f32.mrf.mxu1 }
 0x1c2   : > { %2663 = vrot.lane.b32.xlu1 %v6802_v36, %s7171_s24  ;;  %2661 = vrot.lane.b32.xlu0 %v2524_v38, %s7171_s24 }
 0x1c4   : > { %v8402_v30 = vpop.permute.xlu1 %1635  ;;  %v8404_v19 = vpop.permute.xlu0 %1633 }
 0x1c5   : > { %10137 = vst [vmem:[#allocation33_spill] sm:$0xff] %v8402_v30  ;;  %10138 = vst [vmem:[#allocation34_spill] sm:$0xff] %v8404_v19  ;;  %v2026_v19 = vpop.f32.mrf.mxu1  ;;  %v6808_v30 = vpop.f32.mrf.mxu0 }
 0x1c6   : > { %2149 = vrot.lane.b32.xlu1 %v6755_v14, %s7171_s24  ;;  %2147 = vrot.lane.b32.xlu0 %v2016_v31, %s7171_s24 }
 0x1c8   : > { %v8408_v39 = vpop.permute.xlu1 %1121  ;;  %v8410_v40 = vpop.permute.xlu0 %1119 }
 0x1c9   : > { %10139 = vst [vmem:[#allocation35_spill] sm:$0xff] %v8408_v39  ;;  %10140 = vst [vmem:[#allocation36_spill] sm:$0xff] %v8410_v40  ;;  %v2544_v40 = vpop.f32.mrf.mxu0  ;;  %v6761_v39 = vpop.f32.mrf.mxu1 }
 0x1ca   : > { %2667 = vrot.lane.b32.xlu1 %v6805_v27, %s7171_s24  ;;  %2665 = vrot.lane.b32.xlu0 %v2534_v37, %s7171_s24 }
 0x1cc   : > { %v8414_v36 = vpop.permute.xlu1 %1639  ;;  %v8416_v38 = vpop.permute.xlu0 %1637 }
 0x1cd   : > { %10141 = vst [vmem:[#allocation37_spill] sm:$0xff] %v8414_v36  ;;  %10142 = vst [vmem:[#allocation38_spill] sm:$0xff] %v8416_v38  ;;  %v2036_v38 = vpop.f32.mrf.mxu1  ;;  %v6811_v36 = vpop.f32.mrf.mxu0 }
 0x1ce   : > { %2153 = vrot.lane.b32.xlu1 %v6758_v15, %s7171_s24  ;;  %2151 = vrot.lane.b32.xlu0 %v2026_v19, %s7171_s24 }
 0x1d0   : > { %v8420_v14 = vpop.permute.xlu1 %1125  ;;  %v8422_v31 = vpop.permute.xlu0 %1123 }
 0x1d1   : > { %10143 = vst [vmem:[#allocation39_spill] sm:$0xff] %v8420_v14  ;;  %10144 = vst [vmem:[#allocation40_spill] sm:$0xff] %v8422_v31  ;;  %v2554_v31 = vpop.f32.mrf.mxu0  ;;  %v6764_v14 = vpop.f32.mrf.mxu1 }
 0x1d2   : > { %2671 = vrot.lane.b32.xlu1 %v6808_v30, %s7171_s24  ;;  %2669 = vrot.lane.b32.xlu0 %v2544_v40, %s7171_s24 }
 0x1d4   : > { %v8426_v27 = vpop.permute.xlu1 %1643  ;;  %v8428_v37 = vpop.permute.xlu0 %1641 }
 0x1d5   : > { %10145 = vst [vmem:[#allocation41_spill] sm:$0xff] %v8426_v27  ;;  %10146 = vst [vmem:[#allocation42_spill] sm:$0xff] %v8428_v37  ;;  %v2046_v37 = vpop.f32.mrf.mxu1  ;;  %v6814_v27 = vpop.f32.mrf.mxu0 }
 0x1d6   : > { %2157 = vrot.lane.b32.xlu1 %v6761_v39, %s7171_s24  ;;  %2155 = vrot.lane.b32.xlu0 %v2036_v38, %s7171_s24 }
 0x1d8   : > { %v8432_v15 = vpop.permute.xlu1 %1129  ;;  %v8434_v19 = vpop.permute.xlu0 %1127 }
 0x1d9   : > { %10147 = vst [vmem:[#allocation43_spill] sm:$0xff] %v8432_v15  ;;  %10148 = vst [vmem:[#allocation44_spill] sm:$0xff] %v8434_v19  ;;  %v2564_v19 = vpop.f32.mrf.mxu0  ;;  %v6767_v15 = vpop.f32.mrf.mxu1 }
 0x1da   : > { %2675 = vrot.lane.b32.xlu1 %v6811_v36, %s7171_s24  ;;  %2673 = vrot.lane.b32.xlu0 %v2554_v31, %s7171_s24 }
 0x1dc   : > { %v8438_v30 = vpop.permute.xlu1 %1647  ;;  %v8440_v40 = vpop.permute.xlu0 %1645 }
 0x1dd   : > { %10149 = vst [vmem:[#allocation45_spill] sm:$0xff] %v8438_v30  ;;  %10150 = vst [vmem:[#allocation46_spill] sm:$0xff] %v8440_v40  ;;  %v2056_v40 = vpop.f32.mrf.mxu1  ;;  %v6817_v30 = vpop.f32.mrf.mxu0 }
 0x1de   : > { %2161 = vrot.lane.b32.xlu1 %v6764_v14, %s7171_s24  ;;  %2159 = vrot.lane.b32.xlu0 %v2046_v37, %s7171_s24 }
 0x1e0   : > { %v8444_v39 = vpop.permute.xlu1 %1133  ;;  %v8446_v38 = vpop.permute.xlu0 %1131 }
 0x1e1   : > { %10151 = vst [vmem:[#allocation47_spill] sm:$0xff] %v8444_v39  ;;  %10152 = vst [vmem:[#allocation48_spill] sm:$0xff] %v8446_v38  ;;  %v2574_v38 = vpop.f32.mrf.mxu0  ;;  %v6770_v39 = vpop.f32.mrf.mxu1 }
 0x1e2   : > { %2679 = vrot.lane.b32.xlu1 %v6814_v27, %s7171_s24  ;;  %2677 = vrot.lane.b32.xlu0 %v2564_v19, %s7171_s24 }
 0x1e4   : > { %v8450_v36 = vpop.permute.xlu1 %1651  ;;  %v8452_v31 = vpop.permute.xlu0 %1649 }
 0x1e5   : > { %10153 = vst [vmem:[#allocation49_spill] sm:$0xff] %v8450_v36  ;;  %10154 = vst [vmem:[#allocation50_spill] sm:$0xff] %v8452_v31  ;;  %v2066_v31 = vpop.f32.mrf.mxu1  ;;  %v6820_v36 = vpop.f32.mrf.mxu0 }
 0x1e6   : > { %2165 = vrot.lane.b32.xlu1 %v6767_v15, %s7171_s24  ;;  %2163 = vrot.lane.b32.xlu0 %v2056_v40, %s7171_s24 }
 0x1e8   : > { %v8456_v14 = vpop.permute.xlu1 %2109  ;;  %v8458_v37 = vpop.permute.xlu0 %2107 }
 0x1e9   : > { %10155 = vst [vmem:[#allocation51_spill] sm:$0xff] %v8456_v14  ;;  %10156 = vst [vmem:[#allocation52_spill] sm:$0xff] %v8458_v37  ;;  %v2584_v37 = vpop.f32.mrf.mxu0  ;;  %v6825_v14 = vpop.f32.mrf.mxu1 }
 0x1ea   : > { %2683 = vrot.lane.b32.xlu1 %v6817_v30, %s7171_s24  ;;  %2681 = vrot.lane.b32.xlu0 %v2574_v38, %s7171_s24 }
 0x1ec   : > { %v8462_v27 = vpop.permute.xlu1 %2627  ;;  %v8464_v19 = vpop.permute.xlu0 %2625 }
 0x1ed   : > { %10157 = vst [vmem:[#allocation53_spill] sm:$0xff] %v8462_v27  ;;  %10158 = vst [vmem:[#allocation54_spill] sm:$0xff] %v8464_v19  ;;  %v2952_v19 = vpop.f32.mrf.mxu1  ;;  %v6875_v27 = vpop.f32.mrf.mxu0 }
 0x1ee   : > { %2169 = vrot.lane.b32.xlu1 %v6770_v39, %s7171_s24  ;;  %2167 = vrot.lane.b32.xlu0 %v2066_v31, %s7171_s24 }
 0x1f0   : > { %v8468_v15 = vpop.permute.xlu1 %2113  ;;  %v8470_v40 = vpop.permute.xlu0 %2111 }
 0x1f1   : > { %10159 = vst [vmem:[#allocation55_spill] sm:$0xff] %v8468_v15  ;;  %10160 = vst [vmem:[#allocation56_spill] sm:$0xff] %v8470_v40  ;;  %v3471_v40 = vpop.f32.mrf.mxu0  ;;  %v6828_v15 = vpop.f32.mrf.mxu1 }
 0x1f2   : > { %2687 = vrot.lane.b32.xlu1 %v6820_v36, %s7171_s24  ;;  %2685 = vrot.lane.b32.xlu0 %v2584_v37, %s7171_s24 }
 0x1f4   : > { %v8474_v30 = vpop.permute.xlu1 %2631  ;;  %v8476_v38 = vpop.permute.xlu0 %2629 }
 0x1f5   : > { %10161 = vst [vmem:[#allocation57_spill] sm:$0xff] %v8474_v30  ;;  %10162 = vst [vmem:[#allocation58_spill] sm:$0xff] %v8476_v38  ;;  %v2962_v38 = vpop.f32.mrf.mxu1  ;;  %v6878_v30 = vpop.f32.mrf.mxu0 }
 0x1f6   : > { %3145 = vrot.lane.b32.xlu1 %v6825_v14, %s7171_s24  ;;  %3143 = vrot.lane.b32.xlu0 %v2952_v19, %s7171_s24 }
 0x1f8   : > { %v8480_v39 = vpop.permute.xlu1 %2117  ;;  %v8482_v31 = vpop.permute.xlu0 %2115 }
 0x1f9   : > { %10163 = vst [vmem:[#allocation59_spill] sm:$0xff] %v8480_v39  ;;  %10164 = vst [vmem:[#allocation60_spill] sm:$0xff] %v8482_v31  ;;  %v3481_v31 = vpop.f32.mrf.mxu0  ;;  %v6831_v39 = vpop.f32.mrf.mxu1 }
 0x1fa   : > { %3664 = vrot.lane.b32.xlu1 %v6875_v27, %s7171_s24  ;;  %3662 = vrot.lane.b32.xlu0 %v3471_v40, %s7171_s24 }
 0x1fc   : > { %v8486_v36 = vpop.permute.xlu1 %2635  ;;  %v8488_v37 = vpop.permute.xlu0 %2633 }
 0x1fd   : > { %10165 = vst [vmem:[#allocation61_spill] sm:$0xff] %v8486_v36  ;;  %10166 = vst [vmem:[#allocation62_spill] sm:$0xff] %v8488_v37  ;;  %v2972_v37 = vpop.f32.mrf.mxu1  ;;  %v6881_v36 = vpop.f32.mrf.mxu0 }
 0x1fe   : > { %3149 = vrot.lane.b32.xlu1 %v6828_v15, %s7171_s24  ;;  %3147 = vrot.lane.b32.xlu0 %v2962_v38, %s7171_s24 }
 0x200   : > { %v8492_v14 = vpop.permute.xlu1 %2121  ;;  %v8494_v19 = vpop.permute.xlu0 %2119 }
 0x201   : > { %10167 = vst [vmem:[#allocation63_spill] sm:$0xff] %v8492_v14  ;;  %10168 = vst [vmem:[#allocation64_spill] sm:$0xff] %v8494_v19  ;;  %v3491_v19 = vpop.f32.mrf.mxu0  ;;  %v6834_v14 = vpop.f32.mrf.mxu1 }
 0x202   : > { %3668 = vrot.lane.b32.xlu1 %v6878_v30, %s7171_s24  ;;  %3666 = vrot.lane.b32.xlu0 %v3481_v31, %s7171_s24 }
 0x204   : > { %v8498_v27 = vpop.permute.xlu1 %2639  ;;  %v8500_v40 = vpop.permute.xlu0 %2637 }
 0x205   : > { %10169 = vst [vmem:[#allocation65_spill] sm:$0xff] %v8498_v27  ;;  %10170 = vst [vmem:[#allocation66_spill] sm:$0xff] %v8500_v40  ;;  %v2982_v40 = vpop.f32.mrf.mxu1  ;;  %v6884_v27 = vpop.f32.mrf.mxu0 }
 0x206   : > { %3153 = vrot.lane.b32.xlu1 %v6831_v39, %s7171_s24  ;;  %3151 = vrot.lane.b32.xlu0 %v2972_v37, %s7171_s24 }
 0x208   : > { %v8504_v15 = vpop.permute.xlu1 %2125  ;;  %v8506_v38 = vpop.permute.xlu0 %2123 }
 0x209   : > { %10171 = vst [vmem:[#allocation67_spill] sm:$0xff] %v8504_v15  ;;  %10172 = vst [vmem:[#allocation68_spill] sm:$0xff] %v8506_v38  ;;  %v3501_v38 = vpop.f32.mrf.mxu0  ;;  %v6837_v15 = vpop.f32.mrf.mxu1 }
 0x20a   : > { %3672 = vrot.lane.b32.xlu1 %v6881_v36, %s7171_s24  ;;  %3670 = vrot.lane.b32.xlu0 %v3491_v19, %s7171_s24 }
 0x20c   : > { %v8510_v30 = vpop.permute.xlu1 %2643  ;;  %v8512_v31 = vpop.permute.xlu0 %2641 }
 0x20d   : > { %10173 = vst [vmem:[#allocation69_spill] sm:$0xff] %v8510_v30  ;;  %10174 = vst [vmem:[#allocation70_spill] sm:$0xff] %v8512_v31  ;;  %v2992_v31 = vpop.f32.mrf.mxu1  ;;  %v6887_v30 = vpop.f32.mrf.mxu0 }
 0x20e   : > { %3157 = vrot.lane.b32.xlu1 %v6834_v14, %s7171_s24  ;;  %3155 = vrot.lane.b32.xlu0 %v2982_v40, %s7171_s24 }
 0x210   : > { %v8516_v39 = vpop.permute.xlu1 %2129  ;;  %v8518_v37 = vpop.permute.xlu0 %2127 }
 0x211   : > { %10175 = vst [vmem:[#allocation71_spill] sm:$0xff] %v8516_v39  ;;  %10176 = vst [vmem:[#allocation72_spill] sm:$0xff] %v8518_v37  ;;  %v3511_v37 = vpop.f32.mrf.mxu0  ;;  %v6840_v39 = vpop.f32.mrf.mxu1 }
 0x212   : > { %3676 = vrot.lane.b32.xlu1 %v6884_v27, %s7171_s24  ;;  %3674 = vrot.lane.b32.xlu0 %v3501_v38, %s7171_s24 }
 0x214   : > { %v8522_v36 = vpop.permute.xlu1 %2647  ;;  %v8524_v19 = vpop.permute.xlu0 %2645 }
 0x215   : > { %10177 = vst [vmem:[#allocation73_spill] sm:$0xff] %v8522_v36  ;;  %10178 = vst [vmem:[#allocation74_spill] sm:$0xff] %v8524_v19  ;;  %v3002_v19 = vpop.f32.mrf.mxu1  ;;  %v6890_v36 = vpop.f32.mrf.mxu0 }
 0x216   : > { %3161 = vrot.lane.b32.xlu1 %v6837_v15, %s7171_s24  ;;  %3159 = vrot.lane.b32.xlu0 %v2992_v31, %s7171_s24 }
 0x218   : > { %v8528_v14 = vpop.permute.xlu1 %2133  ;;  %v8530_v40 = vpop.permute.xlu0 %2131 }
 0x219   : > { %10179 = vst [vmem:[#allocation75_spill] sm:$0xff] %v8528_v14  ;;  %10180 = vst [vmem:[#allocation76_spill] sm:$0xff] %v8530_v40  ;;  %v3521_v40 = vpop.f32.mrf.mxu0  ;;  %v6843_v14 = vpop.f32.mrf.mxu1 }
 0x21a   : > { %3680 = vrot.lane.b32.xlu1 %v6887_v30, %s7171_s24  ;;  %3678 = vrot.lane.b32.xlu0 %v3511_v37, %s7171_s24 }
 0x21c   : > { %v8534_v27 = vpop.permute.xlu1 %2651  ;;  %v8536_v38 = vpop.permute.xlu0 %2649 }
 0x21d   : > { %10181 = vst [vmem:[#allocation77_spill] sm:$0xff] %v8534_v27  ;;  %10182 = vst [vmem:[#allocation78_spill] sm:$0xff] %v8536_v38  ;;  %v3012_v38 = vpop.f32.mrf.mxu1  ;;  %v6893_v27 = vpop.f32.mrf.mxu0 }
 0x21e   : > { %3165 = vrot.lane.b32.xlu1 %v6840_v39, %s7171_s24  ;;  %3163 = vrot.lane.b32.xlu0 %v3002_v19, %s7171_s24 }
 0x220   : > { %v8540_v15 = vpop.permute.xlu1 %2137  ;;  %v8542_v31 = vpop.permute.xlu0 %2135 }
 0x221   : > { %10183 = vst [vmem:[#allocation79_spill] sm:$0xff] %v8540_v15  ;;  %10184 = vst [vmem:[#allocation80_spill] sm:$0xff] %v8542_v31  ;;  %v3531_v31 = vpop.f32.mrf.mxu0  ;;  %v6846_v15 = vpop.f32.mrf.mxu1 }
 0x222   : > { %3684 = vrot.lane.b32.xlu1 %v6890_v36, %s7171_s24  ;;  %3682 = vrot.lane.b32.xlu0 %v3521_v40, %s7171_s24 }
 0x224   : > { %v8546_v30 = vpop.permute.xlu1 %2655  ;;  %v8548_v37 = vpop.permute.xlu0 %2653 }
 0x225   : > { %10185 = vst [vmem:[#allocation81_spill] sm:$0xff] %v8546_v30  ;;  %10186 = vst [vmem:[#allocation82_spill] sm:$0xff] %v8548_v37  ;;  %v3022_v37 = vpop.f32.mrf.mxu1  ;;  %v6896_v30 = vpop.f32.mrf.mxu0 }
 0x226   : > { %3169 = vrot.lane.b32.xlu1 %v6843_v14, %s7171_s24  ;;  %3167 = vrot.lane.b32.xlu0 %v3012_v38, %s7171_s24 }
 0x228   : > { %v8552_v39 = vpop.permute.xlu1 %2141  ;;  %v8554_v19 = vpop.permute.xlu0 %2139 }
 0x229   : > { %10187 = vst [vmem:[#allocation83_spill] sm:$0xff] %v8552_v39  ;;  %10188 = vst [vmem:[#allocation84_spill] sm:$0xff] %v8554_v19  ;;  %v3541_v19 = vpop.f32.mrf.mxu0  ;;  %v6849_v39 = vpop.f32.mrf.mxu1 }
 0x22a   : > { %3688 = vrot.lane.b32.xlu1 %v6893_v27, %s7171_s24  ;;  %3686 = vrot.lane.b32.xlu0 %v3531_v31, %s7171_s24 }
 0x22c   : > { %v8558_v36 = vpop.permute.xlu1 %2659  ;;  %v8560_v40 = vpop.permute.xlu0 %2657 }
 0x22d   : > { %10189 = vst [vmem:[#allocation85_spill] sm:$0xff] %v8558_v36  ;;  %10190 = vst [vmem:[#allocation86_spill] sm:$0xff] %v8560_v40  ;;  %v3032_v40 = vpop.f32.mrf.mxu1  ;;  %v6899_v36 = vpop.f32.mrf.mxu0 }
 0x22e   : > { %3173 = vrot.lane.b32.xlu1 %v6846_v15, %s7171_s24  ;;  %3171 = vrot.lane.b32.xlu0 %v3022_v37, %s7171_s24 }
 0x230   : > { %v8564_v14 = vpop.permute.xlu1 %2145  ;;  %v8566_v38 = vpop.permute.xlu0 %2143 }
 0x231   : > { %10191 = vst [vmem:[#allocation87_spill] sm:$0xff] %v8564_v14  ;;  %10192 = vst [vmem:[#allocation88_spill] sm:$0xff] %v8566_v38  ;;  %v3551_v38 = vpop.f32.mrf.mxu0  ;;  %v6852_v14 = vpop.f32.mrf.mxu1 }
 0x232   : > { %3692 = vrot.lane.b32.xlu1 %v6896_v30, %s7171_s24  ;;  %3690 = vrot.lane.b32.xlu0 %v3541_v19, %s7171_s24 }
 0x234   : > { %v8570_v27 = vpop.permute.xlu1 %2663  ;;  %v8572_v31 = vpop.permute.xlu0 %2661 }
 0x235   : > { %10193 = vst [vmem:[#allocation89_spill] sm:$0xff] %v8570_v27  ;;  %10194 = vst [vmem:[#allocation90_spill] sm:$0xff] %v8572_v31  ;;  %v3042_v31 = vpop.f32.mrf.mxu1  ;;  %v6902_v27 = vpop.f32.mrf.mxu0 }
 0x236   : > { %3177 = vrot.lane.b32.xlu1 %v6849_v39, %s7171_s24  ;;  %3175 = vrot.lane.b32.xlu0 %v3032_v40, %s7171_s24 }
 0x238   : > { %v8576_v15 = vpop.permute.xlu1 %2149  ;;  %v8578_v37 = vpop.permute.xlu0 %2147 }
 0x239   : > { %10195 = vst [vmem:[#allocation91_spill] sm:$0xff] %v8576_v15  ;;  %10196 = vst [vmem:[#allocation92_spill] sm:$0xff] %v8578_v37  ;;  %v3561_v37 = vpop.f32.mrf.mxu0  ;;  %v6855_v15 = vpop.f32.mrf.mxu1 }
 0x23a   : > { %3696 = vrot.lane.b32.xlu1 %v6899_v36, %s7171_s24  ;;  %3694 = vrot.lane.b32.xlu0 %v3551_v38, %s7171_s24 }
 0x23c   : > { %v8582_v30 = vpop.permute.xlu1 %2667  ;;  %v8584_v19 = vpop.permute.xlu0 %2665 }
 0x23d   : > { %10197 = vst [vmem:[#allocation93_spill] sm:$0xff] %v8582_v30  ;;  %10198 = vst [vmem:[#allocation94_spill] sm:$0xff] %v8584_v19  ;;  %v3052_v19 = vpop.f32.mrf.mxu1  ;;  %v6905_v30 = vpop.f32.mrf.mxu0 }
 0x23e   : > { %3181 = vrot.lane.b32.xlu1 %v6852_v14, %s7171_s24  ;;  %3179 = vrot.lane.b32.xlu0 %v3042_v31, %s7171_s24 }
 0x240   : > { %v8588_v39 = vpop.permute.xlu1 %2153  ;;  %v8590_v40 = vpop.permute.xlu0 %2151 }
 0x241   : > { %10199 = vst [vmem:[#allocation95_spill] sm:$0xff] %v8588_v39  ;;  %10200 = vst [vmem:[#allocation96_spill] sm:$0xff] %v8590_v40  ;;  %v3571_v40 = vpop.f32.mrf.mxu0  ;;  %v6858_v39 = vpop.f32.mrf.mxu1 }
 0x242   : > { %3700 = vrot.lane.b32.xlu1 %v6902_v27, %s7171_s24  ;;  %3698 = vrot.lane.b32.xlu0 %v3561_v37, %s7171_s24 }
 0x244   : > { %v8594_v36 = vpop.permute.xlu1 %2671  ;;  %v8596_v38 = vpop.permute.xlu0 %2669 }
 0x245   : > { %10201 = vst [vmem:[#allocation97_spill] sm:$0xff] %v8594_v36  ;;  %10202 = vst [vmem:[#allocation98_spill] sm:$0xff] %v8596_v38  ;;  %v3062_v38 = vpop.f32.mrf.mxu1  ;;  %v6908_v36 = vpop.f32.mrf.mxu0 }
 0x246   : > { %3185 = vrot.lane.b32.xlu1 %v6855_v15, %s7171_s24  ;;  %3183 = vrot.lane.b32.xlu0 %v3052_v19, %s7171_s24 }
 0x248   : > { %v8600_v14 = vpop.permute.xlu1 %2157  ;;  %v8602_v31 = vpop.permute.xlu0 %2155 }
 0x249   : > { %10203 = vst [vmem:[#allocation99_spill] sm:$0xff] %v8600_v14  ;;  %10204 = vst [vmem:[#allocation100_spill] sm:$0xff] %v8602_v31  ;;  %v3581_v31 = vpop.f32.mrf.mxu0  ;;  %v6861_v14 = vpop.f32.mrf.mxu1 }
 0x24a   : > { %3704 = vrot.lane.b32.xlu1 %v6905_v30, %s7171_s24  ;;  %3702 = vrot.lane.b32.xlu0 %v3571_v40, %s7171_s24 }
 0x24c   : > { %v8606_v27 = vpop.permute.xlu1 %2675  ;;  %v8608_v37 = vpop.permute.xlu0 %2673 }
 0x24d   : > { %10205 = vst [vmem:[#allocation101_spill] sm:$0xff] %v8606_v27  ;;  %10206 = vst [vmem:[#allocation102_spill] sm:$0xff] %v8608_v37  ;;  %v3072_v37 = vpop.f32.mrf.mxu1  ;;  %v6911_v27 = vpop.f32.mrf.mxu0 }
 0x24e   : > { %3189 = vrot.lane.b32.xlu1 %v6858_v39, %s7171_s24  ;;  %3187 = vrot.lane.b32.xlu0 %v3062_v38, %s7171_s24 }
 0x250   : > { %v8612_v15 = vpop.permute.xlu1 %2161  ;;  %v8614_v19 = vpop.permute.xlu0 %2159 }
 0x251   : > { %10207 = vst [vmem:[#allocation103_spill] sm:$0xff] %v8612_v15  ;;  %10208 = vst [vmem:[#allocation104_spill] sm:$0xff] %v8614_v19  ;;  %v3591_v19 = vpop.f32.mrf.mxu0  ;;  %v6864_v15 = vpop.f32.mrf.mxu1 }
 0x252   : > { %3708 = vrot.lane.b32.xlu1 %v6908_v36, %s7171_s24  ;;  %3706 = vrot.lane.b32.xlu0 %v3581_v31, %s7171_s24 }
 0x254   : > { %v8618_v30 = vpop.permute.xlu1 %2679  ;;  %v8620_v40 = vpop.permute.xlu0 %2677 }
 0x255   : > { %10209 = vst [vmem:[#allocation105_spill] sm:$0xff] %v8618_v30  ;;  %10210 = vst [vmem:[#allocation106_spill] sm:$0xff] %v8620_v40  ;;  %v3082_v40 = vpop.f32.mrf.mxu1  ;;  %v6914_v30 = vpop.f32.mrf.mxu0 }
 0x256   : > { %3193 = vrot.lane.b32.xlu1 %v6861_v14, %s7171_s24  ;;  %3191 = vrot.lane.b32.xlu0 %v3072_v37, %s7171_s24 }
 0x258   : > { %v8624_v39 = vpop.permute.xlu1 %2165  ;;  %v8626_v38 = vpop.permute.xlu0 %2163 }
 0x259   : > { %10211 = vst [vmem:[#allocation107_spill] sm:$0xff] %v8624_v39  ;;  %10212 = vst [vmem:[#allocation108_spill] sm:$0xff] %v8626_v38  ;;  %v3601_v38 = vpop.f32.mrf.mxu0  ;;  %v6867_v39 = vpop.f32.mrf.mxu1 }
 0x25a   : > { %3712 = vrot.lane.b32.xlu1 %v6911_v27, %s7171_s24  ;;  %3710 = vrot.lane.b32.xlu0 %v3591_v19, %s7171_s24 }
 0x25c   : > { %v8630_v36 = vpop.permute.xlu1 %2683  ;;  %v8632_v31 = vpop.permute.xlu0 %2681 }
 0x25d   : > { %10213 = vst [vmem:[#allocation109_spill] sm:$0xff] %v8630_v36  ;;  %10214 = vst [vmem:[#allocation110_spill] sm:$0xff] %v8632_v31  ;;  %v3092_v31 = vpop.f32.mrf.mxu1  ;;  %v6917_v36 = vpop.f32.mrf.mxu0 }
 0x25e   : > { %3197 = vrot.lane.b32.xlu1 %v6864_v15, %s7171_s24  ;;  %3195 = vrot.lane.b32.xlu0 %v3082_v40, %s7171_s24 }
 0x260   : > { %v8636_v14 = vpop.permute.xlu1 %2169  ;;  %v8638_v37 = vpop.permute.xlu0 %2167 }
 0x261   : > { %10215 = vst [vmem:[#allocation111_spill] sm:$0xff] %v8636_v14  ;;  %10216 = vst [vmem:[#allocation112_spill] sm:$0xff] %v8638_v37  ;;  %v3611_v37 = vpop.f32.mrf.mxu0  ;;  %v6870_v14 = vpop.f32.mrf.mxu1 }
 0x262   : > { %3716 = vrot.lane.b32.xlu1 %v6914_v30, %s7171_s24  ;;  %3714 = vrot.lane.b32.xlu0 %v3601_v38, %s7171_s24 }
 0x264   : > { %v8642_v27 = vpop.permute.xlu1 %2687  ;;  %v8644_v19 = vpop.permute.xlu0 %2685 }
 0x265   : > { %10217 = vst [vmem:[#allocation113_spill] sm:$0xff] %v8642_v27  ;;  %10218 = vst [vmem:[#allocation114_spill] sm:$0xff] %v8644_v19  ;;  %v3102_v19 = vpop.f32.mrf.mxu1  ;;  %v6920_v27 = vpop.f32.mrf.mxu0 }
 0x266   : > { %3201 = vrot.lane.b32.xlu1 %v6867_v39, %s7171_s24  ;;  %3199 = vrot.lane.b32.xlu0 %v3092_v31, %s7171_s24 }
 0x268   : > { %v8648_v15 = vpop.permute.xlu1 %3145  ;;  %v8650_v40 = vpop.permute.xlu0 %3143 }
 0x269   : > { %10219 = vst [vmem:[#allocation115_spill] sm:$0xff] %v8648_v15  ;;  %10220 = vst [vmem:[#allocation116_spill] sm:$0xff] %v8650_v40  ;;  %v3621_v40 = vpop.f32.mrf.mxu0  ;;  %v6925_v15 = vpop.f32.mrf.mxu1 }
 0x26a   : > { %3720 = vrot.lane.b32.xlu1 %v6917_v36, %s7171_s24  ;;  %3718 = vrot.lane.b32.xlu0 %v3611_v37, %s7171_s24 }
 0x26c   : > { %v8654_v30 = vpop.permute.xlu1 %3664  ;;  %v8656_v38 = vpop.permute.xlu0 %3662 }
 0x26d   : > { %10221 = vst [vmem:[#allocation117_spill] sm:$0xff] %v8654_v30  ;;  %10222 = vst [vmem:[#allocation118_spill] sm:$0xff] %v8656_v38  ;;  %v3989_v38 = vpop.f32.mrf.mxu1  ;;  %v6975_v30 = vpop.f32.mrf.mxu0 }
 0x26e   : > { %3205 = vrot.lane.b32.xlu1 %v6870_v14, %s7171_s24  ;;  %3203 = vrot.lane.b32.xlu0 %v3102_v19, %s7171_s24 }
 0x270   : > { %v8660_v39 = vpop.permute.xlu1 %3149  ;;  %v8662_v31 = vpop.permute.xlu0 %3147 }
 0x271   : > { %10223 = vst [vmem:[#allocation119_spill] sm:$0xff] %v8660_v39  ;;  %10224 = vst [vmem:[#allocation120_spill] sm:$0xff] %v8662_v31  ;;  %v4507_v31 = vpop.f32.mrf.mxu0  ;;  %v6928_v39 = vpop.f32.mrf.mxu1 }
 0x272   : > { %3724 = vrot.lane.b32.xlu1 %v6920_v27, %s7171_s24  ;;  %3722 = vrot.lane.b32.xlu0 %v3621_v40, %s7171_s24 }
 0x274   : > { %v8666_v36 = vpop.permute.xlu1 %3668  ;;  %v8668_v37 = vpop.permute.xlu0 %3666 }
 0x275   : > { %10225 = vst [vmem:[#allocation121_spill] sm:$0xff] %v8666_v36  ;;  %10226 = vst [vmem:[#allocation122_spill] sm:$0xff] %v8668_v37  ;;  %v3999_v37 = vpop.f32.mrf.mxu1  ;;  %v6978_v36 = vpop.f32.mrf.mxu0 }
 0x276   : > { %4182 = vrot.lane.b32.xlu1 %v6925_v15, %s7171_s24  ;;  %4180 = vrot.lane.b32.xlu0 %v3989_v38, %s7171_s24 }
 0x278   : > { %v8672_v14 = vpop.permute.xlu1 %3153  ;;  %v8674_v19 = vpop.permute.xlu0 %3151 }
 0x279   : > { %10227 = vst [vmem:[#allocation123_spill] sm:$0xff] %v8672_v14  ;;  %10228 = vst [vmem:[#allocation124_spill] sm:$0xff] %v8674_v19  ;;  %v4517_v19 = vpop.f32.mrf.mxu0  ;;  %v6931_v14 = vpop.f32.mrf.mxu1 }
 0x27a   : > { %4700 = vrot.lane.b32.xlu1 %v6975_v30, %s7171_s24  ;;  %4698 = vrot.lane.b32.xlu0 %v4507_v31, %s7171_s24 }
 0x27c   : > { %v8678_v27 = vpop.permute.xlu1 %3672  ;;  %v8680_v40 = vpop.permute.xlu0 %3670 }
 0x27d   : > { %10229 = vst [vmem:[#allocation125_spill] sm:$0xff] %v8678_v27  ;;  %10230 = vst [vmem:[#allocation126_spill] sm:$0xff] %v8680_v40  ;;  %v4009_v40 = vpop.f32.mrf.mxu1  ;;  %v6981_v27 = vpop.f32.mrf.mxu0 }
 0x27e   : > { %4186 = vrot.lane.b32.xlu1 %v6928_v39, %s7171_s24  ;;  %4184 = vrot.lane.b32.xlu0 %v3999_v37, %s7171_s24 }
 0x27f   : > { %v6934_v39 = vpop.f32.mrf.mxu1 }
 0x280   : > { %v8684_v15 = vpop.permute.xlu1 %3157  ;;  %v8686_v38 = vpop.permute.xlu0 %3155 }
 0x281   : > { %10231 = vst [vmem:[#allocation127_spill] sm:$0xff] %v8684_v15  ;;  %10232 = vst [vmem:[#allocation128_spill] sm:$0xff] %v8686_v38  ;;  %v4527_v15 = vpop.f32.mrf.mxu0 }
 0x282   : > { %4704 = vrot.lane.b32.xlu1 %v6978_v36, %s7171_s24  ;;  %4702 = vrot.lane.b32.xlu0 %v4517_v19, %s7171_s24  ;;  %v4019_v36 = vpop.f32.mrf.mxu1 }
 0x284   : > { %v8690_v30 = vpop.permute.xlu1 %3676  ;;  %v8692_v31 = vpop.permute.xlu0 %3674 }
 0x285   : > { %10233 = vst [vmem:[#allocation129_spill] sm:$0xff] %v8690_v30  ;;  %10234 = vst [vmem:[#allocation130_spill] sm:$0xff] %v8692_v31  ;;  %v6984_v30 = vpop.f32.mrf.mxu0  ;;  %v6937_v26 = vpop.f32.mrf.mxu1 }
 0x286   : > { %4190 = vrot.lane.b32.xlu1 %v6931_v14, %s7171_s24  ;;  %4188 = vrot.lane.b32.xlu0 %v4009_v40, %s7171_s24 }
 0x288   : > { %v8696_v37 = vpop.permute.xlu1 %3161  ;;  %v8698_v38 = vpop.permute.xlu0 %3159 }
 0x289   : > { %10235 = vst [vmem:[#allocation131_spill] sm:$0xff] %v8696_v37  ;;  %10236 = vst [vmem:[#allocation132_spill] sm:$0xff] %v8698_v38  ;;  %v4537_v38 = vpop.f32.mrf.mxu0  ;;  %v4029_v37 = vpop.f32.mrf.mxu1 }
 0x28a   : > { %4708 = vrot.lane.b32.xlu1 %v6981_v27, %s7171_s24  ;;  %4706 = vrot.lane.b32.xlu0 %v4527_v15, %s7171_s24 }
 0x28b   : > { %v6940_v27 = vpop.f32.mrf.mxu1 }
 0x28c   : > { %v8702_v19 = vpop.permute.xlu1 %3680  ;;  %v8704_v31 = vpop.permute.xlu0 %3678 }
 0x28d   : > { %10237 = vst [vmem:[#allocation133_spill] sm:$0xff] %v8702_v19  ;;  %10238 = vst [vmem:[#allocation134_spill] sm:$0xff] %v8704_v31  ;;  %v6987_v19 = vpop.f32.mrf.mxu0 }
 0x28e   : > { %4194 = vrot.lane.b32.xlu1 %v6934_v39, %s7171_s24  ;;  %4192 = vrot.lane.b32.xlu0 %v4019_v36, %s7171_s24  ;;  %v4039_v39 = vpop.f32.mrf.mxu1 }
 0x290   : > { %v8708_v14 = vpop.permute.xlu1 %3165  ;;  %v8710_v40 = vpop.permute.xlu0 %3163 }
 0x291   : > { %10239 = vst [vmem:[#allocation135_spill] sm:$0xff] %v8708_v14  ;;  %10240 = vst [vmem:[#allocation136_spill] sm:$0xff] %v8710_v40  ;;  %v4547_v14 = vpop.f32.mrf.mxu0  ;;  %v6943_v13 = vpop.f32.mrf.mxu1 }
 0x292   : > { %4712 = vrot.lane.b32.xlu1 %v6984_v30, %s7171_s24  ;;  %4710 = vrot.lane.b32.xlu0 %v4537_v38, %s7171_s24 }
 0x294   : > { %v8714_v15 = vpop.permute.xlu1 %3684  ;;  %v8716_v31 = vpop.permute.xlu0 %3682 }
 0x295   : > { %10241 = vst [vmem:[#allocation137_spill] sm:$0xff] %v8714_v15  ;;  %10242 = vst [vmem:[#allocation138_spill] sm:$0xff] %v8716_v31  ;;  %v6990_v31 = vpop.f32.mrf.mxu0  ;;  %v4049_v15 = vpop.f32.mrf.mxu1 }
 0x296   : > { %4198 = vrot.lane.b32.xlu1 %v6937_v26, %s7171_s24  ;;  %4196 = vrot.lane.b32.xlu0 %v4029_v37, %s7171_s24 }
 0x297   : > { %v6946_v26 = vpop.f32.mrf.mxu1 }
 0x298   : > { %v8720_v36 = vpop.permute.xlu1 %3169  ;;  %v8722_v40 = vpop.permute.xlu0 %3167 }
 0x299   : > { %10243 = vst [vmem:[#allocation139_spill] sm:$0xff] %v8720_v36  ;;  %10244 = vst [vmem:[#allocation140_spill] sm:$0xff] %v8722_v40  ;;  %v4557_v36 = vpop.f32.mrf.mxu0 }
 0x29a   : > { %4716 = vrot.lane.b32.xlu1 %v6987_v19, %s7171_s24  ;;  %4714 = vrot.lane.b32.xlu0 %v4547_v14, %s7171_s24  ;;  %v4059_v19 = vpop.f32.mrf.mxu1 }
 0x29c   : > { %v8726_v38 = vpop.permute.xlu1 %3688  ;;  %v8728_v30 = vpop.permute.xlu0 %3686 }
 0x29d   : > { %10245 = vst [vmem:[#allocation141_spill] sm:$0xff] %v8726_v38  ;;  %10246 = vst [vmem:[#allocation142_spill] sm:$0xff] %v8728_v30  ;;  %v6993_v30 = vpop.f32.mrf.mxu0  ;;  %v6949_v42 = vpop.f32.mrf.mxu1 }
 0x29e   : > { %4202 = vrot.lane.b32.xlu1 %v6940_v27, %s7171_s24  ;;  %4200 = vrot.lane.b32.xlu0 %v4039_v39, %s7171_s24 }
 0x2a0   : > { %v8732_v37 = vpop.permute.xlu1 %3173  ;;  %v8734_v40 = vpop.permute.xlu0 %3171 }
 0x2a1   : > { %10247 = vst [vmem:[#allocation143_spill] sm:$0xff] %v8732_v37  ;;  %10248 = vst [vmem:[#allocation144_spill] sm:$0xff] %v8734_v40  ;;  %v4567_v37 = vpop.f32.mrf.mxu0  ;;  %v4069_v40 = vpop.f32.mrf.mxu1 }
 0x2a2   : > { %4720 = vrot.lane.b32.xlu1 %v6990_v31, %s7171_s24  ;;  %4718 = vrot.lane.b32.xlu0 %v4557_v36, %s7171_s24 }
 0x2a3   : > { %v6952_v31 = vpop.f32.mrf.mxu1 }
 0x2a4   : > { %v8738_v14 = vpop.permute.xlu1 %3692  ;;  %v8740_v38 = vpop.permute.xlu0 %3690 }
 0x2a5   : > { %10249 = vst [vmem:[#allocation145_spill] sm:$0xff] %v8738_v14  ;;  %10250 = vst [vmem:[#allocation146_spill] sm:$0xff] %v8740_v38  ;;  %v6996_v38 = vpop.f32.mrf.mxu0 }
 0x2a6   : > { %4206 = vrot.lane.b32.xlu1 %v6943_v13, %s7171_s24  ;;  %4204 = vrot.lane.b32.xlu0 %v4049_v15, %s7171_s24  ;;  %v4079_v13 = vpop.f32.mrf.mxu1 }
 0x2a8   : > { %v8744_v27 = vpop.permute.xlu1 %3177  ;;  %v8746_v39 = vpop.permute.xlu0 %3175 }
 0x2a9   : > { %10251 = vst [vmem:[#allocation147_spill] sm:$0xff] %v8744_v27  ;;  %10252 = vst [vmem:[#allocation148_spill] sm:$0xff] %v8746_v39  ;;  %v4577_v27 = vpop.f32.mrf.mxu0  ;;  %v6955_v18 = vpop.f32.mrf.mxu1 }
 0x2aa   : > { %4724 = vrot.lane.b32.xlu1 %v6993_v30, %s7171_s24  ;;  %4722 = vrot.lane.b32.xlu0 %v4567_v37, %s7171_s24 }
 0x2ac   : > { %v8750_v36 = vpop.permute.xlu1 %3696  ;;  %v8752_v14 = vpop.permute.xlu0 %3694 }
 0x2ad   : > { %10253 = vst [vmem:[#allocation149_spill] sm:$0xff] %v8750_v36  ;;  %10254 = vst [vmem:[#allocation150_spill] sm:$0xff] %v8752_v14  ;;  %v6999_v14 = vpop.f32.mrf.mxu0  ;;  %v4089_v36 = vpop.f32.mrf.mxu1 }
 0x2ae   : > { %4210 = vrot.lane.b32.xlu1 %v6946_v26, %s7171_s24  ;;  %4208 = vrot.lane.b32.xlu0 %v4059_v19, %s7171_s24 }
 0x2af   : > { %v6958_v26 = vpop.f32.mrf.mxu1 }
 0x2b0   : > { %v8756_v15 = vpop.permute.xlu1 %3181  ;;  %v8758_v39 = vpop.permute.xlu0 %3179 }
 0x2b1   : > { %10255 = vst [vmem:[#allocation151_spill] sm:$0xff] %v8756_v15  ;;  %10256 = vst [vmem:[#allocation152_spill] sm:$0xff] %v8758_v39  ;;  %v4587_v15 = vpop.f32.mrf.mxu0 }
 0x2b2   : > { %4728 = vrot.lane.b32.xlu1 %v6996_v38, %s7171_s24  ;;  %4726 = vrot.lane.b32.xlu0 %v4577_v27, %s7171_s24  ;;  %v4099_v38 = vpop.f32.mrf.mxu1 }
 0x2b4   : > { %v8762_v30 = vpop.permute.xlu1 %3700  ;;  %v8764_v37 = vpop.permute.xlu0 %3698 }
 0x2b5   : > { %10257 = vst [vmem:[#allocation153_spill] sm:$0xff] %v8762_v30  ;;  %10258 = vst [vmem:[#allocation154_spill] sm:$0xff] %v8764_v37  ;;  %v7002_v30 = vpop.f32.mrf.mxu0 }
 0x2b6   : > { %4214 = vrot.lane.b32.xlu1 %v6949_v42, %s7171_s24  ;;  %4212 = vrot.lane.b32.xlu0 %v4069_v40, %s7171_s24  ;;  %v6961_v42 = vpop.f32.mrf.mxu1 }
 0x2b8   : > { %v8768_v19 = vpop.permute.xlu1 %3185  ;;  %v8770_v39 = vpop.permute.xlu0 %3183 }
 0x2b9   : > { %10259 = vst [vmem:[#allocation155_spill] sm:$0xff] %v8768_v19  ;;  %10260 = vst [vmem:[#allocation156_spill] sm:$0xff] %v8770_v39  ;;  %v4597_v39 = vpop.f32.mrf.mxu0 }
 0x2ba   : > { %4732 = vrot.lane.b32.xlu1 %v6999_v14, %s7171_s24  ;;  %4730 = vrot.lane.b32.xlu0 %v4587_v15, %s7171_s24  ;;  %v4109_v14 = vpop.f32.mrf.mxu1 }
 0x2bc   : > { %v8774_v27 = vpop.permute.xlu1 %3704  ;;  %v8776_v37 = vpop.permute.xlu0 %3702 }
 0x2bd   : > { %10261 = vst [vmem:[#allocation157_spill] sm:$0xff] %v8774_v27  ;;  %10262 = vst [vmem:[#allocation158_spill] sm:$0xff] %v8776_v37  ;;  %v7005_v37 = vpop.f32.mrf.mxu0 }
 0x2be   : > { %4218 = vrot.lane.b32.xlu1 %v6952_v31, %s7171_s24  ;;  %4216 = vrot.lane.b32.xlu0 %v4079_v13, %s7171_s24  ;;  %v6964_v31 = vpop.f32.mrf.mxu1 }
 0x2c0   : > { %v8780_v40 = vpop.permute.xlu1 %3189  ;;  %v8782_v19 = vpop.permute.xlu0 %3187 }
 0x2c1   : > { %10263 = vst [vmem:[#allocation159_spill] sm:$0xff] %v8780_v40  ;;  %10264 = vst [vmem:[#allocation160_spill] sm:$0xff] %v8782_v19  ;;  %v4607_v19 = vpop.f32.mrf.mxu0 }
 0x2c2   : > { %4736 = vrot.lane.b32.xlu1 %v7002_v30, %s7171_s24  ;;  %4734 = vrot.lane.b32.xlu0 %v4597_v39, %s7171_s24  ;;  %v4119_v39 = vpop.f32.mrf.mxu1 }
 0x2c4   : > { %v8786_v15 = vpop.permute.xlu1 %3708  ;;  %v8788_v27 = vpop.permute.xlu0 %3706 }
 0x2c5   : > { %10265 = vst [vmem:[#allocation161_spill] sm:$0xff] %v8786_v15  ;;  %10266 = vst [vmem:[#allocation162_spill] sm:$0xff] %v8788_v27  ;;  %v7008_v27 = vpop.f32.mrf.mxu0 }
 0x2c6   : > { %4222 = vrot.lane.b32.xlu1 %v6955_v18, %s7171_s24  ;;  %4220 = vrot.lane.b32.xlu0 %v4089_v36, %s7171_s24  ;;  %v6967_v18 = vpop.f32.mrf.mxu1 }
 0x2c8   : > { %v8792_v13 = vpop.permute.xlu1 %3193  ;;  %v8794_v40 = vpop.permute.xlu0 %3191 }
 0x2c9   : > { %10267 = vst [vmem:[#allocation163_spill] sm:$0xff] %v8792_v13  ;;  %10268 = vst [vmem:[#allocation164_spill] sm:$0xff] %v8794_v40  ;;  %v4617_v40 = vpop.f32.mrf.mxu0 }
 0x2ca   : > { %4226 = vrot.lane.b32.xlu1 %v6958_v26, %s7171_s24  ;;  %4738 = vrot.lane.b32.xlu0 %v4607_v19, %s7171_s24  ;;  %v4129_v26 = vpop.f32.mrf.mxu1 }
 0x2cc   : > { %v8798_v30 = vpop.permute.xlu1 %3712  ;;  %v8800_v15 = vpop.permute.xlu0 %3710 }
 0x2cd   : > { %10269 = vst [vmem:[#allocation165_spill] sm:$0xff] %v8798_v30  ;;  %10270 = vst [vmem:[#allocation166_spill] sm:$0xff] %v8800_v15  ;;  %v7011_v15 = vpop.f32.mrf.mxu0 }
 0x2ce   : > { %4230 = vrot.lane.b32.xlu1 %v6961_v42, %s7171_s24  ;;  %4224 = vrot.lane.b32.xlu0 %v4099_v38, %s7171_s24  ;;  %v6970_v38 = vpop.f32.mrf.mxu1 }
 0x2d0   : > { %v8804_v36 = vpop.permute.xlu1 %3197  ;;  %v8806_v13 = vpop.permute.xlu0 %3195 }
 0x2d1   : > { %10271 = vst [vmem:[#allocation167_spill] sm:$0xff] %v8804_v36  ;;  %10272 = vst [vmem:[#allocation168_spill] sm:$0xff] %v8806_v13  ;;  %v4627_v13 = vpop.f32.mrf.mxu0 }
 0x2d2   : > { %4234 = vrot.lane.b32.xlu1 %v6964_v31, %s7171_s24  ;;  %4228 = vrot.lane.b32.xlu0 %v4109_v14, %s7171_s24 }
 0x2d4   : > { %v8810_v19 = vpop.permute.xlu1 %3716  ;;  %v8812_v30 = vpop.permute.xlu0 %3714 }
 0x2d5   : > { %10273 = vst [vmem:[#allocation169_spill] sm:$0xff] %v8810_v19  ;;  %10274 = vst [vmem:[#allocation170_spill] sm:$0xff] %v8812_v30  ;;  %v4139_v19 = vpop.f32.mrf.mxu1  ;;  %v7014_v30 = vpop.f32.mrf.mxu0 }
 0x2d6   : > { %4238 = vrot.lane.b32.xlu1 %v6967_v18, %s7171_s24  ;;  %4232 = vrot.lane.b32.xlu0 %v4119_v39, %s7171_s24 }
 0x2d8   : > { %v8816_v42 = vpop.permute.xlu1 %3201  ;;  %v8818_v36 = vpop.permute.xlu0 %3199 }
 0x2d9   : > { %10275 = vst [vmem:[#allocation171_spill] sm:$0xff] %v8816_v42  ;;  %10276 = vst [vmem:[#allocation172_spill] sm:$0xff] %v8818_v36  ;;  %v4637_v42 = vpop.f32.mrf.mxu0 }
 0x2da   : > { %4242 = vrot.lane.b32.xlu1 %v6970_v38, %s7171_s24  ;;  %4236 = vrot.lane.b32.xlu0 %v4129_v26, %s7171_s24 }
 0x2dc   : > { %v8822_v14 = vpop.permute.xlu1 %3720  ;;  %v8824_v31 = vpop.permute.xlu0 %3718 }
 0x2dd   : > { %10277 = vst [vmem:[#allocation173_spill] sm:$0xff] %v8822_v14  ;;  %10278 = vst [vmem:[#allocation174_spill] sm:$0xff] %v8824_v31  ;;  %v7017_v14 = vpop.f32.mrf.mxu0 }
 0x2de   : > { %4740 = vrot.lane.b32.xlu1 %v7005_v37, %s7171_s24  ;;  %4240 = vrot.lane.b32.xlu0 %v4139_v19, %s7171_s24 }
 0x2e0   : > { %v8828_v39 = vpop.permute.xlu1 %3205  ;;  %v8830_v18 = vpop.permute.xlu0 %3203 }
 0x2e1   : > { %10279 = vst [vmem:[#allocation175_spill] sm:$0xff] %v8828_v39  ;;  %10280 = vst [vmem:[#allocation176_spill] sm:$0xff] %v8830_v18  ;;  %v4647_v39 = vpop.f32.mrf.mxu0 }
 0x2e2   : > { %4744 = vrot.lane.b32.xlu1 %v7008_v27, %s7171_s24  ;;  %4742 = vrot.lane.b32.xlu0 %v4617_v40, %s7171_s24 }
 0x2e4   : > { %v8834_v26 = vpop.permute.xlu1 %3724  ;;  %v8836_v38 = vpop.permute.xlu0 %3722 }
 0x2e5   : > { %10281 = vst [vmem:[#allocation177_spill] sm:$0xff] %v8834_v26  ;;  %10282 = vst [vmem:[#allocation178_spill] sm:$0xff] %v8836_v38  ;;  %v7020_v26 = vpop.f32.mrf.mxu0 }
 0x2e6   : > { %4748 = vrot.lane.b32.xlu1 %v7011_v15, %s7171_s24  ;;  %4746 = vrot.lane.b32.xlu0 %v4627_v13, %s7171_s24  ;;  %v8855_v15 = vld [vmem:[%s10066_s2] ss:$0 sm:$0xff] }
 0x2e7   : > { %v8859_v13 = vadd.f32 %v8855_v15, %v7950_v45  ;;  %v8877_v45 = vadd.f32 %v7940_v44, %v8855_v15 }
 0x2e8   : > { %v8840_v37 = vpop.permute.xlu1 %4182  ;;  %v8842_v19 = vpop.permute.xlu0 %4180 }
 0x2e9   : > { %10283 = vst [vmem:[#allocation179_spill] sm:$0xff] %v8840_v37  ;;  %10284 = vst [vmem:[#allocation180_spill] sm:$0xff] %v8842_v19  ;;  %v10075_v44 = vmax.f32 %v8877_v45, 0.0 }
 0x2ea   : > { %4752 = vrot.lane.b32.xlu1 %v7014_v30, %s7171_s24  ;;  %4750 = vrot.lane.b32.xlu0 %v4637_v42, %s7171_s24  ;;  %v8863_v30 = vadd.f32 %v8855_v15, %v7952_v46  ;;  %v10072_v46 = vmax.f32 %v8859_v13, 0.0 }
 0x2ec   : > { %v8846_v27 = vpop.permute.xlu1 %4700  ;;  %v8848_v40 = vpop.permute.xlu0 %4698  ;;  %10287 = vst [vmem:[#allocation183_spill] sm:$0xff] %v8863_v30  ;;  %v10073_v18 = vmax.f32 %v8863_v30, 0.0 }
 0x2ed   : > { %10285 = vst [vmem:[#allocation181_spill] sm:$0xff] %v8846_v27  ;;  %10286 = vst [vmem:[#allocation182_spill] sm:$0xff] %v8848_v40 }
 0x2ee   : > { %4756 = vrot.lane.b32.xlu1 %v7017_v14, %s7171_s24  ;;  %4754 = vrot.lane.b32.xlu0 %v4647_v39, %s7171_s24  ;;  %v4657_v14 = vpop.f32.mrf.mxu0  ;;  %v8873_v39 = vadd.f32 %v7938_v43, %v8855_v15 }
 0x2f0   : > { %v8865_v42 = vpop.permute.xlu1 %4186  ;;  %v8867_v38 = vpop.permute.xlu0 %4184  ;;  %v10074_v43 = vmax.f32 %v8873_v39, 0.0  ;;  %v10353_v19 = vmax.f32 %v8873_v39, 0.0 }
 0x2f1   : > { %10288 = vst [vmem:[#allocation184_spill] sm:$0xff] %v8865_v42  ;;  %10289 = vst [vmem:[#allocation185_spill] sm:$0xff] %v8867_v38 }
 0x2f2   : > { %4760 = vrot.lane.b32.xlu1 %v7020_v26, %s7171_s24  ;;  %4758 = vrot.lane.b32.xlu0 %v4657_v14, %s7171_s24  ;;  %v8895_v26 = vadd.f32 %v8855_v15, %v7962_v49  ;;  %v8899_v14 = vadd.f32 %v8855_v15, %v7964_v50  ;;  %v8913_v49 = vadd.f32 %v7954_v47, %v8855_v15 }
 0x2f3   : > { %v8917_v50 = vadd.f32 %v7956_v48, %v8855_v15 }
 0x2f4   : > { %v8881_v31 = vpop.permute.xlu1 %4704  ;;  %v8883_v36 = vpop.permute.xlu0 %4702  ;;  %10292 = vst [vmem:[#allocation188_spill] sm:$0xff] %v8899_v14  ;;  %v10078_v47 = vmax.f32 %v8913_v49, 0.0 }
 0x2f5   : > { %10290 = vst [vmem:[#allocation186_spill] sm:$0xff] %v8881_v31  ;;  %10291 = vst [vmem:[#allocation187_spill] sm:$0xff] %v8883_v36  ;;  %v10079_v48 = vmax.f32 %v8917_v50, 0.0 }
 0x2f6   : > { %4962 = vrot.lane.b32.xlu1 %v10073_v18, %s7172_s30  ;;  %4930 = vrot.lane.b32.xlu0 %v10072_v46, %s7172_s30  ;;  %10295 = vst [vmem:[#allocation191_spill] sm:$0xff] %v8917_v50  ;;  %v10076_v46 = vmax.f32 %v8895_v26, 0.0  ;;  %v10077_v18 = vmax.f32 %v8899_v14, 0.0 }
 0x2f8   : > { %v8901_v36 = vpop.permute.xlu1 %4190  ;;  %v8903_v31 = vpop.permute.xlu0 %4188 }
 0x2f9   : > { %10293 = vst [vmem:[#allocation189_spill] sm:$0xff] %v8901_v36  ;;  %10294 = vst [vmem:[#allocation190_spill] sm:$0xff] %v8903_v31 }
 0x2fa   : > { %4964 = vrot.lane.b32.xlu1 %v10075_v44, %s7172_s30  ;;  %4932 = vrot.lane.b32.xlu0 %v10074_v43, %s7172_s30  ;;  %v8935_v43 = vadd.f32 %v8855_v15, %v7974_v53  ;;  %v8939_v44 = vadd.f32 %v8855_v15, %v7976_v54  ;;  %v8953_v53 = vadd.f32 %v7966_v51, %v8855_v15 }
 0x2fb   : > { %v8957_v54 = vadd.f32 %v7968_v52, %v8855_v15 }
 0x2fc   : > { %v8921_v31 = vpop.permute.xlu1 %4708  ;;  %v8923_v36 = vpop.permute.xlu0 %4706  ;;  %v10082_v51 = vmax.f32 %v8953_v53, 0.0 }
 0x2fd   : > { %10296 = vst [vmem:[#allocation192_spill] sm:$0xff] %v8921_v31  ;;  %10297 = vst [vmem:[#allocation193_spill] sm:$0xff] %v8923_v36  ;;  %v10083_v52 = vmax.f32 %v8957_v54, 0.0 }
 0x2fe   : > { %4966 = vrot.lane.b32.xlu1 %v10077_v18, %s7172_s30  ;;  %4934 = vrot.lane.b32.xlu0 %v10076_v46, %s7172_s30  ;;  %v10080_v46 = vmax.f32 %v8935_v43, 0.0  ;;  %v10081_v18 = vmax.f32 %v8939_v44, 0.0 }
 0x300   : > { %v8941_v36 = vpop.permute.xlu1 %4194  ;;  %v8943_v31 = vpop.permute.xlu0 %4192 }
 0x301   : > { %10298 = vst [vmem:[#allocation194_spill] sm:$0xff] %v8941_v36  ;;  %10299 = vst [vmem:[#allocation195_spill] sm:$0xff] %v8943_v31 }
 0x302   : > { %4968 = vrot.lane.b32.xlu1 %v10079_v48, %s7172_s30  ;;  %4936 = vrot.lane.b32.xlu0 %v10078_v47, %s7172_s30  ;;  %v8975_v47 = vadd.f32 %v8855_v15, %v7986_v57  ;;  %v8979_v48 = vadd.f32 %v8855_v15, %v7988_v58  ;;  %v8993_v57 = vadd.f32 %v7978_v55, %v8855_v15 }
 0x303   : > { %v8997_v58 = vadd.f32 %v7980_v56, %v8855_v15 }
 0x304   : > { %v8961_v31 = vpop.permute.xlu1 %4712  ;;  %v8963_v36 = vpop.permute.xlu0 %4710  ;;  %v10086_v55 = vmax.f32 %v8993_v57, 0.0 }
 0x305   : > { %10300 = vst [vmem:[#allocation196_spill] sm:$0xff] %v8961_v31  ;;  %10301 = vst [vmem:[#allocation197_spill] sm:$0xff] %v8963_v36  ;;  %v10087_v56 = vmax.f32 %v8997_v58, 0.0 }
 0x306   : > { %4970 = vrot.lane.b32.xlu1 %v10081_v18, %s7172_s30  ;;  %4938 = vrot.lane.b32.xlu0 %v10080_v46, %s7172_s30  ;;  %v10084_v46 = vmax.f32 %v8975_v47, 0.0  ;;  %v10085_v18 = vmax.f32 %v8979_v48, 0.0 }
 0x308   : > { %v8981_v36 = vpop.permute.xlu1 %4198  ;;  %v8983_v31 = vpop.permute.xlu0 %4196 }
 0x309   : > { %10302 = vst [vmem:[#allocation198_spill] sm:$0xff] %v8981_v36  ;;  %10303 = vst [vmem:[#allocation199_spill] sm:$0xff] %v8983_v31 }
 0x30a   : > { %4972 = vrot.lane.b32.xlu1 %v10083_v52, %s7172_s30  ;;  %4940 = vrot.lane.b32.xlu0 %v10082_v51, %s7172_s30  ;;  %v9015_v51 = vadd.f32 %v8855_v15, %v7998_v61  ;;  %v9019_v52 = vadd.f32 %v8855_v15, %v8000_v62  ;;  %v9033_v61 = vadd.f32 %v7990_v59, %v8855_v15 }
 0x30b   : > { %v9037_v62 = vadd.f32 %v7992_v60, %v8855_v15 }
 0x30c   : > { %v9001_v36 = vpop.permute.xlu1 %4716  ;;  %v9003_v31 = vpop.permute.xlu0 %4714  ;;  %v10090_v59 = vmax.f32 %v9033_v61, 0.0 }
 0x30d   : > { %10304 = vst [vmem:[#allocation200_spill] sm:$0xff] %v9001_v36  ;;  %10305 = vst [vmem:[#allocation201_spill] sm:$0xff] %v9003_v31  ;;  %v10091_v60 = vmax.f32 %v9037_v62, 0.0 }
 0x30e   : > { %4974 = vrot.lane.b32.xlu1 %v10085_v18, %s7172_s30  ;;  %4942 = vrot.lane.b32.xlu0 %v10084_v46, %s7172_s30  ;;  %v10088_v46 = vmax.f32 %v9015_v51, 0.0  ;;  %v10089_v18 = vmax.f32 %v9019_v52, 0.0 }
 0x310   : > { %v9021_v36 = vpop.permute.xlu1 %4202  ;;  %v9023_v31 = vpop.permute.xlu0 %4200 }
 0x311   : > { %10306 = vst [vmem:[#allocation202_spill] sm:$0xff] %v9021_v36  ;;  %10307 = vst [vmem:[#allocation203_spill] sm:$0xff] %v9023_v31 }
 0x312   : > { %4976 = vrot.lane.b32.xlu1 %v10087_v56, %s7172_s30  ;;  %4944 = vrot.lane.b32.xlu0 %v10086_v55, %s7172_s30  ;;  %v9055_v55 = vadd.f32 %v8855_v15, %v8010_v1  ;;  %v9059_v56 = vadd.f32 %v8855_v15, %v8012_v2  ;;  %v9073_v1 = vadd.f32 %v8002_v63, %v8855_v15 }
 0x313   : > { %v9077_v2 = vadd.f32 %v8004_v0, %v8855_v15 }
 0x314   : > { %v9041_v36 = vpop.permute.xlu1 %4720  ;;  %v9043_v31 = vpop.permute.xlu0 %4718  ;;  %v10094_v63 = vmax.f32 %v9073_v1, 0.0 }
 0x315   : > { %10308 = vst [vmem:[#allocation204_spill] sm:$0xff] %v9041_v36  ;;  %10309 = vst [vmem:[#allocation205_spill] sm:$0xff] %v9043_v31  ;;  %v10095_v0 = vmax.f32 %v9077_v2, 0.0 }
 0x316   : > { %4978 = vrot.lane.b32.xlu1 %v10089_v18, %s7172_s30  ;;  %4946 = vrot.lane.b32.xlu0 %v10088_v46, %s7172_s30  ;;  %v10092_v46 = vmax.f32 %v9055_v55, 0.0  ;;  %v10093_v18 = vmax.f32 %v9059_v56, 0.0 }
 0x318   : > { %v9061_v36 = vpop.permute.xlu1 %4206  ;;  %v9063_v31 = vpop.permute.xlu0 %4204 }
 0x319   : > { %10310 = vst [vmem:[#allocation206_spill] sm:$0xff] %v9061_v36  ;;  %10311 = vst [vmem:[#allocation207_spill] sm:$0xff] %v9063_v31 }
 0x31a   : > { %4980 = vrot.lane.b32.xlu1 %v10091_v60, %s7172_s30  ;;  %4948 = vrot.lane.b32.xlu0 %v10090_v59, %s7172_s30  ;;  %v9095_v59 = vadd.f32 %v8855_v15, %v8020_v5  ;;  %v9099_v60 = vadd.f32 %v8855_v15, %v8022_v6  ;;  %v9113_v5 = vadd.f32 %v8014_v3, %v8855_v15 }
 0x31b   : > { %v9117_v6 = vadd.f32 %v8016_v4, %v8855_v15 }
 0x31c   : > { %v9081_v36 = vpop.permute.xlu1 %4724  ;;  %v9083_v31 = vpop.permute.xlu0 %4722  ;;  %v10098_v3 = vmax.f32 %v9113_v5, 0.0 }
 0x31d   : > { %10312 = vst [vmem:[#allocation208_spill] sm:$0xff] %v9081_v36  ;;  %10313 = vst [vmem:[#allocation209_spill] sm:$0xff] %v9083_v31  ;;  %v10100_v4 = vmax.f32 %v9117_v6, 0.0 }
 0x31e   : > { %4982 = vrot.lane.b32.xlu1 %v10093_v18, %s7172_s30  ;;  %4950 = vrot.lane.b32.xlu0 %v10092_v46, %s7172_s30  ;;  %v10096_v46 = vmax.f32 %v9095_v59, 0.0  ;;  %v10097_v18 = vmax.f32 %v9099_v60, 0.0 }
 0x320   : > { %v9101_v36 = vpop.permute.xlu1 %4210  ;;  %v9103_v31 = vpop.permute.xlu0 %4208 }
 0x321   : > { %10314 = vst [vmem:[#allocation210_spill] sm:$0xff] %v9101_v36  ;;  %10315 = vst [vmem:[#allocation211_spill] sm:$0xff] %v9103_v31 }
 0x322   : > { %4984 = vrot.lane.b32.xlu1 %v10095_v0, %s7172_s30  ;;  %4952 = vrot.lane.b32.xlu0 %v10094_v63, %s7172_s30  ;;  %v9135_v63 = vadd.f32 %v8855_v15, %v8032_v10  ;;  %v9139_v0 = vadd.f32 %v8855_v15, %v8034_v11  ;;  %v9153_v10 = vadd.f32 %v8024_v7, %v8855_v15 }
 0x323   : > { %v9157_v11 = vadd.f32 %v8026_v8, %v8855_v15 }
 0x324   : > { %v9121_v36 = vpop.permute.xlu1 %4728  ;;  %v9123_v31 = vpop.permute.xlu0 %4726  ;;  %v10103_v7 = vmax.f32 %v9153_v10, 0.0 }
 0x325   : > { %10316 = vst [vmem:[#allocation212_spill] sm:$0xff] %v9121_v36  ;;  %10317 = vst [vmem:[#allocation213_spill] sm:$0xff] %v9123_v31  ;;  %v10102_v8 = vmax.f32 %v9157_v11, 0.0 }
 0x326   : > { %4986 = vrot.lane.b32.xlu1 %v10097_v18, %s7172_s30  ;;  %4954 = vrot.lane.b32.xlu0 %v10096_v46, %s7172_s30  ;;  %v10101_v46 = vmax.f32 %v9135_v63, 0.0  ;;  %v10099_v18 = vmax.f32 %v9139_v0, 0.0 }
 0x328   : > { %v9141_v36 = vpop.permute.xlu1 %4214  ;;  %v9143_v31 = vpop.permute.xlu0 %4212 }
 0x329   : > { %10318 = vst [vmem:[#allocation214_spill] sm:$0xff] %v9141_v36  ;;  %10319 = vst [vmem:[#allocation215_spill] sm:$0xff] %v9143_v31 }
 0x32a   : > { %4988 = vrot.lane.b32.xlu1 %v10100_v4, %s7172_s30  ;;  %4956 = vrot.lane.b32.xlu0 %v10098_v3, %s7172_s30 }
 0x32c   : > { %v9161_v31 = vpop.permute.xlu1 %4732  ;;  %v9163_v36 = vpop.permute.xlu0 %4730 }
 0x32d   : > { %10320 = vst [vmem:[#allocation216_spill] sm:$0xff] %v9161_v31  ;;  %10321 = vst [vmem:[#allocation217_spill] sm:$0xff] %v9163_v36 }
 0x32e   : > { %4990 = vrot.lane.b32.xlu1 %v10099_v18, %s7172_s30  ;;  %4958 = vrot.lane.b32.xlu0 %v10101_v46, %s7172_s30 }
 0x330   : > { %v9173_v15 = vpop.permute.xlu1 %4218  ;;  %v9175_v3 = vpop.permute.xlu0 %4216 }
 0x331   : > { %10322 = vst [vmem:[#allocation218_spill] sm:$0xff] %v9173_v15  ;;  %10323 = vst [vmem:[#allocation219_spill] sm:$0xff] %v9175_v3 }
 0x332   : > { %4992 = vrot.lane.b32.xlu1 %v10102_v8, %s7172_s30  ;;  %4960 = vrot.lane.b32.xlu0 %v10103_v7, %s7172_s30 }
 0x334   : > { %v9183_v18 = vpop.permute.xlu1 %4736  ;;  %v9185_v4 = vpop.permute.xlu0 %4734 }
 0x335   : > { %10324 = vst [vmem:[#allocation220_spill] sm:$0xff] %v9183_v18  ;;  %10325 = vst [vmem:[#allocation221_spill] sm:$0xff] %v9185_v4 }
 0x338   : > { %v9187_v46 = vpop.permute.xlu1 %4222  ;;  %v9189_v36 = vpop.permute.xlu0 %4220 }
 0x339   : > { %10326 = vst [vmem:[#allocation222_spill] sm:$0xff] %v9187_v46  ;;  %10327 = vst [vmem:[#allocation223_spill] sm:$0xff] %v9189_v36 }
 0x33c   : > { %v9191_v31 = vpop.permute.xlu1 %4226  ;;  %v9193_v15 = vpop.permute.xlu0 %4738 }
 0x33d   : > { %10328 = vst [vmem:[#allocation224_spill] sm:$0xff] %v9191_v31  ;;  %10329 = vst [vmem:[#allocation225_spill] sm:$0xff] %v9193_v15 }
 0x340   : > { %v9195_v3 = vpop.permute.xlu1 %4230  ;;  %v9197_v38 = vpop.permute.xlu0 %4224 }
 0x341   : > { %10330 = vst [vmem:[#allocation226_spill] sm:$0xff] %v9195_v3  ;;  %10331 = vst [vmem:[#allocation227_spill] sm:$0xff] %v9197_v38 }
 0x344   : > { %v9199_v8 = vpop.permute.xlu1 %4234  ;;  %v9201_v40 = vpop.permute.xlu0 %4228 }
 0x345   : > { %10332 = vst [vmem:[#allocation228_spill] sm:$0xff] %v9199_v8  ;;  %10333 = vst [vmem:[#allocation229_spill] sm:$0xff] %v9201_v40 }
 0x348   : > { %v9203_v7 = vpop.permute.xlu1 %4238  ;;  %v9205_v18 = vpop.permute.xlu0 %4232 }
 0x349   : > { %10334 = vst [vmem:[#allocation230_spill] sm:$0xff] %v9203_v7  ;;  %10335 = vst [vmem:[#allocation231_spill] sm:$0xff] %v9205_v18 }
 0x34c   : > { %v9207_v4 = vpop.permute.xlu1 %4242  ;;  %v9209_v46 = vpop.permute.xlu0 %4236 }
 0x34d   : > { %10336 = vst [vmem:[#allocation232_spill] sm:$0xff] %v9207_v4  ;;  %10337 = vst [vmem:[#allocation233_spill] sm:$0xff] %v9209_v46 }
 0x350   : > { %v9211_v36 = vpop.permute.xlu1 %4740  ;;  %v9213_v31 = vpop.permute.xlu0 %4240 }
 0x351   : > { %10338 = vst [vmem:[#allocation234_spill] sm:$0xff] %v9211_v36  ;;  %10339 = vst [vmem:[#allocation235_spill] sm:$0xff] %v9213_v31 }
 0x354   : > { %v9215_v15 = vpop.permute.xlu1 %4744  ;;  %v9217_v3 = vpop.permute.xlu0 %4742 }
 0x355   : > { %10340 = vst [vmem:[#allocation236_spill] sm:$0xff] %v9215_v15  ;;  %10341 = vst [vmem:[#allocation237_spill] sm:$0xff] %v9217_v3  ;;  %v9238_v15 = vld [vmem:[%s10067_s3] ss:$0 sm:$0xff] }
 0x358   : > { %v9219_v38 = vpop.permute.xlu1 %4748  ;;  %v9221_v8 = vpop.permute.xlu0 %4746 }
 0x359   : > { %10342 = vst [vmem:[#allocation238_spill] sm:$0xff] %v9219_v38  ;;  %10343 = vst [vmem:[#allocation239_spill] sm:$0xff] %v9221_v8  ;;  %v10350_v8 = vmax.f32 %v8863_v30, 0.0 }
 0x35c   : > { %v9223_v40 = vpop.permute.xlu1 %4752  ;;  %v9225_v7 = vpop.permute.xlu0 %4750 }
 0x35d   : > { %10344 = vst [vmem:[#allocation240_spill] sm:$0xff] %v9223_v40  ;;  %10345 = vst [vmem:[#allocation241_spill] sm:$0xff] %v9225_v7  ;;  %v10351_v7 = vmax.f32 %v8859_v13, 0.0 }
 0x360   : > { %v9227_v18 = vpop.permute.xlu1 %4756  ;;  %v9229_v4 = vpop.permute.xlu0 %4754 }
 0x361   : > { %10346 = vst [vmem:[#allocation242_spill] sm:$0xff] %v9227_v18  ;;  %10347 = vst [vmem:[#allocation243_spill] sm:$0xff] %v9229_v4 }
 0x364   : > { %v9231_v46 = vpop.permute.xlu1 %4760  ;;  %v9233_v36 = vpop.permute.xlu0 %4758 }
 0x365   : > { %10348 = vst [vmem:[#allocation244_spill] sm:$0xff] %v9231_v46  ;;  %10349 = vst [vmem:[#allocation245_spill] sm:$0xff] %v9233_v36  ;;  %v10352_v36 = vmax.f32 %v8877_v45, 0.0 }
 0x368   : > { %v4963_v31 = vpop.permute.xlu1 %4962  ;;  %v4931_v38 = vpop.permute.xlu0 %4930 }
 0x369   : > { %v5042_v40 = vmul.f32 %v4963_v31, %v10350_v8  ;;  %v5026_v3 = vmul.f32 %v4931_v38, %v10351_v7  ;;  %v10354_v7 = vmax.f32 %v8899_v14, 0.0  ;;  %v10357_v14 = vmax.f32 %v8913_v49, 0.0 }
 0x36b   : > { %v5064_v18 = vmul.f32 %v9238_v15, %v5026_v3  ;;  %v5080_v4 = vmul.f32 %v9238_v15, %v5042_v40 }
 0x36c   : > { %v4965_v46 = vpop.permute.xlu1 %4964  ;;  %v4933_v42 = vpop.permute.xlu0 %4932 }
 0x36d   : > { %v5043_v27 = vmul.f32 %v4965_v46, %v10352_v36  ;;  %v5027_v37 = vmul.f32 %v4933_v42, %v10353_v19  ;;  %v5144_v12 = vsel %vm324_vm1, %v5080_v4, 0.0  ;;  %v5096_v30 = vsel %vm324_vm1, %v5064_v18, 0.0 }
 0x36e   : > { %5145 = vadd.xlane.f32.xlu1 %v5144_v12  ;;  %5097 = vadd.xlane.f32.xlu0 %v5096_v30  ;;  %v10355_v36 = vmax.f32 %v8895_v26, 0.0 }
 0x36f   : > { %v5065_v31 = vmul.f32 %v9238_v15, %v5027_v37  ;;  %v5081_v38 = vmul.f32 %v9238_v15, %v5043_v27  ;;  %v10356_v27 = vmax.f32 %v8917_v50, 0.0 }
 0x370   : > { %v4967_v3 = vpop.permute.xlu1 %4966  ;;  %v4935_v40 = vpop.permute.xlu0 %4934 }
 0x371   : > { %v5044_v8 = vmul.f32 %v4967_v3, %v10354_v7  ;;  %v5028_v46 = vmul.f32 %v4935_v40, %v10355_v36  ;;  %v5099_v19 = vsel %vm324_vm1, %v5065_v31, 0.0  ;;  %v5147_v30 = vsel %vm324_vm1, %v5081_v38, 0.0 }
 0x372   : > { %5100 = vadd.xlane.f32.xlu0 %v5099_v19  ;;  %v10358_v38 = vmax.f32 %v8939_v44, 0.0 }
 0x373   : > { %v5066_v42 = vmul.f32 %v9238_v15, %v5028_v46  ;;  %v5082_v37 = vmul.f32 %v9238_v15, %v5044_v8  ;;  %v10359_v8 = vmax.f32 %v8935_v43, 0.0 }
 0x374   : > { %v4969_v18 = vpop.permute.xlu1 %4968  ;;  %v4937_v12 = vpop.permute.xlu0 %4936 }
 0x375   : > { %v5045_v4 = vmul.f32 %v4969_v18, %v10356_v27  ;;  %v5029_v3 = vmul.f32 %v4937_v12, %v10357_v14  ;;  %v5102_v7 = vsel %vm324_vm1, %v5066_v42, 0.0  ;;  %v5150_v18 = vsel %vm324_vm1, %v5082_v37, 0.0 }
 0x376   : > { %5148 = vadd.xlane.f32.xlu0 %v5147_v30  ;;  %5103 = vadd.xlane.f32.xlu1 %v5102_v7 }
 0x377   : > { %v5067_v31 = vmul.f32 %v9238_v15, %v5029_v3  ;;  %v5083_v40 = vmul.f32 %v9238_v15, %v5045_v4  ;;  %v10360_v3 = vmax.f32 %v8957_v54, 0.0 }
 0x378   : > { %v4971_v36 = vpop.permute.xlu1 %4970  ;;  %v4939_v46 = vpop.permute.xlu0 %4938 }
 0x379   : > { %v5046_v19 = vmul.f32 %v4971_v36, %v10358_v38  ;;  %v5030_v50 = vmul.f32 %v4939_v46, %v10359_v8  ;;  %v5105_v14 = vsel %vm324_vm1, %v5067_v31, 0.0  ;;  %v5153_v27 = vsel %vm324_vm1, %v5083_v40, 0.0 }
 0x37a   : > { %5151 = vadd.xlane.f32.xlu0 %v5150_v18  ;;  %5106 = vadd.xlane.f32.xlu1 %v5105_v14  ;;  %v10361_v36 = vmax.f32 %v8953_v53, 0.0  ;;  %v10362_v40 = vmax.f32 %v8979_v48, 0.0 }
 0x37b   : > { %v5068_v42 = vmul.f32 %v9238_v15, %v5030_v50  ;;  %v5084_v4 = vmul.f32 %v9238_v15, %v5046_v19  ;;  %v10363_v19 = vmax.f32 %v8975_v47, 0.0 }
 0x37c   : > { %v4973_v12 = vpop.permute.xlu1 %4972  ;;  %v4941_v30 = vpop.permute.xlu0 %4940 }
 0x37d   : > { %v5047_v7 = vmul.f32 %v4973_v12, %v10360_v3  ;;  %v5031_v46 = vmul.f32 %v4941_v30, %v10361_v36  ;;  %v5108_v37 = vsel %vm324_vm1, %v5068_v42, 0.0  ;;  %v5156_v12 = vsel %vm324_vm1, %v5084_v4, 0.0 }
 0x37e   : > { %5154 = vadd.xlane.f32.xlu0 %v5153_v27  ;;  %5109 = vadd.xlane.f32.xlu1 %v5108_v37 }
 0x37f   : > { %v5069_v31 = vmul.f32 %v9238_v15, %v5031_v46  ;;  %v5085_v50 = vmul.f32 %v9238_v15, %v5047_v7  ;;  %v10364_v46 = vmax.f32 %v8997_v58, 0.0 }
 0x380   : > { %v4975_v38 = vpop.permute.xlu1 %4974  ;;  %v4943_v8 = vpop.permute.xlu0 %4942 }
 0x381   : > { %v5048_v18 = vmul.f32 %v4975_v38, %v10362_v40  ;;  %v5032_v14 = vmul.f32 %v4943_v8, %v10363_v19  ;;  %v5111_v30 = vsel %vm324_vm1, %v5069_v31, 0.0  ;;  %v5159_v7 = vsel %vm324_vm1, %v5085_v50, 0.0 }
 0x382   : > { %5157 = vadd.xlane.f32.xlu0 %v5156_v12  ;;  %5112 = vadd.xlane.f32.xlu1 %v5111_v30  ;;  %v10365_v38 = vmax.f32 %v8993_v57, 0.0  ;;  %v10366_v50 = vmax.f32 %v9019_v52, 0.0 }
 0x383   : > { %v5070_v42 = vmul.f32 %v9238_v15, %v5032_v14  ;;  %v5086_v36 = vmul.f32 %v9238_v15, %v5048_v18  ;;  %v10367_v18 = vmax.f32 %v9015_v51, 0.0 }
 0x384   : > { %v4977_v27 = vpop.permute.xlu1 %4976  ;;  %v4945_v3 = vpop.permute.xlu0 %4944 }
 0x385   : > { %v5049_v37 = vmul.f32 %v4977_v27, %v10364_v46  ;;  %v5033_v8 = vmul.f32 %v4945_v3, %v10365_v38  ;;  %v5114_v4 = vsel %vm324_vm1, %v5070_v42, 0.0  ;;  %v5162_v27 = vsel %vm324_vm1, %v5086_v36, 0.0 }
 0x386   : > { %5160 = vadd.xlane.f32.xlu0 %v5159_v7  ;;  %5115 = vadd.xlane.f32.xlu1 %v5114_v4 }
 0x387   : > { %v5071_v31 = vmul.f32 %v9238_v15, %v5033_v8  ;;  %v5087_v40 = vmul.f32 %v9238_v15, %v5049_v37  ;;  %v10368_v8 = vmax.f32 %v9037_v62, 0.0 }
 0x388   : > { %v4979_v19 = vpop.permute.xlu1 %4978  ;;  %v4947_v14 = vpop.permute.xlu0 %4946 }
 0x389   : > { %v5050_v12 = vmul.f32 %v4979_v19, %v10366_v50  ;;  %v5034_v30 = vmul.f32 %v4947_v14, %v10367_v18  ;;  %v5117_v3 = vsel %vm324_vm1, %v5071_v31, 0.0  ;;  %v5165_v37 = vsel %vm324_vm1, %v5087_v40, 0.0 }
 0x38a   : > { %5163 = vadd.xlane.f32.xlu0 %v5162_v27  ;;  %5118 = vadd.xlane.f32.xlu1 %v5117_v3  ;;  %v10369_v19 = vmax.f32 %v9033_v61, 0.0  ;;  %v10370_v40 = vmax.f32 %v9059_v56, 0.0 }
 0x38b   : > { %v5072_v42 = vmul.f32 %v9238_v15, %v5034_v30  ;;  %v5088_v38 = vmul.f32 %v9238_v15, %v5050_v12  ;;  %v10371_v12 = vmax.f32 %v9055_v55, 0.0 }
 0x38c   : > { %v4981_v7 = vpop.permute.xlu1 %4980  ;;  %v4949_v46 = vpop.permute.xlu0 %4948 }
 0x38d   : > { %v5051_v4 = vmul.f32 %v4981_v7, %v10368_v8  ;;  %v5035_v14 = vmul.f32 %v4949_v46, %v10369_v19  ;;  %v5120_v36 = vsel %vm324_vm1, %v5072_v42, 0.0  ;;  %v5168_v7 = vsel %vm324_vm1, %v5088_v38, 0.0 }
 0x38e   : > { %5166 = vadd.xlane.f32.xlu0 %v5165_v37  ;;  %5121 = vadd.xlane.f32.xlu1 %v5120_v36 }
 0x38f   : > { %v5073_v31 = vmul.f32 %v9238_v15, %v5035_v14  ;;  %v5089_v50 = vmul.f32 %v9238_v15, %v5051_v4  ;;  %v10372_v14 = vmax.f32 %v9077_v2, 0.0 }
 0x390   : > { %v4983_v18 = vpop.permute.xlu1 %4982  ;;  %v4951_v30 = vpop.permute.xlu0 %4950 }
 0x391   : > { %v5052_v27 = vmul.f32 %v4983_v18, %v10370_v40  ;;  %v5036_v3 = vmul.f32 %v4951_v30, %v10371_v12  ;;  %v5123_v46 = vsel %vm324_vm1, %v5073_v31, 0.0  ;;  %v5171_v4 = vsel %vm324_vm1, %v5089_v50, 0.0 }
 0x392   : > { %5169 = vadd.xlane.f32.xlu0 %v5168_v7  ;;  %5124 = vadd.xlane.f32.xlu1 %v5123_v46  ;;  %v10373_v18 = vmax.f32 %v9073_v1, 0.0  ;;  %v10374_v50 = vmax.f32 %v9099_v60, 0.0 }
 0x393   : > { %v5074_v42 = vmul.f32 %v9238_v15, %v5036_v3  ;;  %v5090_v19 = vmul.f32 %v9238_v15, %v5052_v27  ;;  %v10375_v27 = vmax.f32 %v9095_v59, 0.0 }
 0x394   : > { %v4985_v37 = vpop.permute.xlu1 %4984  ;;  %v4953_v8 = vpop.permute.xlu0 %4952 }
 0x395   : > { %v5053_v36 = vmul.f32 %v4985_v37, %v10372_v14  ;;  %v5037_v30 = vmul.f32 %v4953_v8, %v10373_v18  ;;  %v5126_v38 = vsel %vm324_vm1, %v5074_v42, 0.0  ;;  %v5174_v37 = vsel %vm324_vm1, %v5090_v19, 0.0 }
 0x396   : > { %5172 = vadd.xlane.f32.xlu0 %v5171_v4  ;;  %5127 = vadd.xlane.f32.xlu1 %v5126_v38 }
 0x397   : > { %v5075_v31 = vmul.f32 %v9238_v15, %v5037_v30  ;;  %v5091_v40 = vmul.f32 %v9238_v15, %v5053_v36  ;;  %v10376_v30 = vmax.f32 %v9117_v6, 0.0 }
 0x398   : > { %v4987_v12 = vpop.permute.xlu1 %4986  ;;  %v4955_v3 = vpop.permute.xlu0 %4954 }
 0x399   : > { %v5054_v7 = vmul.f32 %v4987_v12, %v10374_v50  ;;  %v5038_v46 = vmul.f32 %v4955_v3, %v10375_v27  ;;  %v5129_v8 = vsel %vm324_vm1, %v5075_v31, 0.0  ;;  %v5177_v36 = vsel %vm324_vm1, %v5091_v40, 0.0 }
 0x39a   : > { %5175 = vadd.xlane.f32.xlu0 %v5174_v37  ;;  %5130 = vadd.xlane.f32.xlu1 %v5129_v8  ;;  %v10377_v12 = vmax.f32 %v9113_v5, 0.0  ;;  %v10378_v40 = vmax.f32 %v9139_v0, 0.0 }
 0x39b   : > { %v5076_v42 = vmul.f32 %v9238_v15, %v5038_v46  ;;  %v5092_v18 = vmul.f32 %v9238_v15, %v5054_v7  ;;  %v10379_v7 = vmax.f32 %v9135_v63, 0.0 }
 0x39c   : > { %v4989_v4 = vpop.permute.xlu1 %4988  ;;  %v4957_v14 = vpop.permute.xlu0 %4956 }
 0x39d   : > { %v5055_v38 = vmul.f32 %v4989_v4, %v10376_v30  ;;  %v5039_v3 = vmul.f32 %v4957_v14, %v10377_v12  ;;  %v5132_v19 = vsel %vm324_vm1, %v5076_v42, 0.0  ;;  %v5180_v4 = vsel %vm324_vm1, %v5092_v18, 0.0 }
 0x39e   : > { %5178 = vadd.xlane.f32.xlu0 %v5177_v36  ;;  %5133 = vadd.xlane.f32.xlu1 %v5132_v19 }
 0x39f   : > { %v5077_v31 = vmul.f32 %v9238_v15, %v5039_v3  ;;  %v5093_v50 = vmul.f32 %v9238_v15, %v5055_v38  ;;  %v10380_v3 = vmax.f32 %v9157_v11, 0.0 }
 0x3a0   : > { %v4991_v27 = vpop.permute.xlu1 %4990  ;;  %v4959_v46 = vpop.permute.xlu0 %4958 }
 0x3a1   : > { %v5056_v37 = vmul.f32 %v4991_v27, %v10378_v40  ;;  %v5040_v8 = vmul.f32 %v4959_v46, %v10379_v7  ;;  %v5135_v14 = vsel %vm324_vm1, %v5077_v31, 0.0  ;;  %v5183_v38 = vsel %vm324_vm1, %v5093_v50, 0.0 }
 0x3a2   : > { %5181 = vadd.xlane.f32.xlu0 %v5180_v4  ;;  %5136 = vadd.xlane.f32.xlu1 %v5135_v14  ;;  %v10381_v27 = vmax.f32 %v9153_v10, 0.0  ;;  %v1168_v4 = vadd.f32 %v8194_v22, %v8873_v39  ;;  %v1167_v14 = vadd.f32 %v8204_v28, %v8859_v13  ;;  %v1174_v28 = vadd.f32 %v8254_v32, %v8993_v57  ;;  %v10384_v32 = vld [vmem:[#allocation8_spill] sm:$0xff] }
 0x3a3   : > { %v5078_v42 = vmul.f32 %v9238_v15, %v5040_v8  ;;  %v5094_v12 = vmul.f32 %v9238_v15, %v5056_v37  ;;  %v6237_v8 = vld [vmem:[%s10070_s6] ss:$0 sm:$0xff] }
 0x3a4   : > { %v4993_v36 = vpop.permute.xlu1 %4992  ;;  %v4961_v30 = vpop.permute.xlu0 %4960 }
 0x3a5   : > { %v5057_v19 = vmul.f32 %v4993_v36, %v10380_v3  ;;  %v5041_v46 = vmul.f32 %v4961_v30, %v10381_v27  ;;  %v5138_v18 = vsel %vm324_vm1, %v5078_v42, 0.0  ;;  %v5186_v7 = vsel %vm324_vm1, %v5094_v12, 0.0  ;;  %v10391_v3 = vld [vmem:[#allocation12_spill] sm:$0xff]  ;;  %v10393_v27 = vld [vmem:[#allocation13_spill] sm:$0xff] }
 0x3a6   : > { %5184 = vadd.xlane.f32.xlu0 %v5183_v38  ;;  %5139 = vadd.xlane.f32.xlu1 %v5138_v18  ;;  %v1170_v42 = vadd.f32 %v8206_v29, %v8913_v49  ;;  %v1686_v36 = vadd.f32 %v8196_v23, %v1168_v4  ;;  %v1685_v30 = vadd.f32 %v8214_v34, %v1167_v14  ;;  %v10386_v49 = vld [vmem:[#allocation5_spill] sm:$0xff]  ;;  %v10394_v18 = vld [vmem:[#allocation16_spill] sm:$0xff]  ;;  %v10400_v14 = vld [vmem:[#allocation191_spill] sm:$0xff] }
 0x3a7   : > { %v5079_v31 = vmul.f32 %v9238_v15, %v5041_v46  ;;  %v5095_v40 = vmul.f32 %v9238_v15, %v5057_v19  ;;  %v1169_v15 = vadd.f32 %v8224_v41, %v8895_v26  ;;  %v1172_v38 = vadd.f32 %v8234_v16, %v8953_v53  ;;  %v10392_v19 = vld [vmem:[#allocation15_spill] sm:$0xff] }
 0x3a8   : > { %v1688_v12 = vadd.f32 %v8216_v35, %v1170_v42  ;;  %v1171_v41 = vadd.f32 %v8236_v17, %v8935_v43  ;;  %v1173_v23 = vadd.f32 %v8256_v33, %v8975_v47  ;;  %v1176_v29 = vadd.f32 %v8274_v20, %v9033_v61  ;;  %v10383_v17 = vld [vmem:[#allocation7_spill] sm:$0xff]  ;;  %v10385_v43 = vld [vmem:[#allocation4_spill] sm:$0xff]  ;;  %v10387_v47 = vld [vmem:[#allocation6_spill] sm:$0xff] }
 0x3a9   : > { %v5141_v50 = vsel %vm324_vm1, %v5079_v31, 0.0  ;;  %v5189_v37 = vsel %vm324_vm1, %v5095_v40, 0.0  ;;  %v1687_v22 = vadd.f32 %v8226_v9, %v1169_v15  ;;  %v9391_v13 = vadd.f32 %v8244_v24, %v1172_v38  ;;  %v10382_v9 = vld [vmem:[#allocation3_spill] sm:$0xff]  ;;  %v10399_v15 = vld [vmem:[#allocation17_spill] sm:$0xff]  ;;  %v10402_v38 = vld [vmem:[#allocation188_spill] sm:$0xff] }
 0x3aa   : > { %5187 = vadd.xlane.f32.xlu0 %v5186_v7  ;;  %5142 = vadd.xlane.f32.xlu1 %v5141_v50  ;;  %v1175_v34 = vadd.f32 %v8276_v21, %v9015_v51  ;;  %v1689_v35 = vadd.f32 %v8246_v25, %v1171_v41  ;;  %v1692_v16 = vadd.f32 %v10382_v9, %v1174_v28  ;;  %v10388_v20 = vld [vmem:[#allocation11_spill] sm:$0xff]  ;;  %v10389_v21 = vld [vmem:[#allocation9_spill] sm:$0xff]  ;;  %v10390_v25 = vld [vmem:[#allocation10_spill] sm:$0xff] }
 0x3ab   : > { %v1178_v39 = vadd.f32 %v10383_v17, %v9073_v1  ;;  %v1177_v24 = vadd.f32 %v10384_v32, %v9055_v55  ;;  %v1691_v26 = vadd.f32 %v10385_v43, %v1173_v23  ;;  %v1694_v33 = vadd.f32 %v10386_v49, %v1176_v29  ;;  %v10395_v40 = vld [vmem:[#allocation19_spill] sm:$0xff]  ;;  %v10397_v50 = vld [vmem:[#allocation20_spill] sm:$0xff]  ;;  %v10404_v23 = vld [vmem:[#allocation18_spill] sm:$0xff] }
 0x3ac   : > { %v1693_v53 = vadd.f32 %v10387_v47, %v1175_v34  ;;  %v1180_v57 = vadd.f32 %v10388_v20, %v9113_v5  ;;  %v1179_v1 = vadd.f32 %v10391_v3, %v9095_v59  ;;  %v1182_v55 = vadd.f32 %v10392_v19, %v9153_v10  ;;  %v10396_v7 = vld [vmem:[#allocation183_spill] sm:$0xff]  ;;  %v10403_v41 = vld [vmem:[#allocation24_spill] sm:$0xff]  ;;  %v10405_v29 = vld [vmem:[#allocation21_spill] sm:$0xff] }
 0x3ad   : > { %v1696_v51 = vadd.f32 %v10389_v21, %v1178_v39  ;;  %v9412_v61 = vadd.f32 %v10390_v25, %v1177_v24  ;;  %v1181_v31 = vadd.f32 %v10394_v18, %v9135_v63  ;;  %v1184_v5 = vadd.f32 %v10395_v40, %v8877_v45  ;;  %v10401_v10 = vld [vmem:[#allocation23_spill] sm:$0xff]  ;;  %v10406_v45 = vld [vmem:[#allocation22_spill] sm:$0xff]  ;;  %v10408_v32 = vld [vmem:[#allocation25_spill] sm:$0xff] }
 0x3ae   : > { %5190 = vadd.xlane.f32.xlu0 %v5189_v37  ;;  %v9419_v46 = vadd.f32 %v10393_v27, %v1180_v57  ;;  %v1183_v37 = vadd.f32 %v10397_v50, %v10396_v7  ;;  %v9431_v59 = vadd.f32 %v10399_v15, %v1182_v55  ;;  %v1186_v42 = vadd.f32 %v10401_v10, %v10400_v14  ;;  %v10407_v17 = vld [vmem:[#allocation27_spill] sm:$0xff]  ;;  %v10409_v43 = vld [vmem:[#allocation26_spill] sm:$0xff]  ;;  %v10410_v47 = vld [vmem:[#allocation28_spill] sm:$0xff] }
 0x3af   : > { %v1185_v28 = vadd.f32 %v10403_v41, %v10402_v38  ;;  %v1699_v63 = vadd.f32 %v10404_v23, %v1181_v31  ;;  %v1702_v34 = vadd.f32 %v10405_v29, %v1184_v5  ;;  %v1188_v39 = vadd.f32 %v10407_v17, %v8957_v54  ;;  %v10411_v57 = vld [vmem:[#allocation31_spill] sm:$0xff]  ;;  %v10412_v25 = vld [vmem:[#allocation29_spill] sm:$0xff]  ;;  %v10415_v27 = vld [vmem:[#allocation36_spill] sm:$0xff] }
 0x3b0   : > { %v1701_v9 = vadd.f32 %v10406_v45, %v1183_v37  ;;  %v9443_v24 = vadd.f32 %v10408_v32, %v1186_v42  ;;  %v1187_v20 = vadd.f32 %v10410_v47, %v8939_v44  ;;  %v1190_v21 = vadd.f32 %v10411_v57, %v8997_v58  ;;  %v10414_v54 = vld [vmem:[#allocation35_spill] sm:$0xff]  ;;  %v10416_v31 = vld [vmem:[#allocation30_spill] sm:$0xff]  ;;  %v10417_v5 = vld [vmem:[#allocation33_spill] sm:$0xff] }
 0x3b1   : > { %v9446_v49 = vadd.f32 %v10409_v43, %v1185_v28  ;;  %v9453_v3 = vadd.f32 %v10412_v25, %v1188_v39  ;;  %v1192_v55 = vadd.f32 %v10414_v54, %v9037_v62  ;;  %v1191_v18 = vadd.f32 %v10415_v27, %v9019_v52  ;;  %v10418_v58 = vld [vmem:[#allocation39_spill] sm:$0xff]  ;;  %v10419_v50 = vld [vmem:[#allocation40_spill] sm:$0xff]  ;;  %v10421_v15 = vld [vmem:[#allocation37_spill] sm:$0xff] }
 0x3b2   : > { %v9462_v40 = vadd.f32 %v10416_v31, %v1187_v20  ;;  %v9465_v44 = vadd.f32 %v10417_v5, %v1190_v21  ;;  %v1194_v7 = vadd.f32 %v10418_v58, %v9077_v2  ;;  %v1193_v37 = vadd.f32 %v10419_v50, %v9059_v56  ;;  %v10422_v14 = vld [vmem:[#allocation38_spill] sm:$0xff]  ;;  %v10423_v42 = vld [vmem:[#allocation43_spill] sm:$0xff]  ;;  %v10424_v41 = vld [vmem:[#allocation41_spill] sm:$0xff] }
 0x3b3   : > { %v9477_v52 = vadd.f32 %v10421_v15, %v1192_v55  ;;  %v9480_v10 = vadd.f32 %v10422_v14, %v1191_v18  ;;  %v1196_v38 = vadd.f32 %v10423_v42, %v9117_v6  ;;  %v10425_v28 = vld [vmem:[#allocation42_spill] sm:$0xff]  ;;  %v10426_v23 = vld [vmem:[#allocation44_spill] sm:$0xff]  ;;  %v10427_v45 = vld [vmem:[#allocation47_spill] sm:$0xff] }
 0x3b4   : > { %v9485_v2 = vadd.f32 %v10424_v41, %v1194_v7  ;;  %v9488_v56 = vadd.f32 %v10425_v28, %v1193_v37  ;;  %v1195_v29 = vadd.f32 %v10426_v23, %v9099_v60  ;;  %v1198_v17 = vadd.f32 %v10427_v45, %v9157_v11  ;;  %v10428_v39 = vld [vmem:[#allocation45_spill] sm:$0xff]  ;;  %v10429_v43 = vld [vmem:[#allocation48_spill] sm:$0xff]  ;;  %v10430_v20 = vld [vmem:[#allocation51_spill] sm:$0xff] }
 0x3b5   : > { %v9495_v32 = vadd.f32 %v10428_v39, %v1196_v38  ;;  %v1197_v47 = vadd.f32 %v10429_v43, %v9139_v0  ;;  %v2204_v6 = vadd.f32 %v10430_v20, %v1686_v36  ;;  %v10431_v57 = vld [vmem:[#allocation52_spill] sm:$0xff]  ;;  %v10432_v25 = vld [vmem:[#allocation46_spill] sm:$0xff]  ;;  %v10434_v60 = vld [vmem:[#allocation55_spill] sm:$0xff] }
 0x3b6   : > { %v2203_v21 = vadd.f32 %v10431_v57, %v1685_v30  ;;  %v2206_v55 = vadd.f32 %v10434_v60, %v1688_v12  ;;  %v10435_v27 = vld [vmem:[#allocation56_spill] sm:$0xff]  ;;  %v10436_v5 = vld [vmem:[#allocation50_spill] sm:$0xff]  ;;  %v10437_v0 = vld [vmem:[#allocation53_spill] sm:$0xff] }
 0x3b7   : > { %v2205_v11 = vadd.f32 %v10435_v27, %v1687_v22  ;;  %v9510_v58 = vadd.f32 %v10436_v5, %v1197_v47  ;;  %v9513_v36 = vadd.f32 %v10437_v0, %v2204_v6  ;;  %v10438_v30 = vld [vmem:[#allocation54_spill] sm:$0xff]  ;;  %v10439_v50 = vld [vmem:[#allocation59_spill] sm:$0xff]  ;;  %v10442_v14 = vld [vmem:[#allocation60_spill] sm:$0xff] }
 0x3b8   : > { %v9516_v7 = vadd.f32 %v10438_v30, %v2203_v21  ;;  %v2208_v37 = vadd.f32 %v10439_v50, %v9391_v13  ;;  %v10441_v12 = vld [vmem:[#allocation58_spill] sm:$0xff]  ;;  %v2207_v42 = vadd.f32 %v10442_v14, %v1689_v35  ;;  %v10443_v38 = vld [vmem:[#allocation63_spill] sm:$0xff]  ;;  %v10444_v28 = vld [vmem:[#allocation61_spill] sm:$0xff]  ;;  %v9542_v35 = vstv %s9471_s12 }
 0x3b9   : > { %v9524_v22 = vadd.f32 %v10441_v12, %v2205_v11  ;;  %v2210_v41 = vadd.f32 %v10443_v38, %v1692_v16  ;;  %v10447_v43 = vld [vmem:[#allocation68_spill] sm:$0xff]  ;;  %v10448_v13 = vld [vmem:[#allocation62_spill] sm:$0xff]  ;;  %v10449_v6 = vld [vmem:[#allocation65_spill] sm:$0xff] }
 0x3ba   : > { %v9529_v23 = vadd.f32 %v10444_v28, %v2208_v37  ;;  %v2211_v47 = vadd.f32 %v10447_v43, %v1693_v53  ;;  %v9535_v20 = vadd.f32 %v10448_v13, %v2207_v42  ;;  %v10450_v21 = vld [vmem:[#allocation71_spill] sm:$0xff]  ;;  %v10451_v60 = vld [vmem:[#allocation66_spill] sm:$0xff]  ;;  %v10454_v11 = vld [vmem:[#allocation72_spill] sm:$0xff] }
 0x3bb   : > { %4831 = vrot.lane.b32.xlu1 %v6237_v8, %s7171_s24  ;;  %v10398_v8 = vld [vmem:[#allocation14_spill] sm:$0xff]  ;;  %v9538_v57 = vadd.f32 %v10449_v6, %v2210_v41  ;;  %v2213_v5 = vadd.f32 %v10454_v11, %v9412_v61  ;;  %v10455_v0 = vld [vmem:[#allocation73_spill] sm:$0xff]  ;;  %v10457_v37 = vld [vmem:[#allocation76_spill] sm:$0xff] }
 0x3bc   : > { %v9428_v4 = vadd.f32 %v10398_v8, %v1179_v1  ;;  %v10413_v1 = vld [vmem:[#allocation32_spill] sm:$0xff]  ;;  %v10420_v8 = vld [vmem:[#allocation34_spill] sm:$0xff]  ;;  %v10458_v12 = vld [vmem:[#allocation79_spill] sm:$0xff] }
 0x3bd   : > { %v1189_v19 = vadd.f32 %v10413_v1, %v8979_v48  ;;  %v9502_v1 = vadd.f32 %v10432_v25, %v1195_v29  ;;  %v10445_v29 = vld [vmem:[#allocation64_spill] sm:$0xff]  ;;  %v2214_v25 = vadd.f32 %v10450_v21, %v1696_v51  ;;  %v10456_v51 = vld [vmem:[#allocation75_spill] sm:$0xff]  ;;  %v2218_v14 = vadd.f32 %v10458_v12, %v9431_v59  ;;  %v10463_v43 = vld [vmem:[#allocation77_spill] sm:$0xff] }
 0x3be   : > { %v2209_v45 = vadd.f32 %v10445_v29, %v1691_v26  ;;  %v10452_v26 = vld [vmem:[#allocation69_spill] sm:$0xff]  ;;  %v2216_v50 = vadd.f32 %v10456_v51, %v9419_v46  ;;  %v10459_v42 = vld [vmem:[#allocation80_spill] sm:$0xff]  ;;  %v10460_v41 = vld [vmem:[#allocation83_spill] sm:$0xff] }
 0x3bf   : > { %v9474_v62 = vadd.f32 %v10420_v8, %v1189_v19  ;;  %v10433_v19 = vld [vmem:[#allocation49_spill] sm:$0xff]  ;;  %v9556_v30 = vadd.f32 %v10455_v0, %v2214_v25  ;;  %v2217_v38 = vadd.f32 %v10459_v42, %v1699_v63  ;;  %v2220_v28 = vadd.f32 %v10460_v41, %v1702_v34  ;;  %v10461_v29 = vld [vmem:[#allocation84_spill] sm:$0xff]  ;;  %v10464_v46 = vld [vmem:[#allocation78_spill] sm:$0xff] }
 0x3c0   : > { %v9505_v54 = vadd.f32 %v10433_v19, %v1198_v17  ;;  %v10440_v8 = vld [vmem:[#allocation57_spill] sm:$0xff]  ;;  %v10446_v17 = vld [vmem:[#allocation67_spill] sm:$0xff]  ;;  %v10467_v21 = vld [vmem:[#allocation82_spill] sm:$0xff] }
 0x3c1   : > { %v9521_v15 = vadd.f32 %v10440_v8, %v2206_v55  ;;  %v2212_v39 = vadd.f32 %v10446_v17, %v1694_v33  ;;  %v9545_v55 = vadd.f32 %v10451_v60, %v2209_v45  ;;  %v10453_v33 = vld [vmem:[#allocation70_spill] sm:$0xff]  ;;  %v2215_v8 = vadd.f32 %v10457_v37, %v9428_v4  ;;  %v10465_v4 = vld [vmem:[#allocation81_spill] sm:$0xff]  ;;  %v10472_v11 = vld [vmem:[#allocation88_spill] sm:$0xff] }
 0x3c2   : > { %v9551_v53 = vadd.f32 %v10453_v33, %v2211_v47  ;;  %v2219_v45 = vadd.f32 %v10461_v29, %v1701_v9  ;;  %v10462_v17 = vld [vmem:[#allocation74_spill] sm:$0xff]  ;;  %v9572_v47 = vadd.f32 %v10463_v43, %v2216_v50  ;;  %v9578_v6 = vadd.f32 %v10465_v4, %v2218_v14  ;;  %v10469_v9 = vld [vmem:[#allocation85_spill] sm:$0xff]  ;;  %v10473_v0 = vld [vmem:[#allocation91_spill] sm:$0xff] }
 0x3c3   : > { %v9548_v27 = vadd.f32 %v10452_v26, %v2212_v39  ;;  %v9569_v39 = vadd.f32 %v10462_v17, %v2213_v5  ;;  %v9575_v13 = vadd.f32 %v10464_v46, %v2215_v8  ;;  %v9581_v34 = vadd.f32 %v10467_v21, %v2217_v38  ;;  %v10471_v26 = vld [vmem:[#allocation87_spill] sm:$0xff]  ;;  %v10474_v50 = vld [vmem:[#allocation92_spill] sm:$0xff]  ;;  %v10481_v46 = vld [vmem:[#allocation97_spill] sm:$0xff] }
 0x3c4   : > { %10466 = vst [vmem:[#allocation3_spill] sm:$0xff] %v9578_v6  ;;  %v9584_v25 = vadd.f32 %v10469_v9, %v2220_v28  ;;  %v2222_v33 = vadd.f32 %v10471_v26, %v9443_v24  ;;  %v2221_v5 = vadd.f32 %v10472_v11, %v9446_v49  ;;  %v2224_v51 = vadd.f32 %v10473_v0, %v9453_v3  ;;  %v10475_v12 = vld [vmem:[#allocation95_spill] sm:$0xff]  ;;  %v10476_v42 = vld [vmem:[#allocation96_spill] sm:$0xff]  ;;  %v10477_v28 = vld [vmem:[#allocation89_spill] sm:$0xff] }
 0x3c5   : > { %10468 = vst [vmem:[#allocation7_spill] sm:$0xff] %v9581_v34  ;;  %v2223_v37 = vadd.f32 %v10474_v50, %v9462_v40  ;;  %v2226_v14 = vadd.f32 %v10475_v12, %v9465_v44  ;;  %v2225_v38 = vadd.f32 %v10476_v42, %v9474_v62  ;;  %v10478_v49 = vld [vmem:[#allocation90_spill] sm:$0xff]  ;;  %v10479_v3 = vld [vmem:[#allocation93_spill] sm:$0xff]  ;;  %v10566_v34 = vld [vmem:[#allocation219_spill] sm:$0xff] }
 0x3c6   : > { %v9604_v29 = vadd.f32 %v10477_v28, %v2222_v33  ;;  %v9610_v17 = vadd.f32 %v10479_v3, %v2224_v51  ;;  %v10480_v40 = vld [vmem:[#allocation94_spill] sm:$0xff]  ;;  %v10485_v33 = vld [vmem:[#allocation103_spill] sm:$0xff]  ;;  %v10486_v51 = vld [vmem:[#allocation104_spill] sm:$0xff] }
 0x3c7   : > { %v9616_v4 = vadd.f32 %v10481_v46, %v2226_v14  ;;  %v10482_v62 = vld [vmem:[#allocation98_spill] sm:$0xff]  ;;  %v2230_v11 = vadd.f32 %v10485_v33, %v9485_v2  ;;  %v2229_v50 = vadd.f32 %v10486_v51, %v9488_v56  ;;  %v10491_v3 = vld [vmem:[#allocation105_spill] sm:$0xff] }
 0x3c9   : > { %v9643_v56 = vadd.f32 %v10491_v3, %v2230_v11 }
 0x3f7   : > { %v5098_v48 = vpop.xlane.xlu0 %5097  ;;  %v5146_v18 = vpop.xlane.xlu1 %5145 }
 0x3f8   : > { %v5209_v61 = vadd.f32 %v9542_v35, %v5146_v18  ;;  %v10470_v18 = vld [vmem:[#allocation86_spill] sm:$0xff]  ;;  %v5193_v8 = vadd.f32 %v9542_v35, %v5098_v48  ;;  %v9613_v48 = vadd.f32 %v10480_v40, %v2223_v37  ;;  %v10487_v37 = vld [vmem:[#allocation107_spill] sm:$0xff] }
 0x3f9   : > { %v9587_v60 = vadd.f32 %v10470_v18, %v2219_v45  ;;  %v9607_v45 = vadd.f32 %v10478_v49, %v2221_v5  ;;  %v10484_v18 = vld [vmem:[#allocation100_spill] sm:$0xff]  ;;  %v2232_v12 = vadd.f32 %v10487_v37, %v9495_v32  ;;  %v10492_v40 = vld [vmem:[#allocation106_spill] sm:$0xff] }
 0x3fa   : > { %v5241_v41 = vmax.f32 %v5209_v61, 0.0  ;;  %v9619_v61 = vadd.f32 %v10482_v62, %v2225_v38  ;;  %v2227_v26 = vadd.f32 %v10484_v18, %v9480_v10  ;;  %v5225_v5 = vmax.f32 %v5193_v8, 0.0  ;;  %v10490_v10 = vld [vmem:[#allocation108_spill] sm:$0xff]  ;;  %v10494_v62 = vld [vmem:[#allocation110_spill] sm:$0xff] }
 0x3fb   : > { %v5101_v31 = vpop.xlane.xlu0 %5100  ;;  %v2231_v2 = vadd.f32 %v10490_v10, %v9502_v1  ;;  %v9646_v32 = vadd.f32 %v10492_v40, %v2229_v50  ;;  %v10497_v50 = vld [vmem:[#allocation113_spill] sm:$0xff]  ;;  %v10504_v40 = vld [vmem:[#allocation119_spill] sm:$0xff] }
 0x3fc   : > { %v5194_v24 = vadd.f32 %v9542_v35, %v5101_v31  ;;  %v10483_v31 = vld [vmem:[#allocation99_spill] sm:$0xff]  ;;  %v6255_v14 = vmul.f32 -1.442695, %v5241_v41  ;;  %v10493_v41 = vld [vmem:[#allocation109_spill] sm:$0xff]  ;;  %v6239_v18 = vmul.f32 -1.442695, %v5225_v5 }
 0x3fd   : > { %v2228_v21 = vadd.f32 %v10483_v31, %v9477_v52  ;;  %v10488_v52 = vld [vmem:[#allocation101_spill] sm:$0xff]  ;;  %v9652_v31 = vadd.f32 %v10494_v62, %v2231_v2  ;;  %v10500_v5 = vld [vmem:[#allocation114_spill] sm:$0xff] }
 0x3fe   : > { %v5226_v42 = vmax.f32 %v5194_v24, 0.0  ;;  %v9649_v24 = vadd.f32 %v10493_v41, %v2232_v12  ;;  %7035 = vpow2.f32 %v6255_v14  ;;  %v10503_v2 = vld [vmem:[#allocation117_spill] sm:$0xff] }
 0x3ff   : > { %v5104_v16 = vpop.xlane.xlu1 %5103  ;;  %v5149_v19 = vpop.xlane.xlu0 %5148  ;;  %v9634_v38 = vadd.f32 %v10488_v52, %v2228_v21  ;;  %v10495_v21 = vld [vmem:[#allocation111_spill] sm:$0xff]  ;;  %7037 = vpow2.f32 %v6239_v18  ;;  %v10508_v18 = vld [vmem:[#allocation121_spill] sm:$0xff] }
 0x400   : > { %v5195_v9 = vadd.f32 %v9542_v35, %v5104_v16  ;;  %v5210_v0 = vadd.f32 %v9542_v35, %v5149_v19  ;;  %v10489_v16 = vld [vmem:[#allocation102_spill] sm:$0xff]  ;;  %v2234_v1 = vadd.f32 %v10495_v21, %v9505_v54  ;;  %v6240_v11 = vmul.f32 -1.442695, %v5226_v42 }
 0x401   : > { %v9637_v28 = vadd.f32 %v10489_v16, %v2227_v26  ;;  %v10496_v26 = vld [vmem:[#allocation112_spill] sm:$0xff] }
 0x402   : > { %v5227_v46 = vmax.f32 %v5195_v9, 0.0  ;;  %v2233_v33 = vadd.f32 %v10496_v26, %v9510_v58  ;;  %v9660_v37 = vadd.f32 %v10497_v50, %v2234_v1  ;;  %v10499_v9 = vld [vmem:[#allocation115_spill] sm:$0xff]  ;;  %v10502_v58 = vld [vmem:[#allocation116_spill] sm:$0xff]  ;;  %7039 = vpow2.f32 %v6240_v11  ;;  %v10509_v11 = vld [vmem:[#allocation122_spill] sm:$0xff] }
 0x403   : > { %v5107_v59 = vpop.xlane.xlu1 %5106  ;;  %v5152_v63 = vpop.xlane.xlu0 %5151  ;;  %v3240_v12 = vadd.f32 %v10499_v9, %v9513_v36  ;;  %v3239_v14 = vadd.f32 %v10502_v58, %v9516_v7  ;;  %v3242_v36 = vadd.f32 %v10504_v40, %v9521_v15  ;;  %v10506_v7 = vld [vmem:[#allocation123_spill] sm:$0xff]  ;;  %v10507_v9 = vld [vmem:[#allocation118_spill] sm:$0xff] }
 0x404   : > { %v5196_v8 = vadd.f32 %v9542_v35, %v5107_v59  ;;  %v5242_v59 = vmax.f32 %v5210_v0, 0.0  ;;  %v5211_v51 = vadd.f32 %v9542_v35, %v5152_v63  ;;  %10498 = vst [vmem:[#allocation8_spill] sm:$0xff] %v9660_v37  ;;  %v9666_v0 = vadd.f32 %v10500_v5, %v2233_v33  ;;  %v10513_v5 = vld [vmem:[#allocation128_spill] sm:$0xff] }
 0x405   : > { %v6241_v42 = vmul.f32 -1.442695, %v5227_v46  ;;  %v9672_v3 = vadd.f32 %v10503_v2, %v3240_v12  ;;  %v3244_v46 = vadd.f32 %v10506_v7, %v9529_v23  ;;  %v9683_v15 = vadd.f32 %v10507_v9, %v3239_v14  ;;  %v10511_v12 = vld [vmem:[#allocation125_spill] sm:$0xff]  ;;  %v10516_v9 = vld [vmem:[#allocation130_spill] sm:$0xff] }
 0x406   : > { %v5228_v52 = vmax.f32 %v5196_v8, 0.0  ;;  %10501 = vst [vmem:[#allocation4_spill] sm:$0xff] %v9666_v0  ;;  %v6256_v8 = vmul.f32 -1.442695, %v5242_v59  ;;  %v5243_v62 = vmax.f32 %v5211_v51, 0.0  ;;  %v9686_v59 = vadd.f32 %v10508_v18, %v3242_v36  ;;  %v10515_v7 = vld [vmem:[#allocation129_spill] sm:$0xff] }
 0x407   : > { %v5110_v43 = vpop.xlane.xlu1 %5109  ;;  %v5155_v44 = vpop.xlane.xlu0 %5154  ;;  %7041 = vpow2.f32 %v6241_v42  ;;  %v3245_v58 = vadd.f32 %v10513_v5, %v9545_v55  ;;  %v10520_v18 = vld [vmem:[#allocation147_spill] sm:$0xff] }
 0x408   : > { %v5197_v16 = vadd.f32 %v9542_v35, %v5110_v43  ;;  %v5212_v63 = vadd.f32 %v9542_v35, %v5155_v44  ;;  %v10505_v43 = vld [vmem:[#allocation120_spill] sm:$0xff]  ;;  %v6242_v1 = vmul.f32 -1.442695, %v5228_v52  ;;  %v9694_v52 = vadd.f32 %v10511_v12, %v3244_v46 }
 0x409   : > { %v3241_v41 = vadd.f32 %v10505_v43, %v9524_v22  ;;  %7043 = vpow2.f32 %v6256_v8  ;;  %v6257_v14 = vmul.f32 -1.442695, %v5243_v62  ;;  %v9709_v55 = vadd.f32 %v10516_v9, %v3245_v58  ;;  %v10517_v62 = vld [vmem:[#allocation131_spill] sm:$0xff] }
 0x40a   : > { %v5229_v44 = vmax.f32 %v5197_v16, 0.0  ;;  %v5244_v22 = vmax.f32 %v5212_v63, 0.0  ;;  %7045 = vpow2.f32 %v6242_v1  ;;  %v10518_v1 = vld [vmem:[#allocation132_spill] sm:$0xff] }
 0x40b   : > { %v5113_v19 = vpop.xlane.xlu1 %5112  ;;  %v5158_v49 = vpop.xlane.xlu0 %5157  ;;  %v9689_v51 = vadd.f32 %v10509_v11, %v3241_v41  ;;  %v3256_v11 = vadd.f32 %v10520_v18, %v9584_v25  ;;  %7047 = vpow2.f32 %v6257_v14 }
 0x40c   : > { %v5198_v21 = vadd.f32 %v9542_v35, %v5113_v19  ;;  %v5213_v26 = vadd.f32 %v9542_v35, %v5158_v49  ;;  %v10510_v19 = vld [vmem:[#allocation124_spill] sm:$0xff]  ;;  %v10512_v49 = vld [vmem:[#allocation127_spill] sm:$0xff]  ;;  %v6243_v42 = vmul.f32 -1.442695, %v5229_v44  ;;  %v6258_v46 = vmul.f32 -1.442695, %v5244_v22 }
 0x40d   : > { %v3243_v23 = vadd.f32 %v10510_v19, %v9535_v20  ;;  %v3246_v16 = vadd.f32 %v10512_v49, %v9538_v57  ;;  %v10514_v20 = vld [vmem:[#allocation126_spill] sm:$0xff]  ;;  %v10519_v44 = vld [vmem:[#allocation135_spill] sm:$0xff]  ;;  %v10521_v19 = vld [vmem:[#allocation148_spill] sm:$0xff] }
 0x40e   : > { %v5230_v2 = vmax.f32 %v5198_v21, 0.0  ;;  %v5245_v63 = vmax.f32 %v5213_v26, 0.0  ;;  %v3248_v21 = vadd.f32 %v10517_v62, %v9548_v27  ;;  %v3250_v26 = vadd.f32 %v10519_v44, %v9556_v30  ;;  %v10523_v30 = vld [vmem:[#allocation134_spill] sm:$0xff]  ;;  %v10528_v62 = vld [vmem:[#allocation151_spill] sm:$0xff] }
 0x40f   : > { %v5116_v10 = vpop.xlane.xlu1 %5115  ;;  %v5161_v54 = vpop.xlane.xlu0 %5160  ;;  %v9702_v41 = vadd.f32 %v10514_v20, %v3243_v23  ;;  %v9705_v8 = vadd.f32 %v10515_v7, %v3246_v16  ;;  %v3255_v22 = vadd.f32 %v10521_v19, %v9587_v60  ;;  %7049 = vpow2.f32 %v6243_v42  ;;  %v10524_v60 = vld [vmem:[#allocation136_spill] sm:$0xff] }
 0x410   : > { %v5199_v40 = vadd.f32 %v9542_v35, %v5116_v10  ;;  %v5214_v57 = vadd.f32 %v9542_v35, %v5161_v54  ;;  %v3247_v10 = vadd.f32 %v10518_v1, %v9551_v53  ;;  %v6244_v54 = vmul.f32 -1.442695, %v5230_v2  ;;  %v7036_v23 = vpop.eup %7035  ;;  %v10522_v53 = vld [vmem:[#allocation133_spill] sm:$0xff] }
 0x411   : > { %v6259_v12 = vmul.f32 -1.442695, %v5245_v63  ;;  %v9725_v58 = vadd.f32 %v10522_v53, %v3248_v21  ;;  %7051 = vpow2.f32 %v6258_v46  ;;  %v9732_v14 = vadd.f32 %v10524_v60, %v9569_v39  ;;  %v10525_v2 = vld [vmem:[#allocation137_spill] sm:$0xff]  ;;  %v7038_v9 = vpop.eup %7037  ;;  %v10529_v39 = vld [vmem:[#allocation152_spill] sm:$0xff] }
 0x412   : > { %v5231_v49 = vmax.f32 %v5199_v40, 0.0  ;;  %v9728_v20 = vadd.f32 %v10523_v30, %v3247_v10  ;;  %v5246_v25 = vmax.f32 %v5214_v57, 0.0  ;;  %v9735_v42 = vadd.f32 %v10525_v2, %v3250_v26  ;;  %v10526_v63 = vld [vmem:[#allocation149_spill] sm:$0xff]  ;;  %v10527_v40 = vld [vmem:[#allocation150_spill] sm:$0xff]  ;;  %v7040_v57 = vpop.eup %7039  ;;  %v10533_v60 = vld [vmem:[#allocation156_spill] sm:$0xff] }
 0x413   : > { %v5119_v33 = vpop.xlane.xlu1 %5118  ;;  %v5164_v50 = vpop.xlane.xlu0 %5163  ;;  %v9741_v7 = vadd.f32 %v10527_v40, %v3255_v22  ;;  %v3258_v21 = vadd.f32 %v10528_v62, %v9604_v29  ;;  %v5369_v1 = vadd.f32 1.0, %v7036_v23  ;;  %7053 = vpow2.f32 %v6244_v54  ;;  %v10531_v22 = vld [vmem:[#allocation155_spill] sm:$0xff]  ;;  %v10532_v23 = vld [vmem:[#allocation154_spill] sm:$0xff] }
 0x414   : > { %v5200_v27 = vadd.f32 %v9542_v35, %v5119_v33  ;;  %v9738_v33 = vadd.f32 %v10526_v63, %v3256_v11  ;;  %v3257_v10 = vadd.f32 %v10529_v39, %v9607_v45  ;;  %7055 = vpow2.f32 %v6259_v12  ;;  %v10530_v11 = vld [vmem:[#allocation153_spill] sm:$0xff]  ;;  %v7042_v54 = vpop.eup %7041  ;;  %v10535_v62 = vld [vmem:[#allocation158_spill] sm:$0xff] }
 0x415   : > { %v6245_v44 = vmul.f32 -1.442695, %v5231_v49  ;;  %v9749_v19 = vadd.f32 %v10530_v11, %v3258_v21  ;;  %v3260_v53 = vadd.f32 %v10531_v22, %v9610_v17  ;;  %v6260_v30 = vmul.f32 -1.442695, %v5246_v25  ;;  %v10534_v63 = vld [vmem:[#allocation157_spill] sm:$0xff]  ;;  %v10536_v21 = vld [vmem:[#allocation159_spill] sm:$0xff] }
 0x416   : > { %v5232_v26 = vmax.f32 %v5200_v27, 0.0  ;;  %v5215_v29 = vadd.f32 %v9542_v35, %v5164_v50  ;;  %v3259_v45 = vadd.f32 %v10533_v60, %v9613_v48  ;;  %v5353_v12 = vadd.f32 1.0, %v7038_v9  ;;  %v7044_v2 = vpop.eup %7043 }
 0x417   : > { %v5122_v36 = vpop.xlane.xlu1 %5121  ;;  %v5167_v43 = vpop.xlane.xlu0 %5166  ;;  %v9761_v40 = vadd.f32 %v10534_v63, %v3260_v53  ;;  %7057 = vrcp.f32 %v5369_v1  ;;  %v5354_v17 = vadd.f32 1.0, %v7040_v57  ;;  %v3262_v39 = vadd.f32 %v10536_v21, %v9616_v4  ;;  %v10540_v63 = vld [vmem:[#allocation163_spill] sm:$0xff] }
 0x418   : > { %v5201_v46 = vadd.f32 %v9542_v35, %v5122_v36  ;;  %v9755_v36 = vadd.f32 %v10532_v23, %v3257_v10  ;;  %v5216_v49 = vadd.f32 %v9542_v35, %v5167_v43  ;;  %v9764_v50 = vadd.f32 %v10535_v62, %v3259_v45  ;;  %v7046_v9 = vpop.eup %7045  ;;  %v10537_v43 = vld [vmem:[#allocation160_spill] sm:$0xff]  ;;  %v10538_v23 = vld [vmem:[#allocation161_spill] sm:$0xff]  ;;  %v10539_v45 = vld [vmem:[#allocation162_spill] sm:$0xff] }
 0x419   : > { %7059 = vpow2.f32 %v6245_v44  ;;  %v6246_v10 = vmul.f32 -1.442695, %v5232_v26  ;;  %v3261_v11 = vadd.f32 %v10537_v43, %v9619_v61  ;;  %v5355_v22 = vadd.f32 1.0, %v7042_v54  ;;  %v7048_v26 = vpop.eup %7047 }
 0x41a   : > { %v5233_v25 = vmax.f32 %v5201_v46, 0.0  ;;  %7061 = vpow2.f32 %v6260_v30  ;;  %v5247_v53 = vmax.f32 %v5215_v29, 0.0  ;;  %v5370_v1 = vadd.f32 1.0, %v7044_v2  ;;  %v10541_v30 = vld [vmem:[#allocation164_spill] sm:$0xff]  ;;  %v10542_v2 = vld [vmem:[#allocation179_spill] sm:$0xff] }
 0x41b   : > { %v5125_v16 = vpop.xlane.xlu1 %5124  ;;  %v9722_v5 = vpop.xlane.xlu0 %5169  ;;  %7063 = vrcp.f32 %v5353_v12  ;;  %v5248_v57 = vmax.f32 %v5216_v49, 0.0  ;;  %v9772_v60 = vadd.f32 %v10538_v23, %v3262_v39  ;;  %v9775_v4 = vadd.f32 %v10539_v45, %v3261_v11 }
 0x41c   : > { %v5202_v46 = vadd.f32 %v9542_v35, %v5125_v16  ;;  %7065 = vrcp.f32 %v5354_v17  ;;  %v6247_v44 = vmul.f32 -1.442695, %v5233_v25  ;;  %v9779_v61 = vadd.f32 %v10540_v63, %v9634_v38  ;;  %v7050_v49 = vpop.eup %7049 }
 0x41d   : > { %v3263_v29 = vadd.f32 %v10541_v30, %v9637_v28  ;;  %v5356_v54 = vadd.f32 1.0, %v7046_v9  ;;  %7067 = vpow2.f32 %v6246_v10  ;;  %v4277_v62 = vadd.f32 %v10542_v2, %v9672_v3  ;;  %v10543_v9 = vld [vmem:[#allocation166_spill] sm:$0xff]  ;;  %v10544_v3 = vld [vmem:[#allocation180_spill] sm:$0xff] }
 0x41e   : > { %7069 = vrcp.f32 %v5355_v22  ;;  %v6261_v17 = vmul.f32 -1.442695, %v5247_v53  ;;  %v5217_v25 = vadd.f32 %v9542_v35, %v9722_v5  ;;  %v7052_v21 = vpop.eup %7051  ;;  %v6262_v38 = vmul.f32 -1.442695, %v5248_v57  ;;  %v10545_v53 = vld [vmem:[#allocation181_spill] sm:$0xff] }
 0x41f   : > { %v5128_v18 = vpop.xlane.xlu1 %5127  ;;  %v5173_v27 = vpop.xlane.xlu0 %5172  ;;  %7071 = vrcp.f32 %v5370_v1  ;;  %v5234_v39 = vmax.f32 %v5202_v46, 0.0  ;;  %v9791_v10 = vadd.f32 %v10543_v9, %v3263_v29  ;;  %v5371_v43 = vadd.f32 1.0, %v7048_v26  ;;  %v10547_v29 = vld [vmem:[#allocation182_spill] sm:$0xff]  ;;  %v10548_v9 = vld [vmem:[#allocation185_spill] sm:$0xff] }
 0x420   : > { %v5203_v28 = vadd.f32 %v9542_v35, %v5128_v18  ;;  %7073 = vpow2.f32 %v6247_v44  ;;  %v5218_v11 = vadd.f32 %v9542_v35, %v5173_v27  ;;  %v7054_v23 = vpop.eup %7053  ;;  %v4276_v22 = vadd.f32 %v10544_v3, %v9683_v15  ;;  %v10546_v18 = vld [vmem:[#allocation184_spill] sm:$0xff]  ;;  %v10551_v3 = vld [vmem:[#allocation190_spill] sm:$0xff] }
 0x421   : > { %v9797_v45 = vadd.f32 %v10545_v53, %v4277_v62  ;;  %7075 = vrcp.f32 %v5356_v54  ;;  %v5357_v5 = vadd.f32 1.0, %v7050_v49  ;;  %v7056_v57 = vpop.eup %7055  ;;  %v4279_v46 = vadd.f32 %v10546_v18, %v9686_v59 }
 0x422   : > { %v5372_v63 = vadd.f32 1.0, %v7052_v21  ;;  %7077 = vpow2.f32 %v6261_v17  ;;  %v5249_v44 = vmax.f32 %v5217_v25, 0.0  ;;  %v6248_v27 = vmul.f32 -1.442695, %v5234_v39  ;;  %v10549_v21 = vld [vmem:[#allocation186_spill] sm:$0xff] }
 0x423   : > { %v5131_v48 = vpop.xlane.xlu1 %5130  ;;  %v5176_v12 = vpop.xlane.xlu0 %5175  ;;  %7079 = vpow2.f32 %v6262_v38  ;;  %v5235_v26 = vmax.f32 %v5203_v28, 0.0  ;;  %v9805_v2 = vadd.f32 %v10547_v29, %v4276_v22  ;;  %v5358_v54 = vadd.f32 1.0, %v7054_v23 }
 0x424   : > { %v5204_v30 = vadd.f32 %v9542_v35, %v5131_v48  ;;  %7081 = vrcp.f32 %v5371_v43  ;;  %v5250_v49 = vmax.f32 %v5218_v11, 0.0  ;;  %v9807_v62 = vpop.eup %7057  ;;  %v4278_v59 = vadd.f32 %v10548_v9, %v9689_v51  ;;  %v10550_v48 = vld [vmem:[#allocation189_spill] sm:$0xff] }
 0x425   : > { %v4797_v17 = vadd.f32 %v10549_v21, %v4279_v46  ;;  %7083 = vrcp.f32 %v5357_v5  ;;  %v5373_v25 = vadd.f32 1.0, %v7056_v57  ;;  %v4281_v28 = vadd.f32 %v10550_v48, %v9694_v52  ;;  %v10552_v5 = vld [vmem:[#allocation187_spill] sm:$0xff]  ;;  %v10553_v46 = vld [vmem:[#allocation194_spill] sm:$0xff]  ;;  %v10554_v21 = vld [vmem:[#allocation192_spill] sm:$0xff] }
 0x426   : > { %v7060_v39 = vpop.eup %7059  ;;  %v4280_v43 = vadd.f32 %v10551_v3, %v9702_v41  ;;  %7085 = vrcp.f32 %v5372_v63  ;;  %v6263_v11 = vmul.f32 -1.442695, %v5249_v44  ;;  %v6249_v22 = vmul.f32 -1.442695, %v5235_v26  ;;  %v10555_v41 = vld [vmem:[#allocation193_spill] sm:$0xff]  ;;  %v10557_v3 = vld [vmem:[#allocation196_spill] sm:$0xff] }
 0x427   : > { %v9783_v16 = vpop.xlane.xlu1 %5133  ;;  %v5179_v15 = vpop.xlane.xlu0 %5178  ;;  %7087 = vpow2.f32 %v6248_v27  ;;  %v5236_v53 = vmax.f32 %v5204_v30, 0.0  ;;  %v5219_v51 = vadd.f32 %v9542_v35, %v5176_v12  ;;  %v4796_v57 = vadd.f32 %v10552_v5, %v4278_v59  ;;  %v10556_v30 = vld [vmem:[#allocation195_spill] sm:$0xff] }
 0x428   : > { %v7062_v23 = vpop.eup %7061  ;;  %v4283_v29 = vadd.f32 %v10553_v46, %v9705_v8  ;;  %7089 = vrcp.f32 %v5358_v54  ;;  %v6264_v9 = vmul.f32 -1.442695, %v5250_v49  ;;  %v4799_v48 = vadd.f32 %v10554_v21, %v4281_v28  ;;  %v10558_v49 = vld [vmem:[#allocation199_spill] sm:$0xff]  ;;  %v10559_v46 = vld [vmem:[#allocation214_spill] sm:$0xff] }
 0x429   : > { %v7064_v18 = vpop.eup %7063  ;;  %v9824_v63 = vadd.f32 %v10555_v41, %v4280_v43  ;;  %7091 = vrcp.f32 %v5373_v25  ;;  %v5359_v44 = vadd.f32 1.0, %v7060_v39  ;;  %v4282_v59 = vadd.f32 %v10556_v30, %v9709_v55  ;;  %v10560_v55 = vld [vmem:[#allocation215_spill] sm:$0xff] }
 0x42a   : > { %v7066_v52 = vpop.eup %7065  ;;  %v9831_v5 = vadd.f32 %v10557_v3, %v4283_v29  ;;  %v5374_v8 = vadd.f32 1.0, %v7062_v23  ;;  %7093 = vpow2.f32 %v6263_v11  ;;  %v4284_v28 = vadd.f32 %v10558_v49, %v9728_v20  ;;  %v10561_v29 = vld [vmem:[#allocation197_spill] sm:$0xff] }
 0x42b   : > { %v9799_v1 = vpop.xlane.xlu1 %5136  ;;  %v5182_v27 = vpop.xlane.xlu0 %5181  ;;  %7095 = vpow2.f32 %v6249_v22  ;;  %v6250_v25 = vmul.f32 -1.442695, %v5236_v53  ;;  %v5251_v39 = vmax.f32 %v5219_v51, 0.0  ;;  %v4293_v21 = vadd.f32 %v10559_v46, %v9738_v33  ;;  %v10562_v20 = vld [vmem:[#allocation201_spill] sm:$0xff]  ;;  %v10563_v33 = vld [vmem:[#allocation216_spill] sm:$0xff] }
 0x42c   : > { %v7068_v12 = vpop.eup %7067  ;;  %v4292_v41 = vadd.f32 %v10560_v55, %v9741_v7  ;;  %7097 = vpow2.f32 %v6264_v9  ;;  %v5205_v11 = vadd.f32 %v9542_v35, %v9783_v16  ;;  %v9846_v30 = vadd.f32 %v10561_v29, %v4282_v59  ;;  %v10564_v7 = vld [vmem:[#allocation217_spill] sm:$0xff]  ;;  %v10565_v59 = vld [vmem:[#allocation218_spill] sm:$0xff] }
 0x42d   : > { %v9833_v54 = vpop.eup %7069  ;;  %v9849_v22 = vadd.f32 %v10562_v20, %v4284_v28  ;;  %7099 = vrcp.f32 %v5359_v44  ;;  %v5360_v53 = vadd.f32 1.0, %v7068_v12  ;;  %v9854_v49 = vadd.f32 %v10563_v33, %v4293_v21 }
 0x42e   : > { %v9837_v43 = vpop.eup %7071  ;;  %v9857_v9 = vadd.f32 %v10564_v7, %v4292_v41  ;;  %7101 = vrcp.f32 %v5374_v8  ;;  %v5220_v16 = vadd.f32 %v9542_v35, %v5179_v15  ;;  %v4295_v55 = vadd.f32 %v10565_v59, %v9749_v19 }
 0x42f   : > { %v9812_v38 = vpop.xlane.xlu1 %5139  ;;  %v7074_v23 = vpop.eup %7073  ;;  %7103 = vpow2.f32 %v6250_v25  ;;  %v6265_v28 = vmul.f32 -1.442695, %v5251_v39  ;;  %v5237_v21 = vmax.f32 %v5205_v11, 0.0  ;;  %v5206_v19 = vadd.f32 %v9542_v35, %v9799_v1 }
 0x430   : > { %v7076_v3 = vpop.eup %7075  ;;  %v5185_v44 = vpop.xlane.xlu0 %5184  ;;  %v5361_v20 = vadd.f32 1.0, %v7074_v23  ;;  %7105 = vrcp.f32 %v5360_v53  ;;  %v5221_v23 = vadd.f32 %v9542_v35, %v5182_v27  ;;  %v4294_v1 = vadd.f32 %v10566_v34, %v9755_v36 }
 0x431   : > { %v7078_v46 = vpop.eup %7077  ;;  %v5222_v34 = vadd.f32 %v9542_v35, %v5185_v44  ;;  %v10567_v44 = vld [vmem:[#allocation220_spill] sm:$0xff] }
 0x432   : > { %v7080_v29 = vpop.eup %7079  ;;  %v5375_v7 = vadd.f32 1.0, %v7078_v46  ;;  %7107 = vrcp.f32 %v5361_v20  ;;  %v5238_v46 = vmax.f32 %v5206_v19, 0.0 }
 0x433   : > { %v9826_v26 = vpop.xlane.xlu1 %5142  ;;  %v9867_v33 = vpop.eup %7081  ;;  %7109 = vpow2.f32 %v6265_v28 }
 0x434   : > { %v7084_v39 = vpop.eup %7083  ;;  %v5188_v27 = vpop.xlane.xlu0 %5187  ;;  %7111 = vrcp.f32 %v5375_v7  ;;  %v10568_v7 = vld [vmem:[#allocation221_spill] sm:$0xff] }
 0x435   : > { %v9873_v59 = vpop.eup %7085 }
 0x436   : > { %v7088_v53 = vpop.eup %7087 }
 0x437   : > { %v9851_v51 = vpop.permute.xlu1 %4831  ;;  %v7090_v0 = vpop.eup %7089 }
 0x438   : > { %v4834_v12 = vadd.f32 %v9851_v51, %v9805_v2  ;;  %v4835_v41 = vadd.f32 %v9851_v51, %v9797_v45  ;;  %v4837_v8 = vadd.f32 %v9851_v51, %v4797_v17  ;;  %v4836_v25 = vadd.f32 %v9851_v51, %v4796_v57 }
 0x439   : > { %v5252_v2 = vmax.f32 %v5220_v16, 0.0  ;;  %v5376_v45 = vadd.f32 1.0, %v7080_v29  ;;  %v4839_v37 = vadd.f32 %v9851_v51, %v4799_v48  ;;  %v6251_v16 = vmul.f32 -1.442695, %v5237_v21  ;;  %v9881_v29 = vpop.eup %7091 }
 0x43a   : > { %v4866_v15 = vmax.f32 %v4834_v12, 0.0  ;;  %v4867_v11 = vmax.f32 %v4835_v41, 0.0  ;;  %v4869_v17 = vmax.f32 %v4837_v8, 0.0  ;;  %v4868_v57 = vmax.f32 %v4836_v25, 0.0  ;;  %v7094_v36 = vpop.eup %7093 }
 0x43b   : > { %v6266_v48 = vmul.f32 -1.442695, %v5252_v2  ;;  %v5253_v41 = vmax.f32 %v5221_v23, 0.0  ;;  %7113 = vrcp.f32 %v5376_v45  ;;  %v4871_v28 = vmax.f32 %v4839_v37, 0.0 }
 0x43c   : > { %v5449_v6 = vmul.f32 %v7064_v18, %v4866_v15  ;;  %v5450_v12 = vmul.f32 %v7066_v52, %v4867_v11  ;;  %v4838_v18 = vadd.f32 %v9851_v51, %v9824_v63  ;;  %v5452_v52 = vmul.f32 %v7076_v3, %v4869_v17 }
 0x43d   : > { %v4841_v20 = vadd.f32 %v9851_v51, %v9831_v5  ;;  %v5362_v21 = vadd.f32 1.0, %v7088_v53  ;;  %v5451_v63 = vmul.f32 %v9833_v54, %v4868_v57  ;;  %v4840_v19 = vadd.f32 %v9851_v51, %v9846_v30 }
 0x43e   : > { %5513 = vrot.lane.b32.xlu0 %v5449_v6, %s7173_s13  ;;  %5515 = vrot.lane.b32.xlu1 %v5450_v12, %s7173_s13  ;;  %v9887_v6 = vpop.eup %7095  ;;  %v4870_v8 = vmax.f32 %v4838_v18, 0.0  ;;  %v4813_v25 = vadd.f32 %v10567_v44, %v4295_v55  ;;  %v4812_v2 = vadd.f32 %v10568_v7, %v4294_v1  ;;  %7115 = vpow2.f32 %v6251_v16  ;;  %v5191_v55 = vpop.xlane.xlu0 %5190  ;;  %v10569_v16 = vld [vmem:[#allocation222_spill] sm:$0xff]  ;;  %v10570_v18 = vld [vmem:[#allocation223_spill] sm:$0xff] }
 0x43f   : > { %v7098_v15 = vpop.eup %7097  ;;  %v6252_v3 = vmul.f32 -1.442695, %v5238_v46  ;;  %7117 = vpow2.f32 %v6266_v48  ;;  %v6267_v5 = vmul.f32 -1.442695, %v5253_v41  ;;  %v5207_v23 = vadd.f32 %v9542_v35, %v9812_v38 }
 0x440   : > { %v7100_v37 = vpop.eup %7099  ;;  %v5254_v54 = vmax.f32 %v5222_v34, 0.0  ;;  %v5223_v30 = vadd.f32 %v9542_v35, %v5188_v27  ;;  %v5454_v45 = vmul.f32 %v7090_v0, %v4871_v28  ;;  %v4873_v17 = vmax.f32 %v4841_v20, 0.0 }
 0x441   : > { %v9898_v11 = vpop.eup %7101  ;;  %v4850_v53 = vadd.f32 %v9851_v51, %v9857_v9  ;;  %7119 = vrcp.f32 %v5362_v21  ;;  %v5453_v12 = vmul.f32 %v7084_v39, %v4870_v8  ;;  %v4872_v57 = vmax.f32 %v4840_v19, 0.0  ;;  %v10572_v19 = vld [vmem:[#allocation225_spill] sm:$0xff] }
 0x442   : > { %5519 = vrot.lane.b32.xlu0 %v5452_v52, %s7173_s13  ;;  %5517 = vrot.lane.b32.xlu1 %v5451_v63, %s7173_s13  ;;  %v9903_v1 = vpop.eup %7103  ;;  %v4842_v38 = vadd.f32 %v9851_v51, %v9849_v22  ;;  %v4297_v46 = vadd.f32 %v10569_v16, %v9761_v40  ;;  %v4296_v27 = vadd.f32 %v10570_v18, %v9764_v50  ;;  %v5377_v48 = vadd.f32 1.0, %v7094_v36  ;;  %v10571_v63 = vld [vmem:[#allocation224_spill] sm:$0xff]  ;;  %v10576_v16 = vld [vmem:[#allocation234_spill] sm:$0xff] }
 0x443   : > { %7121 = vpow2.f32 %v6252_v3  ;;  %v7106_v0 = vpop.eup %7105  ;;  %v5239_v9 = vmax.f32 %v5207_v23, 0.0  ;;  %v6268_v41 = vmul.f32 -1.442695, %v5254_v54  ;;  %v5224_v39 = vadd.f32 %v9542_v35, %v5191_v55 }
 0x444   : > { %7123 = vpow2.f32 %v6267_v5  ;;  %v5255_v34 = vmax.f32 %v5223_v30, 0.0  ;;  %v5456_v22 = vmul.f32 %v7106_v0, %v4873_v17  ;;  %v4882_v52 = vmax.f32 %v4850_v53, 0.0  ;;  %v7108_v21 = vpop.eup %7107  ;;  %v10574_v17 = vld [vmem:[#allocation229_spill] sm:$0xff] }
 0x445   : > { %v4852_v40 = vadd.f32 %v9851_v51, %v4812_v2  ;;  %v5208_v50 = vadd.f32 %v9542_v35, %v9826_v26  ;;  %v5455_v36 = vmul.f32 %v7100_v37, %v4872_v57  ;;  %v4874_v28 = vmax.f32 %v4842_v38, 0.0  ;;  %v7110_v3 = vpop.eup %7109  ;;  %v10573_v2 = vld [vmem:[#allocation227_spill] sm:$0xff] }
 0x446   : > { %5523 = vrot.lane.b32.xlu0 %v5454_v45, %s7173_s13  ;;  %5521 = vrot.lane.b32.xlu1 %v5453_v12, %s7173_s13  ;;  %v4851_v20 = vadd.f32 %v9851_v51, %v9854_v49  ;;  %v4299_v8 = vadd.f32 %v10571_v63, %v9772_v60  ;;  %v4814_v44 = vadd.f32 %v10572_v19, %v4296_v27  ;;  %7125 = vrcp.f32 %v5377_v48  ;;  %v9926_v49 = vpop.eup %7111  ;;  %v10575_v12 = vld [vmem:[#allocation237_spill] sm:$0xff] }
 0x447   : > { %v5378_v7 = vadd.f32 1.0, %v7098_v15  ;;  %v4298_v5 = vadd.f32 %v10573_v2, %v9775_v4  ;;  %v6253_v35 = vmul.f32 -1.442695, %v5239_v9  ;;  %7127 = vpow2.f32 %v6268_v41 }
 0x448   : > { %v5256_v26 = vmax.f32 %v5224_v39, 0.0  ;;  %v6269_v37 = vmul.f32 -1.442695, %v5255_v34  ;;  %v5465_v60 = vmul.f32 %v9807_v62, %v4882_v52  ;;  %v4884_v23 = vmax.f32 %v4852_v40, 0.0  ;;  %v9930_v15 = vpop.eup %7113  ;;  %v10578_v40 = vld [vmem:[#allocation168_spill] sm:$0xff] }
 0x449   : > { %v4854_v54 = vadd.f32 %v9851_v51, %v4814_v44  ;;  %v5240_v30 = vmax.f32 %v5208_v50, 0.0  ;;  %v5457_v55 = vmul.f32 %v7108_v21, %v4874_v28  ;;  %v4883_v45 = vmax.f32 %v4851_v20, 0.0  ;;  %v10580_v20 = vld [vmem:[#allocation236_spill] sm:$0xff]  ;;  %v10581_v21 = vld [vmem:[#allocation239_spill] sm:$0xff] }
 0x44a   : > { %5527 = vrot.lane.b32.xlu0 %v5456_v22, %s7173_s13  ;;  %5525 = vrot.lane.b32.xlu1 %v5455_v36, %s7173_s13  ;;  %v4853_v4 = vadd.f32 %v9851_v51, %v4813_v25  ;;  %v4300_v53 = vadd.f32 %v10574_v17, %v9791_v10  ;;  %v4816_v57 = vadd.f32 %v10575_v12, %v4298_v5  ;;  %v5363_v38 = vadd.f32 1.0, %v9887_v6  ;;  %v10579_v36 = vld [vmem:[#allocation198_spill] sm:$0xff] }
 0x44b   : > { %7129 = vrcp.f32 %v5378_v7  ;;  %v7116_v62 = vpop.eup %7115  ;;  %v4815_v18 = vadd.f32 %v10576_v16, %v4297_v46  ;;  %v5379_v27 = vadd.f32 1.0, %v7110_v3  ;;  %v6270_v48 = vmul.f32 -1.442695, %v5256_v26  ;;  %v10577_v46 = vld [vmem:[#allocation165_spill] sm:$0xff]  ;;  %v10584_v26 = vld [vmem:[#allocation226_spill] sm:$0xff] }
 0x44c   : > { %7131 = vpow2.f32 %v6253_v35  ;;  %v7118_v0 = vpop.eup %7117  ;;  %v5467_v25 = vmul.f32 %v9867_v33, %v4884_v23  ;;  %v4886_v10 = vmax.f32 %v4854_v54, 0.0  ;;  %v4856_v9 = vadd.f32 %v9851_v51, %v4816_v57  ;;  %v10585_v23 = vld [vmem:[#allocation140_spill] sm:$0xff]  ;;  %v10589_v17 = vld [vmem:[#allocation238_spill] sm:$0xff] }
 0x44d   : > { %7133 = vpow2.f32 %v6269_v37  ;;  %v6254_v41 = vmul.f32 -1.442695, %v5240_v30  ;;  %v5466_v6 = vmul.f32 %v9837_v43, %v4883_v45  ;;  %v4885_v39 = vmax.f32 %v4853_v4, 0.0  ;;  %v10588_v4 = vld [vmem:[#allocation200_spill] sm:$0xff] }
 0x44e   : > { %5545 = vrot.lane.b32.xlu0 %v5465_v60, %s7173_s13  ;;  %5529 = vrot.lane.b32.xlu1 %v5457_v55, %s7173_s13  ;;  %v4855_v34 = vadd.f32 %v9851_v51, %v4815_v18  ;;  %v9944_v22 = vpop.eup %7119  ;;  %v3783_v52 = vadd.f32 %v10577_v46, %v9779_v61  ;;  %v3265_v50 = vadd.f32 %v10578_v40, %v9646_v32  ;;  %7135 = vrcp.f32 %v5363_v38  ;;  %v10587_v55 = vld [vmem:[#allocation170_spill] sm:$0xff]  ;;  %v10595_v46 = vld [vmem:[#allocation241_spill] sm:$0xff] }
 0x44f   : > { %v4285_v33 = vadd.f32 %v10579_v36, %v9725_v58  ;;  %v4817_v43 = vadd.f32 %v10580_v20, %v4299_v8  ;;  %v4818_v63 = vadd.f32 %v10581_v21, %v4300_v53  ;;  %v5364_v19 = vadd.f32 1.0, %v9903_v1  ;;  %v10582_v8 = vld [vmem:[#allocation138_spill] sm:$0xff]  ;;  %v10583_v1 = vld [vmem:[#allocation139_spill] sm:$0xff] }
 0x450   : > { %v7122_v28 = vpop.eup %7121  ;;  %7137 = vrcp.f32 %v5379_v27  ;;  %v5380_v44 = vadd.f32 1.0, %v7118_v0  ;;  %v5469_v32 = vmul.f32 %v9881_v29, %v4886_v10  ;;  %v4888_v7 = vmax.f32 %v4856_v9, 0.0  ;;  %v10590_v18 = vld [vmem:[#allocation142_spill] sm:$0xff]  ;;  %v10591_v27 = vld [vmem:[#allocation231_spill] sm:$0xff]  ;;  %v10592_v9 = vld [vmem:[#allocation169_spill] sm:$0xff] }
 0x451   : > { %v7124_v61 = vpop.eup %7123  ;;  %7139 = vpow2.f32 %v6270_v48  ;;  %v5468_v58 = vmul.f32 %v9873_v59, %v4885_v39  ;;  %v4887_v3 = vmax.f32 %v4855_v34, 0.0  ;;  %v4857_v2 = vadd.f32 %v9851_v51, %v4817_v43  ;;  %v10586_v59 = vld [vmem:[#allocation167_spill] sm:$0xff] }
 0x452   : > { %5549 = vrot.lane.b32.xlu0 %v5467_v25, %s7173_s13  ;;  %5547 = vrot.lane.b32.xlu1 %v5466_v6, %s7173_s13  ;;  %7141 = vpow2.f32 %v6254_v41  ;;  %v3768_v5 = vadd.f32 %v10582_v8, %v9732_v14  ;;  %v3252_v35 = vadd.f32 %v10583_v1, %v9572_v47  ;;  %v4301_v37 = vadd.f32 %v10584_v26, %v3783_v52  ;;  %v10593_v6 = vld [vmem:[#allocation172_spill] sm:$0xff]  ;;  %v10594_v39 = vld [vmem:[#allocation203_spill] sm:$0xff] }
 0x453   : > { %v4858_v60 = vadd.f32 %v9851_v51, %v4818_v63  ;;  %v7126_v29 = vpop.eup %7125  ;;  %v3251_v54 = vadd.f32 %v10585_v23, %v9575_v13  ;;  %v3266_v30 = vadd.f32 %v10586_v59, %v9643_v56  ;;  %v3784_v45 = vadd.f32 %v10587_v55, %v3265_v50 }
 0x454   : > { %v4803_v14 = vadd.f32 %v10588_v4, %v4285_v33  ;;  %v7128_v47 = vpop.eup %7127  ;;  %v4819_v53 = vadd.f32 %v10589_v17, %v4301_v37  ;;  %7143 = vrcp.f32 %v5380_v44  ;;  %v5381_v12 = vadd.f32 1.0, %v7124_v61  ;;  %v10596_v33 = vld [vmem:[#allocation205_spill] sm:$0xff] }
 0x455   : > { %v5471_v57 = vmul.f32 %v9926_v49, %v4888_v7  ;;  %7145 = vrcp.f32 %v5364_v19  ;;  %v5365_v38 = vadd.f32 1.0, %v7116_v62  ;;  %v5470_v13 = vmul.f32 %v9898_v11, %v4887_v3  ;;  %v10598_v19 = vld [vmem:[#allocation228_spill] sm:$0xff]  ;;  %v10605_v17 = vld [vmem:[#allocation173_spill] sm:$0xff] }
 0x456   : > { %5553 = vrot.lane.b32.xlu0 %v5469_v32, %s7173_s13  ;;  %5551 = vrot.lane.b32.xlu1 %v5468_v58, %s7173_s13  ;;  %v4889_v16 = vmax.f32 %v4857_v2, 0.0  ;;  %v3770_v56 = vadd.f32 %v10590_v18, %v3251_v54  ;;  %v4302_v48 = vadd.f32 %v10591_v27, %v3784_v45  ;;  %v4890_v0 = vmax.f32 %v4858_v60, 0.0  ;;  %v10599_v58 = vld [vmem:[#allocation174_spill] sm:$0xff]  ;;  %v10604_v45 = vld [vmem:[#allocation233_spill] sm:$0xff] }
 0x457   : > { %v4859_v25 = vadd.f32 %v9851_v51, %v4819_v53  ;;  %v3785_v41 = vadd.f32 %v10592_v9, %v3266_v30  ;;  %v3267_v49 = vadd.f32 %v10593_v6, %v9652_v31  ;;  %v4286_v62 = vadd.f32 %v10594_v39, %v3768_v5  ;;  %v10597_v31 = vld [vmem:[#allocation171_spill] sm:$0xff]  ;;  %v10600_v2 = vld [vmem:[#allocation202_spill] sm:$0xff]  ;;  %v10610_v6 = vld [vmem:[#allocation176_spill] sm:$0xff] }
 0x458   : > { %v7130_v10 = vpop.eup %7129  ;;  %v4843_v11 = vadd.f32 %v9851_v51, %v4803_v14  ;;  %v4820_v52 = vadd.f32 %v10595_v46, %v4302_v48  ;;  %7147 = vrcp.f32 %v5381_v12  ;;  %v5382_v40 = vadd.f32 1.0, %v7128_v47  ;;  %v10606_v12 = vld [vmem:[#allocation207_spill] sm:$0xff]  ;;  %v10608_v48 = vld [vmem:[#allocation209_spill] sm:$0xff]  ;;  %v10613_v46 = vld [vmem:[#allocation144_spill] sm:$0xff] }
 0x459   : > { %v7132_v34 = vpop.eup %7131  ;;  %v5473_v50 = vmul.f32 %v7126_v29, %v4890_v0  ;;  %v4804_v20 = vadd.f32 %v10596_v33, %v4286_v62  ;;  %7149 = vrcp.f32 %v5365_v38  ;;  %v5366_v43 = vadd.f32 1.0, %v7122_v28  ;;  %v10602_v29 = vld [vmem:[#allocation204_spill] sm:$0xff] }
 0x45a   : > { %5557 = vrot.lane.b32.xlu0 %v5471_v57, %s7173_s13  ;;  %5555 = vrot.lane.b32.xlu1 %v5470_v13, %s7173_s13  ;;  %v7134_v36 = vpop.eup %7133  ;;  %v5472_v21 = vmul.f32 %v9930_v15, %v4889_v16  ;;  %v3268_v63 = vadd.f32 %v10597_v31, %v9649_v24  ;;  %v4303_v61 = vadd.f32 %v10598_v19, %v3785_v41  ;;  %v4891_v44 = vmax.f32 %v4859_v25, 0.0  ;;  %v10601_v24 = vld [vmem:[#allocation240_spill] sm:$0xff] }
 0x45b   : > { %v4860_v32 = vadd.f32 %v9851_v51, %v4820_v52  ;;  %v7136_v7 = vpop.eup %7135  ;;  %v3786_v3 = vadd.f32 %v10599_v58, %v3267_v49  ;;  %v4287_v8 = vadd.f32 %v10600_v2, %v9735_v42  ;;  %v4875_v28 = vmax.f32 %v4843_v11, 0.0  ;;  %v10603_v42 = vld [vmem:[#allocation141_spill] sm:$0xff]  ;;  %v10609_v41 = vld [vmem:[#allocation4_spill] sm:$0xff]  ;;  %v10611_v49 = vld [vmem:[#allocation230_spill] sm:$0xff] }
 0x45c   : > { %v4844_v15 = vadd.f32 %v9851_v51, %v4804_v20  ;;  %v4821_v1 = vadd.f32 %v10601_v24, %v4303_v61  ;;  %7151 = vrcp.f32 %v5382_v40  ;;  %v5383_v26 = vadd.f32 1.0, %v7134_v36  ;;  %v10614_v40 = vld [vmem:[#allocation206_spill] sm:$0xff]  ;;  %v10619_v2 = vld [vmem:[#allocation8_spill] sm:$0xff] }
 0x45d   : > { %v7138_v5 = vpop.eup %7137  ;;  %v5474_v37 = vmul.f32 %v7130_v10, %v4891_v44  ;;  %v4805_v23 = vadd.f32 %v10602_v29, %v4287_v8  ;;  %7153 = vrcp.f32 %v5366_v43  ;;  %v5367_v54 = vadd.f32 1.0, %v7132_v34  ;;  %v10612_v34 = vld [vmem:[#allocation7_spill] sm:$0xff]  ;;  %v10615_v20 = vld [vmem:[#allocation178_spill] sm:$0xff] }
 0x45e   : > { %5561 = vrot.lane.b32.xlu0 %v5473_v50, %s7173_s13  ;;  %5559 = vrot.lane.b32.xlu1 %v5472_v21, %s7173_s13  ;;  %v7140_v60 = vpop.eup %7139  ;;  %v5458_v59 = vmul.f32 %v9944_v22, %v4875_v28  ;;  %v3771_v55 = vadd.f32 %v10603_v42, %v3252_v35  ;;  %v4304_v4 = vadd.f32 %v10604_v45, %v3786_v3  ;;  %v4892_v14 = vmax.f32 %v4860_v32, 0.0  ;;  %v10607_v22 = vld [vmem:[#allocation243_spill] sm:$0xff]  ;;  %v10616_v21 = vld [vmem:[#allocation242_spill] sm:$0xff]  ;;  %v10618_v32 = vld [vmem:[#allocation208_spill] sm:$0xff] }
 0x45f   : > { %v7142_v30 = vpop.eup %7141  ;;  %v4861_v47 = vadd.f32 %v9851_v51, %v4821_v1  ;;  %v3787_v53 = vadd.f32 %v10605_v17, %v3268_v63  ;;  %v4288_v57 = vadd.f32 %v10606_v12, %v3770_v56  ;;  %v4876_v38 = vmax.f32 %v4844_v15, 0.0  ;;  %v10617_v61 = vld [vmem:[#allocation146_spill] sm:$0xff]  ;;  %v10620_v8 = vld [vmem:[#allocation175_spill] sm:$0xff] }
 0x460   : > { %v4845_v13 = vadd.f32 %v9851_v51, %v4805_v23  ;;  %v4822_v16 = vadd.f32 %v10607_v22, %v4304_v4  ;;  %7155 = vrcp.f32 %v5383_v26  ;;  %v5384_v35 = vadd.f32 1.0, %v7140_v60  ;;  %v10621_v15 = vld [vmem:[#allocation235_spill] sm:$0xff] }
 0x461   : > { %v5475_v18 = vmul.f32 %v7138_v5, %v4892_v14  ;;  %v7144_v27 = vpop.eup %7143  ;;  %v4806_v0 = vadd.f32 %v10608_v48, %v4288_v57  ;;  %7157 = vrcp.f32 %v5367_v54  ;;  %v5368_v25 = vadd.f32 1.0, %v7142_v30  ;;  %v10622_v26 = vld [vmem:[#allocation3_spill] sm:$0xff]  ;;  %v10625_v30 = vld [vmem:[#allocation177_spill] sm:$0xff] }
 0x462   : > { %5563 = vrot.lane.b32.xlu0 %v5474_v37, %s7173_s13  ;;  %5531 = vrot.lane.b32.xlu1 %v5458_v59, %s7173_s13  ;;  %v5459_v10 = vmul.f32 %v7136_v7, %v4876_v38  ;;  %v7146_v9 = vpop.eup %7145  ;;  %v3269_v56 = vadd.f32 %v10610_v6, %v10609_v41  ;;  %v4305_v39 = vadd.f32 %v10611_v49, %v3787_v53  ;;  %v4893_v62 = vmax.f32 %v4861_v47, 0.0  ;;  %v10623_v37 = vld [vmem:[#allocation143_spill] sm:$0xff]  ;;  %v10627_v47 = vld [vmem:[#allocation145_spill] sm:$0xff]  ;;  %v10632_v6 = vld [vmem:[#allocation212_spill] sm:$0xff] }
 0x463   : > { %v4862_v11 = vadd.f32 %v9851_v51, %v4822_v16  ;;  %v3253_v52 = vadd.f32 %v10613_v46, %v10612_v34  ;;  %v4289_v50 = vadd.f32 %v10614_v40, %v3771_v55  ;;  %v4877_v36 = vmax.f32 %v4845_v13, 0.0  ;;  %v10624_v29 = vld [vmem:[#allocation211_spill] sm:$0xff]  ;;  %v10626_v55 = vld [vmem:[#allocation245_spill] sm:$0xff]  ;;  %v10629_v13 = vld [vmem:[#allocation232_spill] sm:$0xff] }
 0x464   : > { %v4846_v33 = vadd.f32 %v9851_v51, %v4806_v0  ;;  %v3788_v43 = vadd.f32 %v10615_v20, %v3269_v56  ;;  %v4823_v31 = vadd.f32 %v10616_v21, %v4305_v39  ;;  %7159 = vrcp.f32 %v5384_v35  ;;  %v10628_v53 = vld [vmem:[#allocation213_spill] sm:$0xff] }
 0x465   : > { %v5476_v63 = vmul.f32 %v7144_v27, %v4893_v62  ;;  %v7148_v19 = vpop.eup %7147  ;;  %v3772_v44 = vadd.f32 %v10617_v61, %v3253_v52  ;;  %v4807_v7 = vadd.f32 %v10618_v32, %v4289_v50  ;;  %7161 = vrcp.f32 %v5368_v25  ;;  %v10631_v25 = vld [vmem:[#allocation244_spill] sm:$0xff] }
 0x466   : > { %5565 = vrot.lane.b32.xlu0 %v5475_v18, %s7173_s13  ;;  %5533 = vrot.lane.b32.xlu1 %v5459_v10, %s7173_s13  ;;  %v5460_v58 = vmul.f32 %v7146_v9, %v4877_v36  ;;  %v7150_v3 = vpop.eup %7149  ;;  %v3270_v28 = vadd.f32 %v10620_v8, %v10619_v2  ;;  %v4306_v5 = vadd.f32 %v10621_v15, %v3788_v43  ;;  %v4894_v24 = vmax.f32 %v4862_v11, 0.0  ;;  %v10630_v18 = vld [vmem:[#allocation210_spill] sm:$0xff] }
 0x467   : > { %v4863_v1 = vadd.f32 %v9851_v51, %v4823_v31  ;;  %v3254_v60 = vadd.f32 %v10623_v37, %v10622_v26  ;;  %v4290_v23 = vadd.f32 %v10624_v29, %v3772_v44  ;;  %v4878_v54 = vmax.f32 %v4846_v33, 0.0 }
 0x468   : > { %v4847_v59 = vadd.f32 %v9851_v51, %v4807_v7  ;;  %v3789_v42 = vadd.f32 %v10625_v30, %v3270_v28  ;;  %v4824_v45 = vadd.f32 %v10626_v55, %v4306_v5  ;;  %v5477_v4 = vmul.f32 %v7148_v19, %v4894_v24 }
 0x469   : > { %v7152_v14 = vpop.eup %7151  ;;  %v3773_v17 = vadd.f32 %v10627_v47, %v3254_v60  ;;  %v4808_v12 = vadd.f32 %v10628_v53, %v4290_v23  ;;  %v5461_v57 = vmul.f32 %v7150_v3, %v4878_v54  ;;  %v4895_v16 = vmax.f32 %v4863_v1, 0.0 }
 0x46a   : > { %5567 = vrot.lane.b32.xlu0 %v5476_v63, %s7173_s13  ;;  %5535 = vrot.lane.b32.xlu1 %v5460_v58, %s7173_s13  ;;  %v7154_v38 = vpop.eup %7153  ;;  %v4307_v22 = vadd.f32 %v10629_v13, %v3789_v42  ;;  %v4864_v35 = vadd.f32 %v9851_v51, %v4824_v45  ;;  %v4879_v48 = vmax.f32 %v4847_v59, 0.0 }
 0x46b   : > { %v4291_v27 = vadd.f32 %v10630_v18, %v3773_v17  ;;  %v4848_v0 = vadd.f32 %v9851_v51, %v4808_v12  ;;  %v5478_v9 = vmul.f32 %v7152_v14, %v4895_v16 }
 0x46c   : > { %v4825_v10 = vadd.f32 %v10631_v25, %v4307_v22  ;;  %v5462_v49 = vmul.f32 %v7154_v38, %v4879_v48  ;;  %v4896_v62 = vmax.f32 %v4864_v35, 0.0 }
 0x46d   : > { %v7156_v41 = vpop.eup %7155  ;;  %v4809_v56 = vadd.f32 %v10632_v6, %v4291_v27  ;;  %v4880_v34 = vmax.f32 %v4848_v0, 0.0 }
 0x46e   : > { %5569 = vrot.lane.b32.xlu0 %v5477_v4, %s7173_s13  ;;  %5537 = vrot.lane.b32.xlu1 %v5461_v57, %s7173_s13  ;;  %v7158_v39 = vpop.eup %7157  ;;  %v4865_v11 = vadd.f32 %v9851_v51, %v4825_v10  ;;  %v5479_v52 = vmul.f32 %v7156_v41, %v4896_v62 }
 0x46f   : > { %v4849_v46 = vadd.f32 %v9851_v51, %v4809_v56  ;;  %v5463_v50 = vmul.f32 %v7158_v39, %v4880_v34 }
 0x470   : > { %v4897_v33 = vmax.f32 %v4865_v11, 0.0 }
 0x471   : > { %v7160_v40 = vpop.eup %7159  ;;  %v4881_v20 = vmax.f32 %v4849_v46, 0.0 }
 0x472   : > { %5571 = vrot.lane.b32.xlu0 %v5478_v9, %s7173_s13  ;;  %5539 = vrot.lane.b32.xlu1 %v5462_v49, %s7173_s13  ;;  %v7162_v36 = vpop.eup %7161  ;;  %v5480_v43 = vmul.f32 %v7160_v40, %v4897_v33 }
 0x473   : > { %v5464_v21 = vmul.f32 %v7162_v36, %v4881_v20 }
 0x476   : > { %5573 = vrot.lane.b32.xlu0 %v5479_v52, %s7173_s13  ;;  %5541 = vrot.lane.b32.xlu1 %v5463_v50, %s7173_s13 }
 0x47a   : > { %5575 = vrot.lane.b32.xlu0 %v5480_v43, %s7173_s13  ;;  %5543 = vrot.lane.b32.xlu1 %v5464_v21, %s7173_s13 }
 0x4b0   : > { %v5514_v31 = vpop.permute.xlu0 %5513  ;;  %v5516_v63 = vpop.permute.xlu1 %5515 }
 0x4b1   : > { %5609 = vxpose.xlu1.b32.start [1/16] (narrow) %v5514_v31, 16 }
 0x4b4   : > { %v5520_v51 = vpop.permute.xlu0 %5519  ;;  %v5518_v19 = vpop.permute.xlu1 %5517 }
 0x4b5   : > { %5610 = vxpose.xlu1.b32.cont [2/16] (narrow) %v5516_v63, 16 }
 0x4b8   : > { %v5524_v61 = vpop.permute.xlu0 %5523  ;;  %v5522_v44 = vpop.permute.xlu1 %5521 }
 0x4b9   : > { %5611 = vxpose.xlu1.b32.cont [3/16] (narrow) %v5518_v19, 16 }
 0x4bc   : > { %v5528_v32 = vpop.permute.xlu0 %5527  ;;  %v5526_v7 = vpop.permute.xlu1 %5525 }
 0x4bd   : > { %5612 = vxpose.xlu1.b32.cont [4/16] (narrow) %v5520_v51, 16 }
 0x4c0   : > { %v5546_v58 = vpop.permute.xlu0 %5545  ;;  %v5530_v3 = vpop.permute.xlu1 %5529 }
 0x4c1   : > { %5613 = vxpose.xlu1.b32.cont [5/16] (narrow) %v5522_v44, 16  ;;  %5641 = vxpose.xlu0.b32.start [1/16] (narrow) %v5546_v58, 16 }
 0x4c4   : > { %v5550_v2 = vpop.permute.xlu0 %5549  ;;  %v5548_v8 = vpop.permute.xlu1 %5547 }
 0x4c5   : > { %5614 = vxpose.xlu1.b32.cont [6/16] (narrow) %v5524_v61, 16  ;;  %5642 = vxpose.xlu0.b32.cont [2/16] (narrow) %v5548_v8, 16 }
 0x4c8   : > { %v5554_v28 = vpop.permute.xlu0 %5553  ;;  %v5552_v15 = vpop.permute.xlu1 %5551 }
 0x4c9   : > { %5615 = vxpose.xlu1.b32.cont [7/16] (narrow) %v5526_v7, 16  ;;  %5643 = vxpose.xlu0.b32.cont [3/16] (narrow) %v5550_v2, 16 }
 0x4cc   : > { %v5556_v5 = vpop.permute.xlu1 %5555  ;;  %v5558_v24 = vpop.permute.xlu0 %5557 }
 0x4cd   : > { %5616 = vxpose.xlu1.b32.cont [8/16] (narrow) %v5528_v32, 16  ;;  %5644 = vxpose.xlu0.b32.cont [4/16] (narrow) %v5552_v15, 16 }
 0x4d0   : > { %v5560_v1 = vpop.permute.xlu1 %5559  ;;  %v5562_v26 = vpop.permute.xlu0 %5561 }
 0x4d1   : > { %5617 = vxpose.xlu1.b32.cont [9/16] (narrow) %v5530_v3, 16  ;;  %5645 = vxpose.xlu0.b32.cont [5/16] (narrow) %v5554_v28, 16 }
 0x4d4   : > { %v5532_v37 = vpop.permute.xlu1 %5531  ;;  %v5564_v60 = vpop.permute.xlu0 %5563 }
 0x4d5   : > { %5618 = vxpose.xlu1.b32.cont [10/16] (narrow) %v5532_v37, 16  ;;  %5646 = vxpose.xlu0.b32.cont [6/16] (narrow) %v5556_v5, 16 }
 0x4d8   : > { %v5534_v29 = vpop.permute.xlu1 %5533  ;;  %v5566_v54 = vpop.permute.xlu0 %5565 }
 0x4d9   : > { %5619 = vxpose.xlu1.b32.cont [11/16] (narrow) %v5534_v29, 16  ;;  %5647 = vxpose.xlu0.b32.cont [7/16] (narrow) %v5558_v24, 16 }
 0x4dc   : > { %v5536_v23 = vpop.permute.xlu1 %5535  ;;  %v5568_v30 = vpop.permute.xlu0 %5567 }
 0x4dd   : > { %5620 = vxpose.xlu1.b32.cont [12/16] (narrow) %v5536_v23, 16  ;;  %5648 = vxpose.xlu0.b32.cont [8/16] (narrow) %v5560_v1, 16 }
 0x4e0   : > { %v5538_v59 = vpop.permute.xlu1 %5537  ;;  %v5570_v45 = vpop.permute.xlu0 %5569 }
 0x4e1   : > { %5621 = vxpose.xlu1.b32.cont [13/16] (narrow) %v5538_v59, 16  ;;  %5649 = vxpose.xlu0.b32.cont [9/16] (narrow) %v5562_v26, 16 }
 0x4e4   : > { %v5540_v42 = vpop.permute.xlu1 %5539  ;;  %v5572_v14 = vpop.permute.xlu0 %5571 }
 0x4e5   : > { %5622 = vxpose.xlu1.b32.cont [14/16] (narrow) %v5540_v42, 16  ;;  %5650 = vxpose.xlu0.b32.cont [10/16] (narrow) %v5564_v60, 16 }
 0x4e8   : > { %v5542_v55 = vpop.permute.xlu1 %5541  ;;  %v5574_v47 = vpop.permute.xlu0 %5573 }
 0x4e9   : > { %5623 = vxpose.xlu1.b32.cont [15/16] (narrow) %v5542_v55, 16  ;;  %5651 = vxpose.xlu0.b32.cont [11/16] (narrow) %v5566_v54, 16 }
 0x4ec   : > { %v5544_v4 = vpop.permute.xlu1 %5543  ;;  %v5576_v17 = vpop.permute.xlu0 %5575 }
 0x4ed   : > { %5624 = vxpose.xlu1.b32.end [16/16] (narrow) %v5544_v4, 16  ;;  %5652 = vxpose.xlu0.b32.cont [12/16] (narrow) %v5568_v30, 16 }
 0x4f1   : > { %5653 = vxpose.xlu0.b32.cont [13/16] (narrow) %v5570_v45, 16 }
 0x4f5   : > { %5654 = vxpose.xlu0.b32.cont [14/16] (narrow) %v5572_v14, 16 }
 0x4f9   : > { %5655 = vxpose.xlu0.b32.cont [15/16] (narrow) %v5574_v47, 16 }
 0x4fd   : > { %5656 = vxpose.xlu0.b32.end [16/16] (narrow) %v5576_v17, 16 }
 0x52d   : > { %v5625_v53 = vpop.trf.xlu1 }
 0x52e   : > { %5673 = vst [vmem:[%s279_s17] sm:$0xff] %v5625_v53 }
 0x531   : > { %v5626_v12 = vpop.trf.xlu1 }
 0x532   : > { %5675 = vst [vmem:[%s279_s17 + $0x10] sm:$0xff] %v5626_v12 }
 0x53d   : > { %v5657_v57 = vpop.trf.xlu0 }
 0x53e   : > { %5674 = vst [vmem:[%s279_s17 + $0x8] sm:$0xff] %v5657_v57 }
 0x541   : > { %v5658_v38 = vpop.trf.xlu0 }
 0x542   : > { %5676 = vst [vmem:[%s279_s17 + $0x18] sm:$0xff] %v5658_v38 }
 0x543 PF: > { %s18_s26 = sadd.s32 1, %s7169_s26  }
 0x544   : > { %p15_p4 = scmp.ge.s32.totalorder %s18_s26, 4  }
 0x546   :  { %17 = sbr.rel (!%p15_p4) target bundleno = 2 (0x2), region = 87 }

</bundles_post_ra>
